<compile_context>
chip_gen: v7x
topology: tpu7x:2x2x1
jax: 0.10.0
libtpu: 0.0.40
codegen_flags: <defaults>
</compile_context>

<pallas_src>
import functools

import numpy as np

import jax
import jax.numpy as jnp
from jax.experimental import pallas as pl
from jax.experimental.pallas import tpu as pltpu


# ------------------------------ model config --------------------------------
INPUT_C = 4
CHANNELS = (8, 8)
KERNELS = (3, 3)
HIDDEN = (512, 256)
N_OUT = 10
HEIGHT = WIDTH = 16
# conv spatial: 16 -> 14 -> 12 ; flattened features = 8 * 12 * 12 = 1152


# --------------------------- fused forward kernel ---------------------------

def convmlp_kernel(x_ref, cm1_ref, cb1_ref, cm2_ref, cb2_ref,
                   fw1_ref, fb1_ref, fw2_ref, fb2_ref, fw3_ref, fb3_ref,
                   out_ref):
    """Entire ConvMLP forward, VMEM resident, 2D MXU matmuls only.

    x:   (B, H, Cin*W)            f32, (ci, w) folded into lanes
    cm1: (KH, Cin*W, Wo1*C1)      bf16 banded conv1 matrices
    cm2: (KH, Wo1*C1, Wo2*C2)     bf16 banded conv2 matrices
    cb*: (1, Wo*C)                f32 per-channel bias tiled over width
    fw1: (Ho2, Wo2*C2, 512)       bf16 fc1 weight, rows pre-permuted
    fw2: (512, 256)  fw3: (256, 128 pad)   bf16 fc2/fc3 weights (in, out)
    fb*: (1, N)                   f32 fc biases (fb3 pad lanes = -1e4)
    out: (B, 128)                 f32 lane-dense padded sigmoid output
    """
    f32, bf16 = jnp.float32, jnp.bfloat16
    B, H, _ = x_ref.shape
    KH1, _, R1 = cm1_ref.shape
    KH2, _, R2 = cm2_ref.shape
    Ho1 = H - KH1 + 1
    Ho2 = Ho1 - KH2 + 1
    N1 = fw1_ref.shape[-1]

    # ---- conv stack, one batch element at a time (B is tiny): per kernel row
    #      kh a plain (Ho, K) x (K, Wo*C) matmul; bf16 operands, f32 accum. ----
    h2_rows = []                                        # per-b (Ho2, R2) f32
    for b in range(B):
        xb = x_ref[b]                                   # (H, Cin*W) f32
        acc1 = jnp.zeros((Ho1, R1), f32)
        for kh in range(KH1):
            acc1 += jnp.dot(xb[kh:kh + Ho1, :].astype(bf16), cm1_ref[kh],
                            preferred_element_type=f32)
        h1 = jnp.maximum(acc1 + cb1_ref[...], 0.0)      # (Ho1, R1) f32

        acc2 = jnp.zeros((Ho2, R2), f32)
        for kh in range(KH2):
            acc2 += jnp.dot(h1[kh:kh + Ho2, :].astype(bf16), cm2_ref[kh],
                            preferred_element_type=f32)
        h2_rows.append(jnp.maximum(acc2 + cb2_ref[...], 0.0))   # (Ho2, R2)

    # ---- fc1 + ReLU: per conv row h, assemble a (B, R2) LHS from the per-b
    #      conv outputs with a VPU select (no unaligned relayouts) and run one
    #      M=B matmul against the pre-permuted fc1 slab.  This reproduces
    #      Linear(flatten_NCHW(conv_out)) exactly. ----
    row_id = jax.lax.broadcasted_iota(jnp.int32, (B, R2), 0)
    acc3 = jnp.zeros((B, N1), f32)
    for h in range(Ho2):
        lhs = jnp.broadcast_to(h2_rows[0][h:h + 1, :], (B, R2))
        for b in range(1, B):
            lhs = jnp.where(row_id == b, h2_rows[b][h:h + 1, :], lhs)
        acc3 += jnp.dot(lhs.astype(bf16), fw1_ref[h],
                        preferred_element_type=f32)
    z = jnp.maximum(acc3 + fb1_ref[...], 0.0)           # (B, 512) f32

    # ---- fc2 + ReLU, fc3 + Sigmoid (padded fc3 lanes get -1e4 bias -> ~0) ----
    z = jnp.dot(z.astype(bf16), fw2_ref[...], preferred_element_type=f32)
    z = jnp.maximum(z + fb2_ref[...], 0.0)              # (B, 256)
    z = jnp.dot(z.astype(bf16), fw3_ref[...], preferred_element_type=f32)
    z = z + fb3_ref[...]                                # (B, 128)
    out_ref[...] = (1.0 / (1.0 + jnp.exp(-z))).astype(out_ref.dtype)


# ------------------------------- wrapper ------------------------------------

_VMEM = pl.BlockSpec(memory_space=pltpu.MemorySpace.VMEM)


def _fused_call(x3, p):
    batch = x3.shape[0]
    n_pad = p["fw3"].shape[-1]
    return pl.pallas_call(
        convmlp_kernel,
        out_shape=jax.ShapeDtypeStruct((batch, n_pad), jnp.float32),
        in_specs=[_VMEM] * 11,
        out_specs=_VMEM,
    )(x3, p["cm1"], p["cb1"], p["cm2"], p["cb2"],
      p["fw1"], p["fb1"], p["fw2"], p["fb2"], p["fw3"], p["fb3"])


@functools.partial(jax.jit, static_argnames=("n_out",))
def conv_mlp_forward(x_nchw, p, n_out=N_OUT):
    b, c, h, w = x_nchw.shape
    # Fold (ci, w) into lanes outside the kernel (tiny XLA transpose).
    x3 = jnp.transpose(x_nchw, (0, 2, 1, 3)).reshape(b, h, c * w)
    out = _fused_call(x3, p)            # (B, 128), lane-dense store
    return out[:, :n_out]               # (B, n_out)


# ----------------------- one-time parameter preparation ---------------------

def prepare_params(params, *, height=HEIGHT, width=WIDTH):
    """Convert PyTorch-layout params into the fused kernel's layout (runs once)."""
    (cw1, cb1), (cw2, cb2) = params["conv"]
    fw1, fb1 = params["fc1"]
    fw2, fb2 = params["fc2"]
    fw3, fb3 = params["fc3"]

    cw1 = np.asarray(cw1, np.float32)
    cw2 = np.asarray(cw2, np.float32)
    c1, cin, kh1, kw1 = cw1.shape
    c2, _, kh2, kw2 = cw2.shape
    ho1, wo1 = height - kh1 + 1, width - kw1 + 1
    ho2, wo2 = ho1 - kh2 + 1, wo1 - kw2 + 1

    # conv1 banded matrices with input channels folded into K:
    # rows index (ci, w_in); cols fold (w_out, c_out).
    cm1 = np.zeros((kh1, cin * width, wo1 * c1), np.float32)
    for kh in range(kh1):
        for ci in range(cin):
            for kw in range(kw1):
                for w in range(wo1):
                    cm1[kh, ci * width + w + kw,
                        w * c1:(w + 1) * c1] = cw1[:, ci, kh, kw]

    # conv2 banded matrices: rows fold (w_in, c_in), cols fold (w_out, c_out).
    cm2 = np.zeros((kh2, wo1 * c1, wo2 * c2), np.float32)
    for kh in range(kh2):
        for kw in range(kw2):
            for w in range(wo2):
                cm2[kh, (w + kw) * c1:(w + kw + 1) * c1,
                    w * c2:(w + 1) * c2] = cw2[:, :, kh, kw].T

    # fc1: permute rows from PyTorch's NCHW flatten order (c, h, w) to the
    # kernel's folded (h, (w, c)) order, split per conv row h.
    fw1 = np.asarray(fw1, np.float32)
    n1 = fw1.shape[0]
    w1r = fw1.T.reshape(c2, ho2, wo2, n1)               # rows: c*HW + h*W + w
    w1r = np.transpose(w1r, (1, 2, 0, 3)).reshape(ho2, wo2 * c2, n1)

    fw2 = np.asarray(fw2, np.float32)
    n2 = fw2.shape[0]
    fw3 = np.asarray(fw3, np.float32)
    n3 = fw3.shape[0]
    n3_pad = ((n3 + 127) // 128) * 128                  # lane-dense final store
    fw3_t = np.zeros((n2, n3_pad), np.float32)
    fw3_t[:, :n3] = fw3.T
    # Padded output lanes get a very negative bias so sigmoid() -> 0 there;
    # the raw 128-lane output is then safe even without the wrapper slice.
    fb3_p = np.full((n3_pad,), -1.0e4, np.float32)
    fb3_p[:n3] = np.asarray(fb3, np.float32)

    bf16 = jnp.bfloat16
    return {
        "cm1": jnp.asarray(cm1, bf16),
        "cb1": jnp.asarray(np.tile(np.asarray(cb1, np.float32), wo1)
                           .reshape(1, wo1 * c1)),
        "cm2": jnp.asarray(cm2, bf16),
        "cb2": jnp.asarray(np.tile(np.asarray(cb2, np.float32), wo2)
                           .reshape(1, wo2 * c2)),
        "fw1": jnp.asarray(w1r, bf16),
        "fb1": jnp.asarray(np.asarray(fb1, np.float32).reshape(1, n1)),
        "fw2": jnp.asarray(fw2.T, bf16),
        "fb2": jnp.asarray(np.asarray(fb2, np.float32).reshape(1, n2)),
        "fw3": jnp.asarray(fw3_t, bf16),
        "fb3": jnp.asarray(fb3_p.reshape(1, n3_pad)),
    }


# --------------------- PyTorch-layout params + reference --------------------

def init_params(key):
    keys = jax.random.split(key, 10)
    ki = iter(keys)

    def w(shape, scale):
        return scale * jax.random.normal(next(ki), shape, dtype=jnp.float32)

    k = KERNELS[0]
    ho = HEIGHT - 2 * (k - 1)
    wo = WIDTH - 2 * (k - 1)
    feat = CHANNELS[-1] * ho * wo                       # 1152

    conv = [
        (w((CHANNELS[0], INPUT_C, k, k), (2.0 / (INPUT_C * k * k)) ** 0.5),
         w((CHANNELS[0],), 0.1)),
        (w((CHANNELS[1], CHANNELS[0], k, k), (2.0 / (CHANNELS[0] * k * k)) ** 0.5),
         w((CHANNELS[1],), 0.1)),
    ]
    return {
        "conv": conv,
        "fc1": (w((HIDDEN[0], feat), (2.0 / feat) ** 0.5), w((HIDDEN[0],), 0.1)),
        "fc2": (w((HIDDEN[1], HIDDEN[0]), (2.0 / HIDDEN[0]) ** 0.5),
                w((HIDDEN[1],), 0.1)),
        "fc3": (w((N_OUT, HIDDEN[1]), (2.0 / HIDDEN[1]) ** 0.5), w((N_OUT,), 0.1)),
    }


def reference_forward(x, params):
    """Pure-JAX (XLA) replica of the PyTorch module, for numerical validation."""
    def conv_relu(x, w, b):
        y = jax.lax.conv_general_dilated(
            x, w, window_strides=(1, 1), padding="VALID",
            dimension_numbers=("NCHW", "OIHW", "NCHW"))
        return jnp.maximum(y + b[None, :, None, None], 0.0)

    for w, b in params["conv"]:
        x = conv_relu(x, w, b)
    x = x.reshape(x.shape[0], -1)                       # == torch .view(B, -1) on NCHW
    w, b = params["fc1"]; x = jnp.maximum(x @ w.T + b, 0.0)
    w, b = params["fc2"]; x = jnp.maximum(x @ w.T + b, 0.0)
    w, b = params["fc3"]; x = jax.nn.sigmoid(x @ w.T + b)
    return x


# ---------------------------------- main -------------------------------------

if __name__ == "__main__":
    key = jax.random.PRNGKey(0)
    k_x, k_p = jax.random.split(key)
    x = jax.random.normal(k_x, (2, INPUT_C, HEIGHT, WIDTH), dtype=jnp.float32)

    torch_params = init_params(k_p)                     # PyTorch layouts
    prepped = prepare_params(torch_params)              # one-time kernel layouts

    out = conv_mlp_forward(x, prepped, n_out=N_OUT)
    out = jax.block_until_ready(out)

    assert out.shape == (2, N_OUT), out.shape
    assert bool(jnp.all(jnp.isfinite(out)))
    assert bool(jnp.all(out >= 0.0)) and bool(jnp.all(out <= 1.0))   # sigmoid range

    ref = np.asarray(reference_forward(x, torch_params))
    diff = float(np.max(np.abs(np.asarray(out) - ref)))
    # bf16 MXU operands (weights + activations at the dots) bound the error.
    assert np.allclose(np.asarray(out), ref, rtol=3e-2, atol=3e-2), diff

    print("KERNEL_OK")
</pallas_src>

<mosaic_0001>
module attributes {stable_mosaic.version = 11 : i64} {
  func.func @convmlp_kernel(%arg0: memref<2x16x64xf32, #tpu.memory_space<vmem>>, %arg1: memref<3x64x112xbf16, #tpu.memory_space<vmem>>, %arg2: memref<1x112xf32, #tpu.memory_space<vmem>>, %arg3: memref<3x112x96xbf16, #tpu.memory_space<vmem>>, %arg4: memref<1x96xf32, #tpu.memory_space<vmem>>, %arg5: memref<12x96x512xbf16, #tpu.memory_space<vmem>>, %arg6: memref<1x512xf32, #tpu.memory_space<vmem>>, %arg7: memref<512x256xbf16, #tpu.memory_space<vmem>>, %arg8: memref<1x256xf32, #tpu.memory_space<vmem>>, %arg9: memref<256x128xbf16, #tpu.memory_space<vmem>>, %arg10: memref<1x128xf32, #tpu.memory_space<vmem>>, %arg11: memref<2x128xf32, #tpu.memory_space<vmem>>) attributes {dimension_semantics = [], scalar_prefetch = 0 : i64, scratch_operands = 0 : i64, tpu.core_type = #tpu.core_type<tc>} {
    %c0 = arith.constant 0 : index
    %c0_0 = arith.constant 0 : index
    %c0_1 = arith.constant 0 : index
    %0 = vector.load %arg0[%c0, %c0_0, %c0_1] : memref<2x16x64xf32, #tpu.memory_space<vmem>>, vector<1x16x64xf32>
    %1 = vector.shape_cast %0 : vector<1x16x64xf32> to vector<16x64xf32>
    %cst = arith.constant 0.000000e+00 : f32
    %2 = vector.broadcast %cst : f32 to vector<14x112xf32>
    %3 = vector.extract_strided_slice %1 {offsets = [0, 0], sizes = [14, 64], strides = [1, 1]} : vector<16x64xf32> to vector<14x64xf32>
    %4 = arith.truncf %3 : vector<14x64xf32> to vector<14x64xbf16>
    %c0_2 = arith.constant 0 : index
    %c0_3 = arith.constant 0 : index
    %c0_4 = arith.constant 0 : index
    %5 = vector.load %arg1[%c0_2, %c0_3, %c0_4] : memref<3x64x112xbf16, #tpu.memory_space<vmem>>, vector<1x64x112xbf16>
    %6 = vector.shape_cast %5 : vector<1x64x112xbf16> to vector<64x112xbf16>
    %cst_5 = arith.constant dense<0.000000e+00> : vector<14x112xf32>
    %7 = tpu.matmul %4, %6, %cst_5 {dimension_numbers = #tpu.dot_dimension_numbers<[1], [0], [0], [1], [0, 0, 1, 1], [], []>} : vector<14x64xbf16>, vector<64x112xbf16>, vector<14x112xf32> -> vector<14x112xf32>
    %8 = arith.addf %2, %7 : vector<14x112xf32>
    %9 = vector.extract_strided_slice %1 {offsets = [1, 0], sizes = [14, 64], strides = [1, 1]} : vector<16x64xf32> to vector<14x64xf32>
    %10 = arith.truncf %9 : vector<14x64xf32> to vector<14x64xbf16>
    %c1 = arith.constant 1 : index
    %c0_6 = arith.constant 0 : index
    %c0_7 = arith.constant 0 : index
    %11 = vector.load %arg1[%c1, %c0_6, %c0_7] : memref<3x64x112xbf16, #tpu.memory_space<vmem>>, vector<1x64x112xbf16>
    %12 = vector.shape_cast %11 : vector<1x64x112xbf16> to vector<64x112xbf16>
    %cst_8 = arith.constant dense<0.000000e+00> : vector<14x112xf32>
    %13 = tpu.matmul %10, %12, %cst_8 {dimension_numbers = #tpu.dot_dimension_numbers<[1], [0], [0], [1], [0, 0, 1, 1], [], []>} : vector<14x64xbf16>, vector<64x112xbf16>, vector<14x112xf32> -> vector<14x112xf32>
    %14 = arith.addf %8, %13 : vector<14x112xf32>
    %15 = vector.extract_strided_slice %1 {offsets = [2, 0], sizes = [14, 64], strides = [1, 1]} : vector<16x64xf32> to vector<14x64xf32>
    %16 = arith.truncf %15 : vector<14x64xf32> to vector<14x64xbf16>
    %c2 = arith.constant 2 : index
    %c0_9 = arith.constant 0 : index
    %c0_10 = arith.constant 0 : index
    %17 = vector.load %arg1[%c2, %c0_9, %c0_10] : memref<3x64x112xbf16, #tpu.memory_space<vmem>>, vector<1x64x112xbf16>
    %18 = vector.shape_cast %17 : vector<1x64x112xbf16> to vector<64x112xbf16>
    %cst_11 = arith.constant dense<0.000000e+00> : vector<14x112xf32>
    %19 = tpu.matmul %16, %18, %cst_11 {dimension_numbers = #tpu.dot_dimension_numbers<[1], [0], [0], [1], [0, 0, 1, 1], [], []>} : vector<14x64xbf16>, vector<64x112xbf16>, vector<14x112xf32> -> vector<14x112xf32>
    %20 = arith.addf %14, %19 : vector<14x112xf32>
    %c0_12 = arith.constant 0 : index
    %c0_13 = arith.constant 0 : index
    %21 = vector.load %arg2[%c0_12, %c0_13] : memref<1x112xf32, #tpu.memory_space<vmem>>, vector<1x112xf32>
    %22 = vector.broadcast %21 : vector<1x112xf32> to vector<14x112xf32>
    %23 = arith.addf %20, %22 : vector<14x112xf32>
    %cst_14 = arith.constant 0.000000e+00 : f32
    %24 = vector.broadcast %cst_14 : f32 to vector<14x112xf32>
    %25 = arith.maximumf %23, %24 : vector<14x112xf32>
    %cst_15 = arith.constant 0.000000e+00 : f32
    %26 = vector.broadcast %cst_15 : f32 to vector<12x96xf32>
    %27 = vector.extract_strided_slice %25 {offsets = [0, 0], sizes = [12, 112], strides = [1, 1]} : vector<14x112xf32> to vector<12x112xf32>
    %28 = arith.truncf %27 : vector<12x112xf32> to vector<12x112xbf16>
    %c0_16 = arith.constant 0 : index
    %c0_17 = arith.constant 0 : index
    %c0_18 = arith.constant 0 : index
    %29 = vector.load %arg3[%c0_16, %c0_17, %c0_18] : memref<3x112x96xbf16, #tpu.memory_space<vmem>>, vector<1x112x96xbf16>
    %30 = vector.shape_cast %29 : vector<1x112x96xbf16> to vector<112x96xbf16>
    %cst_19 = arith.constant dense<0.000000e+00> : vector<12x96xf32>
    %31 = tpu.matmul %28, %30, %cst_19 {dimension_numbers = #tpu.dot_dimension_numbers<[1], [0], [0], [1], [0, 0, 1, 1], [], []>} : vector<12x112xbf16>, vector<112x96xbf16>, vector<12x96xf32> -> vector<12x96xf32>
    %32 = arith.addf %26, %31 : vector<12x96xf32>
    %33 = vector.extract_strided_slice %25 {offsets = [1, 0], sizes = [12, 112], strides = [1, 1]} : vector<14x112xf32> to vector<12x112xf32>
    %34 = arith.truncf %33 : vector<12x112xf32> to vector<12x112xbf16>
    %c1_20 = arith.constant 1 : index
    %c0_21 = arith.constant 0 : index
    %c0_22 = arith.constant 0 : index
    %35 = vector.load %arg3[%c1_20, %c0_21, %c0_22] : memref<3x112x96xbf16, #tpu.memory_space<vmem>>, vector<1x112x96xbf16>
    %36 = vector.shape_cast %35 : vector<1x112x96xbf16> to vector<112x96xbf16>
    %cst_23 = arith.constant dense<0.000000e+00> : vector<12x96xf32>
    %37 = tpu.matmul %34, %36, %cst_23 {dimension_numbers = #tpu.dot_dimension_numbers<[1], [0], [0], [1], [0, 0, 1, 1], [], []>} : vector<12x112xbf16>, vector<112x96xbf16>, vector<12x96xf32> -> vector<12x96xf32>
    %38 = arith.addf %32, %37 : vector<12x96xf32>
    %39 = vector.extract_strided_slice %25 {offsets = [2, 0], sizes = [12, 112], strides = [1, 1]} : vector<14x112xf32> to vector<12x112xf32>
    %40 = arith.truncf %39 : vector<12x112xf32> to vector<12x112xbf16>
    %c2_24 = arith.constant 2 : index
    %c0_25 = arith.constant 0 : index
    %c0_26 = arith.constant 0 : index
    %41 = vector.load %arg3[%c2_24, %c0_25, %c0_26] : memref<3x112x96xbf16, #tpu.memory_space<vmem>>, vector<1x112x96xbf16>
    %42 = vector.shape_cast %41 : vector<1x112x96xbf16> to vector<112x96xbf16>
    %cst_27 = arith.constant dense<0.000000e+00> : vector<12x96xf32>
    %43 = tpu.matmul %40, %42, %cst_27 {dimension_numbers = #tpu.dot_dimension_numbers<[1], [0], [0], [1], [0, 0, 1, 1], [], []>} : vector<12x112xbf16>, vector<112x96xbf16>, vector<12x96xf32> -> vector<12x96xf32>
    %44 = arith.addf %38, %43 : vector<12x96xf32>
    %c0_28 = arith.constant 0 : index
    %c0_29 = arith.constant 0 : index
    %45 = vector.load %arg4[%c0_28, %c0_29] : memref<1x96xf32, #tpu.memory_space<vmem>>, vector<1x96xf32>
    %46 = vector.broadcast %45 : vector<1x96xf32> to vector<12x96xf32>
    %47 = arith.addf %44, %46 : vector<12x96xf32>
    %cst_30 = arith.constant 0.000000e+00 : f32
    %48 = vector.broadcast %cst_30 : f32 to vector<12x96xf32>
    %49 = arith.maximumf %47, %48 : vector<12x96xf32>
    %c1_31 = arith.constant 1 : index
    %c0_32 = arith.constant 0 : index
    %c0_33 = arith.constant 0 : index
    %50 = vector.load %arg0[%c1_31, %c0_32, %c0_33] : memref<2x16x64xf32, #tpu.memory_space<vmem>>, vector<1x16x64xf32>
    %51 = vector.shape_cast %50 : vector<1x16x64xf32> to vector<16x64xf32>
    %cst_34 = arith.constant 0.000000e+00 : f32
    %52 = vector.broadcast %cst_34 : f32 to vector<14x112xf32>
    %53 = vector.extract_strided_slice %51 {offsets = [0, 0], sizes = [14, 64], strides = [1, 1]} : vector<16x64xf32> to vector<14x64xf32>
    %54 = arith.truncf %53 : vector<14x64xf32> to vector<14x64xbf16>
    %c0_35 = arith.constant 0 : index
    %c0_36 = arith.constant 0 : index
    %c0_37 = arith.constant 0 : index
    %55 = vector.load %arg1[%c0_35, %c0_36, %c0_37] : memref<3x64x112xbf16, #tpu.memory_space<vmem>>, vector<1x64x112xbf16>
    %56 = vector.shape_cast %55 : vector<1x64x112xbf16> to vector<64x112xbf16>
    %cst_38 = arith.constant dense<0.000000e+00> : vector<14x112xf32>
    %57 = tpu.matmul %54, %56, %cst_38 {dimension_numbers = #tpu.dot_dimension_numbers<[1], [0], [0], [1], [0, 0, 1, 1], [], []>} : vector<14x64xbf16>, vector<64x112xbf16>, vector<14x112xf32> -> vector<14x112xf32>
    %58 = arith.addf %52, %57 : vector<14x112xf32>
    %59 = vector.extract_strided_slice %51 {offsets = [1, 0], sizes = [14, 64], strides = [1, 1]} : vector<16x64xf32> to vector<14x64xf32>
    %60 = arith.truncf %59 : vector<14x64xf32> to vector<14x64xbf16>
    %c1_39 = arith.constant 1 : index
    %c0_40 = arith.constant 0 : index
    %c0_41 = arith.constant 0 : index
    %61 = vector.load %arg1[%c1_39, %c0_40, %c0_41] : memref<3x64x112xbf16, #tpu.memory_space<vmem>>, vector<1x64x112xbf16>
    %62 = vector.shape_cast %61 : vector<1x64x112xbf16> to vector<64x112xbf16>
    %cst_42 = arith.constant dense<0.000000e+00> : vector<14x112xf32>
    %63 = tpu.matmul %60, %62, %cst_42 {dimension_numbers = #tpu.dot_dimension_numbers<[1], [0], [0], [1], [0, 0, 1, 1], [], []>} : vector<14x64xbf16>, vector<64x112xbf16>, vector<14x112xf32> -> vector<14x112xf32>
    %64 = arith.addf %58, %63 : vector<14x112xf32>
    %65 = vector.extract_strided_slice %51 {offsets = [2, 0], sizes = [14, 64], strides = [1, 1]} : vector<16x64xf32> to vector<14x64xf32>
    %66 = arith.truncf %65 : vector<14x64xf32> to vector<14x64xbf16>
    %c2_43 = arith.constant 2 : index
    %c0_44 = arith.constant 0 : index
    %c0_45 = arith.constant 0 : index
    %67 = vector.load %arg1[%c2_43, %c0_44, %c0_45] : memref<3x64x112xbf16, #tpu.memory_space<vmem>>, vector<1x64x112xbf16>
    %68 = vector.shape_cast %67 : vector<1x64x112xbf16> to vector<64x112xbf16>
    %cst_46 = arith.constant dense<0.000000e+00> : vector<14x112xf32>
    %69 = tpu.matmul %66, %68, %cst_46 {dimension_numbers = #tpu.dot_dimension_numbers<[1], [0], [0], [1], [0, 0, 1, 1], [], []>} : vector<14x64xbf16>, vector<64x112xbf16>, vector<14x112xf32> -> vector<14x112xf32>
    %70 = arith.addf %64, %69 : vector<14x112xf32>
    %c0_47 = arith.constant 0 : index
    %c0_48 = arith.constant 0 : index
    %71 = vector.load %arg2[%c0_47, %c0_48] : memref<1x112xf32, #tpu.memory_space<vmem>>, vector<1x112xf32>
    %72 = vector.broadcast %71 : vector<1x112xf32> to vector<14x112xf32>
    %73 = arith.addf %70, %72 : vector<14x112xf32>
    %cst_49 = arith.constant 0.000000e+00 : f32
    %74 = vector.broadcast %cst_49 : f32 to vector<14x112xf32>
    %75 = arith.maximumf %73, %74 : vector<14x112xf32>
    %cst_50 = arith.constant 0.000000e+00 : f32
    %76 = vector.broadcast %cst_50 : f32 to vector<12x96xf32>
    %77 = vector.extract_strided_slice %75 {offsets = [0, 0], sizes = [12, 112], strides = [1, 1]} : vector<14x112xf32> to vector<12x112xf32>
    %78 = arith.truncf %77 : vector<12x112xf32> to vector<12x112xbf16>
    %c0_51 = arith.constant 0 : index
    %c0_52 = arith.constant 0 : index
    %c0_53 = arith.constant 0 : index
    %79 = vector.load %arg3[%c0_51, %c0_52, %c0_53] : memref<3x112x96xbf16, #tpu.memory_space<vmem>>, vector<1x112x96xbf16>
    %80 = vector.shape_cast %79 : vector<1x112x96xbf16> to vector<112x96xbf16>
    %cst_54 = arith.constant dense<0.000000e+00> : vector<12x96xf32>
    %81 = tpu.matmul %78, %80, %cst_54 {dimension_numbers = #tpu.dot_dimension_numbers<[1], [0], [0], [1], [0, 0, 1, 1], [], []>} : vector<12x112xbf16>, vector<112x96xbf16>, vector<12x96xf32> -> vector<12x96xf32>
    %82 = arith.addf %76, %81 : vector<12x96xf32>
    %83 = vector.extract_strided_slice %75 {offsets = [1, 0], sizes = [12, 112], strides = [1, 1]} : vector<14x112xf32> to vector<12x112xf32>
    %84 = arith.truncf %83 : vector<12x112xf32> to vector<12x112xbf16>
    %c1_55 = arith.constant 1 : index
    %c0_56 = arith.constant 0 : index
    %c0_57 = arith.constant 0 : index
    %85 = vector.load %arg3[%c1_55, %c0_56, %c0_57] : memref<3x112x96xbf16, #tpu.memory_space<vmem>>, vector<1x112x96xbf16>
    %86 = vector.shape_cast %85 : vector<1x112x96xbf16> to vector<112x96xbf16>
    %cst_58 = arith.constant dense<0.000000e+00> : vector<12x96xf32>
    %87 = tpu.matmul %84, %86, %cst_58 {dimension_numbers = #tpu.dot_dimension_numbers<[1], [0], [0], [1], [0, 0, 1, 1], [], []>} : vector<12x112xbf16>, vector<112x96xbf16>, vector<12x96xf32> -> vector<12x96xf32>
    %88 = arith.addf %82, %87 : vector<12x96xf32>
    %89 = vector.extract_strided_slice %75 {offsets = [2, 0], sizes = [12, 112], strides = [1, 1]} : vector<14x112xf32> to vector<12x112xf32>
    %90 = arith.truncf %89 : vector<12x112xf32> to vector<12x112xbf16>
    %c2_59 = arith.constant 2 : index
    %c0_60 = arith.constant 0 : index
    %c0_61 = arith.constant 0 : index
    %91 = vector.load %arg3[%c2_59, %c0_60, %c0_61] : memref<3x112x96xbf16, #tpu.memory_space<vmem>>, vector<1x112x96xbf16>
    %92 = vector.shape_cast %91 : vector<1x112x96xbf16> to vector<112x96xbf16>
    %cst_62 = arith.constant dense<0.000000e+00> : vector<12x96xf32>
    %93 = tpu.matmul %90, %92, %cst_62 {dimension_numbers = #tpu.dot_dimension_numbers<[1], [0], [0], [1], [0, 0, 1, 1], [], []>} : vector<12x112xbf16>, vector<112x96xbf16>, vector<12x96xf32> -> vector<12x96xf32>
    %94 = arith.addf %88, %93 : vector<12x96xf32>
    %c0_63 = arith.constant 0 : index
    %c0_64 = arith.constant 0 : index
    %95 = vector.load %arg4[%c0_63, %c0_64] : memref<1x96xf32, #tpu.memory_space<vmem>>, vector<1x96xf32>
    %96 = vector.broadcast %95 : vector<1x96xf32> to vector<12x96xf32>
    %97 = arith.addf %94, %96 : vector<12x96xf32>
    %cst_65 = arith.constant 0.000000e+00 : f32
    %98 = vector.broadcast %cst_65 : f32 to vector<12x96xf32>
    %99 = arith.maximumf %97, %98 : vector<12x96xf32>
    %100 = tpu.iota {dimensions = array<i32: 0>} : vector<2x96xi32>
    %cst_66 = arith.constant 0.000000e+00 : f32
    %101 = vector.broadcast %cst_66 : f32 to vector<2x512xf32>
    %102 = vector.extract_strided_slice %49 {offsets = [0, 0], sizes = [1, 96], strides = [1, 1]} : vector<12x96xf32> to vector<1x96xf32>
    %103 = vector.shape_cast %102 : vector<1x96xf32> to vector<1x96xf32>
    %104 = vector.broadcast %103 : vector<1x96xf32> to vector<2x96xf32>
    %c1_i32 = arith.constant 1 : i32
    %105 = vector.broadcast %c1_i32 : i32 to vector<2x96xi32>
    %106 = arith.cmpi eq, %100, %105 : vector<2x96xi32>
    %107 = vector.extract_strided_slice %99 {offsets = [0, 0], sizes = [1, 96], strides = [1, 1]} : vector<12x96xf32> to vector<1x96xf32>
    %108 = vector.shape_cast %107 : vector<1x96xf32> to vector<1x96xf32>
    %109 = vector.broadcast %108 : vector<1x96xf32> to vector<2x96xf32>
    %110 = arith.select %106, %109, %104 : vector<2x96xi1>, vector<2x96xf32>
    %111 = arith.truncf %110 : vector<2x96xf32> to vector<2x96xbf16>
    %c0_67 = arith.constant 0 : index
    %c0_68 = arith.constant 0 : index
    %c0_69 = arith.constant 0 : index
    %112 = vector.load %arg5[%c0_67, %c0_68, %c0_69] : memref<12x96x512xbf16, #tpu.memory_space<vmem>>, vector<1x96x512xbf16>
    %113 = vector.shape_cast %112 : vector<1x96x512xbf16> to vector<96x512xbf16>
    %cst_70 = arith.constant dense<0.000000e+00> : vector<2x512xf32>
    %114 = tpu.matmul %111, %113, %cst_70 {dimension_numbers = #tpu.dot_dimension_numbers<[1], [0], [0], [1], [0, 0, 1, 1], [], []>} : vector<2x96xbf16>, vector<96x512xbf16>, vector<2x512xf32> -> vector<2x512xf32>
    %115 = arith.addf %101, %114 : vector<2x512xf32>
    %116 = vector.extract_strided_slice %49 {offsets = [1, 0], sizes = [1, 96], strides = [1, 1]} : vector<12x96xf32> to vector<1x96xf32>
    %117 = vector.shape_cast %116 : vector<1x96xf32> to vector<1x96xf32>
    %118 = vector.broadcast %117 : vector<1x96xf32> to vector<2x96xf32>
    %c1_i32_71 = arith.constant 1 : i32
    %119 = vector.broadcast %c1_i32_71 : i32 to vector<2x96xi32>
    %120 = arith.cmpi eq, %100, %119 : vector<2x96xi32>
    %121 = vector.extract_strided_slice %99 {offsets = [1, 0], sizes = [1, 96], strides = [1, 1]} : vector<12x96xf32> to vector<1x96xf32>
    %122 = vector.shape_cast %121 : vector<1x96xf32> to vector<1x96xf32>
    %123 = vector.broadcast %122 : vector<1x96xf32> to vector<2x96xf32>
    %124 = arith.select %120, %123, %118 : vector<2x96xi1>, vector<2x96xf32>
    %125 = arith.truncf %124 : vector<2x96xf32> to vector<2x96xbf16>
    %c1_72 = arith.constant 1 : index
    %c0_73 = arith.constant 0 : index
    %c0_74 = arith.constant 0 : index
    %126 = vector.load %arg5[%c1_72, %c0_73, %c0_74] : memref<12x96x512xbf16, #tpu.memory_space<vmem>>, vector<1x96x512xbf16>
    %127 = vector.shape_cast %126 : vector<1x96x512xbf16> to vector<96x512xbf16>
    %cst_75 = arith.constant dense<0.000000e+00> : vector<2x512xf32>
    %128 = tpu.matmul %125, %127, %cst_75 {dimension_numbers = #tpu.dot_dimension_numbers<[1], [0], [0], [1], [0, 0, 1, 1], [], []>} : vector<2x96xbf16>, vector<96x512xbf16>, vector<2x512xf32> -> vector<2x512xf32>
    %129 = arith.addf %115, %128 : vector<2x512xf32>
    %130 = vector.extract_strided_slice %49 {offsets = [2, 0], sizes = [1, 96], strides = [1, 1]} : vector<12x96xf32> to vector<1x96xf32>
    %131 = vector.shape_cast %130 : vector<1x96xf32> to vector<1x96xf32>
    %132 = vector.broadcast %131 : vector<1x96xf32> to vector<2x96xf32>
    %c1_i32_76 = arith.constant 1 : i32
    %133 = vector.broadcast %c1_i32_76 : i32 to vector<2x96xi32>
    %134 = arith.cmpi eq, %100, %133 : vector<2x96xi32>
    %135 = vector.extract_strided_slice %99 {offsets = [2, 0], sizes = [1, 96], strides = [1, 1]} : vector<12x96xf32> to vector<1x96xf32>
    %136 = vector.shape_cast %135 : vector<1x96xf32> to vector<1x96xf32>
    %137 = vector.broadcast %136 : vector<1x96xf32> to vector<2x96xf32>
    %138 = arith.select %134, %137, %132 : vector<2x96xi1>, vector<2x96xf32>
    %139 = arith.truncf %138 : vector<2x96xf32> to vector<2x96xbf16>
    %c2_77 = arith.constant 2 : index
    %c0_78 = arith.constant 0 : index
    %c0_79 = arith.constant 0 : index
    %140 = vector.load %arg5[%c2_77, %c0_78, %c0_79] : memref<12x96x512xbf16, #tpu.memory_space<vmem>>, vector<1x96x512xbf16>
    %141 = vector.shape_cast %140 : vector<1x96x512xbf16> to vector<96x512xbf16>
    %cst_80 = arith.constant dense<0.000000e+00> : vector<2x512xf32>
    %142 = tpu.matmul %139, %141, %cst_80 {dimension_numbers = #tpu.dot_dimension_numbers<[1], [0], [0], [1], [0, 0, 1, 1], [], []>} : vector<2x96xbf16>, vector<96x512xbf16>, vector<2x512xf32> -> vector<2x512xf32>
    %143 = arith.addf %129, %142 : vector<2x512xf32>
    %144 = vector.extract_strided_slice %49 {offsets = [3, 0], sizes = [1, 96], strides = [1, 1]} : vector<12x96xf32> to vector<1x96xf32>
    %145 = vector.shape_cast %144 : vector<1x96xf32> to vector<1x96xf32>
    %146 = vector.broadcast %145 : vector<1x96xf32> to vector<2x96xf32>
    %c1_i32_81 = arith.constant 1 : i32
    %147 = vector.broadcast %c1_i32_81 : i32 to vector<2x96xi32>
    %148 = arith.cmpi eq, %100, %147 : vector<2x96xi32>
    %149 = vector.extract_strided_slice %99 {offsets = [3, 0], sizes = [1, 96], strides = [1, 1]} : vector<12x96xf32> to vector<1x96xf32>
    %150 = vector.shape_cast %149 : vector<1x96xf32> to vector<1x96xf32>
    %151 = vector.broadcast %150 : vector<1x96xf32> to vector<2x96xf32>
    %152 = arith.select %148, %151, %146 : vector<2x96xi1>, vector<2x96xf32>
    %153 = arith.truncf %152 : vector<2x96xf32> to vector<2x96xbf16>
    %c3 = arith.constant 3 : index
    %c0_82 = arith.constant 0 : index
    %c0_83 = arith.constant 0 : index
    %154 = vector.load %arg5[%c3, %c0_82, %c0_83] : memref<12x96x512xbf16, #tpu.memory_space<vmem>>, vector<1x96x512xbf16>
    %155 = vector.shape_cast %154 : vector<1x96x512xbf16> to vector<96x512xbf16>
    %cst_84 = arith.constant dense<0.000000e+00> : vector<2x512xf32>
    %156 = tpu.matmul %153, %155, %cst_84 {dimension_numbers = #tpu.dot_dimension_numbers<[1], [0], [0], [1], [0, 0, 1, 1], [], []>} : vector<2x96xbf16>, vector<96x512xbf16>, vector<2x512xf32> -> vector<2x512xf32>
    %157 = arith.addf %143, %156 : vector<2x512xf32>
    %158 = vector.extract_strided_slice %49 {offsets = [4, 0], sizes = [1, 96], strides = [1, 1]} : vector<12x96xf32> to vector<1x96xf32>
    %159 = vector.shape_cast %158 : vector<1x96xf32> to vector<1x96xf32>
    %160 = vector.broadcast %159 : vector<1x96xf32> to vector<2x96xf32>
    %c1_i32_85 = arith.constant 1 : i32
    %161 = vector.broadcast %c1_i32_85 : i32 to vector<2x96xi32>
    %162 = arith.cmpi eq, %100, %161 : vector<2x96xi32>
    %163 = vector.extract_strided_slice %99 {offsets = [4, 0], sizes = [1, 96], strides = [1, 1]} : vector<12x96xf32> to vector<1x96xf32>
    %164 = vector.shape_cast %163 : vector<1x96xf32> to vector<1x96xf32>
    %165 = vector.broadcast %164 : vector<1x96xf32> to vector<2x96xf32>
    %166 = arith.select %162, %165, %160 : vector<2x96xi1>, vector<2x96xf32>
    %167 = arith.truncf %166 : vector<2x96xf32> to vector<2x96xbf16>
    %c4 = arith.constant 4 : index
    %c0_86 = arith.constant 0 : index
    %c0_87 = arith.constant 0 : index
    %168 = vector.load %arg5[%c4, %c0_86, %c0_87] : memref<12x96x512xbf16, #tpu.memory_space<vmem>>, vector<1x96x512xbf16>
    %169 = vector.shape_cast %168 : vector<1x96x512xbf16> to vector<96x512xbf16>
    %cst_88 = arith.constant dense<0.000000e+00> : vector<2x512xf32>
    %170 = tpu.matmul %167, %169, %cst_88 {dimension_numbers = #tpu.dot_dimension_numbers<[1], [0], [0], [1], [0, 0, 1, 1], [], []>} : vector<2x96xbf16>, vector<96x512xbf16>, vector<2x512xf32> -> vector<2x512xf32>
    %171 = arith.addf %157, %170 : vector<2x512xf32>
    %172 = vector.extract_strided_slice %49 {offsets = [5, 0], sizes = [1, 96], strides = [1, 1]} : vector<12x96xf32> to vector<1x96xf32>
    %173 = vector.shape_cast %172 : vector<1x96xf32> to vector<1x96xf32>
    %174 = vector.broadcast %173 : vector<1x96xf32> to vector<2x96xf32>
    %c1_i32_89 = arith.constant 1 : i32
    %175 = vector.broadcast %c1_i32_89 : i32 to vector<2x96xi32>
    %176 = arith.cmpi eq, %100, %175 : vector<2x96xi32>
    %177 = vector.extract_strided_slice %99 {offsets = [5, 0], sizes = [1, 96], strides = [1, 1]} : vector<12x96xf32> to vector<1x96xf32>
    %178 = vector.shape_cast %177 : vector<1x96xf32> to vector<1x96xf32>
    %179 = vector.broadcast %178 : vector<1x96xf32> to vector<2x96xf32>
    %180 = arith.select %176, %179, %174 : vector<2x96xi1>, vector<2x96xf32>
    %181 = arith.truncf %180 : vector<2x96xf32> to vector<2x96xbf16>
    %c5 = arith.constant 5 : index
    %c0_90 = arith.constant 0 : index
    %c0_91 = arith.constant 0 : index
    %182 = vector.load %arg5[%c5, %c0_90, %c0_91] : memref<12x96x512xbf16, #tpu.memory_space<vmem>>, vector<1x96x512xbf16>
    %183 = vector.shape_cast %182 : vector<1x96x512xbf16> to vector<96x512xbf16>
    %cst_92 = arith.constant dense<0.000000e+00> : vector<2x512xf32>
    %184 = tpu.matmul %181, %183, %cst_92 {dimension_numbers = #tpu.dot_dimension_numbers<[1], [0], [0], [1], [0, 0, 1, 1], [], []>} : vector<2x96xbf16>, vector<96x512xbf16>, vector<2x512xf32> -> vector<2x512xf32>
    %185 = arith.addf %171, %184 : vector<2x512xf32>
    %186 = vector.extract_strided_slice %49 {offsets = [6, 0], sizes = [1, 96], strides = [1, 1]} : vector<12x96xf32> to vector<1x96xf32>
    %187 = vector.shape_cast %186 : vector<1x96xf32> to vector<1x96xf32>
    %188 = vector.broadcast %187 : vector<1x96xf32> to vector<2x96xf32>
    %c1_i32_93 = arith.constant 1 : i32
    %189 = vector.broadcast %c1_i32_93 : i32 to vector<2x96xi32>
    %190 = arith.cmpi eq, %100, %189 : vector<2x96xi32>
    %191 = vector.extract_strided_slice %99 {offsets = [6, 0], sizes = [1, 96], strides = [1, 1]} : vector<12x96xf32> to vector<1x96xf32>
    %192 = vector.shape_cast %191 : vector<1x96xf32> to vector<1x96xf32>
    %193 = vector.broadcast %192 : vector<1x96xf32> to vector<2x96xf32>
    %194 = arith.select %190, %193, %188 : vector<2x96xi1>, vector<2x96xf32>
    %195 = arith.truncf %194 : vector<2x96xf32> to vector<2x96xbf16>
    %c6 = arith.constant 6 : index
    %c0_94 = arith.constant 0 : index
    %c0_95 = arith.constant 0 : index
    %196 = vector.load %arg5[%c6, %c0_94, %c0_95] : memref<12x96x512xbf16, #tpu.memory_space<vmem>>, vector<1x96x512xbf16>
    %197 = vector.shape_cast %196 : vector<1x96x512xbf16> to vector<96x512xbf16>
    %cst_96 = arith.constant dense<0.000000e+00> : vector<2x512xf32>
    %198 = tpu.matmul %195, %197, %cst_96 {dimension_numbers = #tpu.dot_dimension_numbers<[1], [0], [0], [1], [0, 0, 1, 1], [], []>} : vector<2x96xbf16>, vector<96x512xbf16>, vector<2x512xf32> -> vector<2x512xf32>
    %199 = arith.addf %185, %198 : vector<2x512xf32>
    %200 = vector.extract_strided_slice %49 {offsets = [7, 0], sizes = [1, 96], strides = [1, 1]} : vector<12x96xf32> to vector<1x96xf32>
    %201 = vector.shape_cast %200 : vector<1x96xf32> to vector<1x96xf32>
    %202 = vector.broadcast %201 : vector<1x96xf32> to vector<2x96xf32>
    %c1_i32_97 = arith.constant 1 : i32
    %203 = vector.broadcast %c1_i32_97 : i32 to vector<2x96xi32>
    %204 = arith.cmpi eq, %100, %203 : vector<2x96xi32>
    %205 = vector.extract_strided_slice %99 {offsets = [7, 0], sizes = [1, 96], strides = [1, 1]} : vector<12x96xf32> to vector<1x96xf32>
    %206 = vector.shape_cast %205 : vector<1x96xf32> to vector<1x96xf32>
    %207 = vector.broadcast %206 : vector<1x96xf32> to vector<2x96xf32>
    %208 = arith.select %204, %207, %202 : vector<2x96xi1>, vector<2x96xf32>
    %209 = arith.truncf %208 : vector<2x96xf32> to vector<2x96xbf16>
    %c7 = arith.constant 7 : index
    %c0_98 = arith.constant 0 : index
    %c0_99 = arith.constant 0 : index
    %210 = vector.load %arg5[%c7, %c0_98, %c0_99] : memref<12x96x512xbf16, #tpu.memory_space<vmem>>, vector<1x96x512xbf16>
    %211 = vector.shape_cast %210 : vector<1x96x512xbf16> to vector<96x512xbf16>
    %cst_100 = arith.constant dense<0.000000e+00> : vector<2x512xf32>
    %212 = tpu.matmul %209, %211, %cst_100 {dimension_numbers = #tpu.dot_dimension_numbers<[1], [0], [0], [1], [0, 0, 1, 1], [], []>} : vector<2x96xbf16>, vector<96x512xbf16>, vector<2x512xf32> -> vector<2x512xf32>
    %213 = arith.addf %199, %212 : vector<2x512xf32>
    %214 = vector.extract_strided_slice %49 {offsets = [8, 0], sizes = [1, 96], strides = [1, 1]} : vector<12x96xf32> to vector<1x96xf32>
    %215 = vector.shape_cast %214 : vector<1x96xf32> to vector<1x96xf32>
    %216 = vector.broadcast %215 : vector<1x96xf32> to vector<2x96xf32>
    %c1_i32_101 = arith.constant 1 : i32
    %217 = vector.broadcast %c1_i32_101 : i32 to vector<2x96xi32>
    %218 = arith.cmpi eq, %100, %217 : vector<2x96xi32>
    %219 = vector.extract_strided_slice %99 {offsets = [8, 0], sizes = [1, 96], strides = [1, 1]} : vector<12x96xf32> to vector<1x96xf32>
    %220 = vector.shape_cast %219 : vector<1x96xf32> to vector<1x96xf32>
    %221 = vector.broadcast %220 : vector<1x96xf32> to vector<2x96xf32>
    %222 = arith.select %218, %221, %216 : vector<2x96xi1>, vector<2x96xf32>
    %223 = arith.truncf %222 : vector<2x96xf32> to vector<2x96xbf16>
    %c8 = arith.constant 8 : index
    %c0_102 = arith.constant 0 : index
    %c0_103 = arith.constant 0 : index
    %224 = vector.load %arg5[%c8, %c0_102, %c0_103] : memref<12x96x512xbf16, #tpu.memory_space<vmem>>, vector<1x96x512xbf16>
    %225 = vector.shape_cast %224 : vector<1x96x512xbf16> to vector<96x512xbf16>
    %cst_104 = arith.constant dense<0.000000e+00> : vector<2x512xf32>
    %226 = tpu.matmul %223, %225, %cst_104 {dimension_numbers = #tpu.dot_dimension_numbers<[1], [0], [0], [1], [0, 0, 1, 1], [], []>} : vector<2x96xbf16>, vector<96x512xbf16>, vector<2x512xf32> -> vector<2x512xf32>
    %227 = arith.addf %213, %226 : vector<2x512xf32>
    %228 = vector.extract_strided_slice %49 {offsets = [9, 0], sizes = [1, 96], strides = [1, 1]} : vector<12x96xf32> to vector<1x96xf32>
    %229 = vector.shape_cast %228 : vector<1x96xf32> to vector<1x96xf32>
    %230 = vector.broadcast %229 : vector<1x96xf32> to vector<2x96xf32>
    %c1_i32_105 = arith.constant 1 : i32
    %231 = vector.broadcast %c1_i32_105 : i32 to vector<2x96xi32>
    %232 = arith.cmpi eq, %100, %231 : vector<2x96xi32>
    %233 = vector.extract_strided_slice %99 {offsets = [9, 0], sizes = [1, 96], strides = [1, 1]} : vector<12x96xf32> to vector<1x96xf32>
    %234 = vector.shape_cast %233 : vector<1x96xf32> to vector<1x96xf32>
    %235 = vector.broadcast %234 : vector<1x96xf32> to vector<2x96xf32>
    %236 = arith.select %232, %235, %230 : vector<2x96xi1>, vector<2x96xf32>
    %237 = arith.truncf %236 : vector<2x96xf32> to vector<2x96xbf16>
    %c9 = arith.constant 9 : index
    %c0_106 = arith.constant 0 : index
    %c0_107 = arith.constant 0 : index
    %238 = vector.load %arg5[%c9, %c0_106, %c0_107] : memref<12x96x512xbf16, #tpu.memory_space<vmem>>, vector<1x96x512xbf16>
    %239 = vector.shape_cast %238 : vector<1x96x512xbf16> to vector<96x512xbf16>
    %cst_108 = arith.constant dense<0.000000e+00> : vector<2x512xf32>
    %240 = tpu.matmul %237, %239, %cst_108 {dimension_numbers = #tpu.dot_dimension_numbers<[1], [0], [0], [1], [0, 0, 1, 1], [], []>} : vector<2x96xbf16>, vector<96x512xbf16>, vector<2x512xf32> -> vector<2x512xf32>
    %241 = arith.addf %227, %240 : vector<2x512xf32>
    %242 = vector.extract_strided_slice %49 {offsets = [10, 0], sizes = [1, 96], strides = [1, 1]} : vector<12x96xf32> to vector<1x96xf32>
    %243 = vector.shape_cast %242 : vector<1x96xf32> to vector<1x96xf32>
    %244 = vector.broadcast %243 : vector<1x96xf32> to vector<2x96xf32>
    %c1_i32_109 = arith.constant 1 : i32
    %245 = vector.broadcast %c1_i32_109 : i32 to vector<2x96xi32>
    %246 = arith.cmpi eq, %100, %245 : vector<2x96xi32>
    %247 = vector.extract_strided_slice %99 {offsets = [10, 0], sizes = [1, 96], strides = [1, 1]} : vector<12x96xf32> to vector<1x96xf32>
    %248 = vector.shape_cast %247 : vector<1x96xf32> to vector<1x96xf32>
    %249 = vector.broadcast %248 : vector<1x96xf32> to vector<2x96xf32>
    %250 = arith.select %246, %249, %244 : vector<2x96xi1>, vector<2x96xf32>
    %251 = arith.truncf %250 : vector<2x96xf32> to vector<2x96xbf16>
    %c10 = arith.constant 10 : index
    %c0_110 = arith.constant 0 : index
    %c0_111 = arith.constant 0 : index
    %252 = vector.load %arg5[%c10, %c0_110, %c0_111] : memref<12x96x512xbf16, #tpu.memory_space<vmem>>, vector<1x96x512xbf16>
    %253 = vector.shape_cast %252 : vector<1x96x512xbf16> to vector<96x512xbf16>
    %cst_112 = arith.constant dense<0.000000e+00> : vector<2x512xf32>
    %254 = tpu.matmul %251, %253, %cst_112 {dimension_numbers = #tpu.dot_dimension_numbers<[1], [0], [0], [1], [0, 0, 1, 1], [], []>} : vector<2x96xbf16>, vector<96x512xbf16>, vector<2x512xf32> -> vector<2x512xf32>
    %255 = arith.addf %241, %254 : vector<2x512xf32>
    %256 = vector.extract_strided_slice %49 {offsets = [11, 0], sizes = [1, 96], strides = [1, 1]} : vector<12x96xf32> to vector<1x96xf32>
    %257 = vector.shape_cast %256 : vector<1x96xf32> to vector<1x96xf32>
    %258 = vector.broadcast %257 : vector<1x96xf32> to vector<2x96xf32>
    %c1_i32_113 = arith.constant 1 : i32
    %259 = vector.broadcast %c1_i32_113 : i32 to vector<2x96xi32>
    %260 = arith.cmpi eq, %100, %259 : vector<2x96xi32>
    %261 = vector.extract_strided_slice %99 {offsets = [11, 0], sizes = [1, 96], strides = [1, 1]} : vector<12x96xf32> to vector<1x96xf32>
    %262 = vector.shape_cast %261 : vector<1x96xf32> to vector<1x96xf32>
    %263 = vector.broadcast %262 : vector<1x96xf32> to vector<2x96xf32>
    %264 = arith.select %260, %263, %258 : vector<2x96xi1>, vector<2x96xf32>
    %265 = arith.truncf %264 : vector<2x96xf32> to vector<2x96xbf16>
    %c11 = arith.constant 11 : index
    %c0_114 = arith.constant 0 : index
    %c0_115 = arith.constant 0 : index
    %266 = vector.load %arg5[%c11, %c0_114, %c0_115] : memref<12x96x512xbf16, #tpu.memory_space<vmem>>, vector<1x96x512xbf16>
    %267 = vector.shape_cast %266 : vector<1x96x512xbf16> to vector<96x512xbf16>
    %cst_116 = arith.constant dense<0.000000e+00> : vector<2x512xf32>
    %268 = tpu.matmul %265, %267, %cst_116 {dimension_numbers = #tpu.dot_dimension_numbers<[1], [0], [0], [1], [0, 0, 1, 1], [], []>} : vector<2x96xbf16>, vector<96x512xbf16>, vector<2x512xf32> -> vector<2x512xf32>
    %269 = arith.addf %255, %268 : vector<2x512xf32>
    %c0_117 = arith.constant 0 : index
    %c0_118 = arith.constant 0 : index
    %270 = vector.load %arg6[%c0_117, %c0_118] : memref<1x512xf32, #tpu.memory_space<vmem>>, vector<1x512xf32>
    %271 = vector.broadcast %270 : vector<1x512xf32> to vector<2x512xf32>
    %272 = arith.addf %269, %271 : vector<2x512xf32>
    %cst_119 = arith.constant 0.000000e+00 : f32
    %273 = vector.broadcast %cst_119 : f32 to vector<2x512xf32>
    %274 = arith.maximumf %272, %273 : vector<2x512xf32>
    %275 = arith.truncf %274 : vector<2x512xf32> to vector<2x512xbf16>
    %c0_120 = arith.constant 0 : index
    %c0_121 = arith.constant 0 : index
    %276 = vector.load %arg7[%c0_120, %c0_121] : memref<512x256xbf16, #tpu.memory_space<vmem>>, vector<512x256xbf16>
    %cst_122 = arith.constant dense<0.000000e+00> : vector<2x256xf32>
    %277 = tpu.matmul %275, %276, %cst_122 {dimension_numbers = #tpu.dot_dimension_numbers<[1], [0], [0], [1], [0, 0, 1, 1], [], []>} : vector<2x512xbf16>, vector<512x256xbf16>, vector<2x256xf32> -> vector<2x256xf32>
    %c0_123 = arith.constant 0 : index
    %c0_124 = arith.constant 0 : index
    %278 = vector.load %arg8[%c0_123, %c0_124] : memref<1x256xf32, #tpu.memory_space<vmem>>, vector<1x256xf32>
    %279 = vector.broadcast %278 : vector<1x256xf32> to vector<2x256xf32>
    %280 = arith.addf %277, %279 : vector<2x256xf32>
    %cst_125 = arith.constant 0.000000e+00 : f32
    %281 = vector.broadcast %cst_125 : f32 to vector<2x256xf32>
    %282 = arith.maximumf %280, %281 : vector<2x256xf32>
    %283 = arith.truncf %282 : vector<2x256xf32> to vector<2x256xbf16>
    %c0_126 = arith.constant 0 : index
    %c0_127 = arith.constant 0 : index
    %284 = vector.load %arg9[%c0_126, %c0_127] : memref<256x128xbf16, #tpu.memory_space<vmem>>, vector<256x128xbf16>
    %cst_128 = arith.constant dense<0.000000e+00> : vector<2x128xf32>
    %285 = tpu.matmul %283, %284, %cst_128 {dimension_numbers = #tpu.dot_dimension_numbers<[1], [0], [0], [1], [0, 0, 1, 1], [], []>} : vector<2x256xbf16>, vector<256x128xbf16>, vector<2x128xf32> -> vector<2x128xf32>
    %c0_129 = arith.constant 0 : index
    %c0_130 = arith.constant 0 : index
    %286 = vector.load %arg10[%c0_129, %c0_130] : memref<1x128xf32, #tpu.memory_space<vmem>>, vector<1x128xf32>
    %287 = vector.broadcast %286 : vector<1x128xf32> to vector<2x128xf32>
    %288 = arith.addf %285, %287 : vector<2x128xf32>
    %cst_131 = arith.constant 0.000000e+00 : f32
    %289 = vector.broadcast %cst_131 : f32 to vector<2x128xf32>
    %290 = arith.subf %289, %288 : vector<2x128xf32>
    %291 = math.exp %290 : vector<2x128xf32>
    %cst_132 = arith.constant 1.000000e+00 : f32
    %292 = vector.broadcast %cst_132 : f32 to vector<2x128xf32>
    %293 = arith.addf %292, %291 : vector<2x128xf32>
    %cst_133 = arith.constant 1.000000e+00 : f32
    %294 = vector.broadcast %cst_133 : f32 to vector<2x128xf32>
    %295 = arith.divf %294, %293 : vector<2x128xf32>
    %c0_134 = arith.constant 0 : index
    %c0_135 = arith.constant 0 : index
    %296 = vector.load %arg11[%c0_134, %c0_135] : memref<2x128xf32, #tpu.memory_space<vmem>>, vector<2x128xf32>
    tpu.vector_store %arg11[%c0_134, %c0_135], %295 {strides = array<i32>} : memref<2x128xf32, #tpu.memory_space<vmem>>, vector<2x128xf32>,
    return
  }
}

</mosaic_0001>

<bundles_post_ra>
// kernel: conv_mlp_forward.1
= control target key start
LH: loop header
LB: loop body
LE: loop exit
PB: predicated region body
PF: predicated region fallthrough
CT: control target
= control target key end

     0   :  { %16 = vsyncpa [#allocation3], 0  ;;  %s6963_s0 = inlined_call_operand.vmem [shape: f32[2,16,64], index: 0, kind: input, shape index: {}]   ;;  %s6964_s1 = inlined_call_operand.hbm [shape: bf16[3,64,112], index: 1, kind: input, shape index: {}]   ;;  %s6965_s2 = inlined_call_operand.hbm [shape: f32[1,112], index: 2, kind: input, shape index: {}]   ;;  %s6966_s3 = inlined_call_operand.vmem [shape: bf16[3,112,96], index: 3, kind: input, shape index: {}]   ;;  %s6967_s4 = inlined_call_operand.hbm [shape: f32[1,96], index: 4, kind: input, shape index: {}]   ;;  %s6968_s5 = inlined_call_operand.hbm [shape: bf16[12,96,512], index: 5, kind: input, shape index: {}]   ;;  %s6969_s6 = inlined_call_operand.hbm [shape: f32[1,512], index: 6, kind: input, shape index: {}]   ;;  %s6970_s7 = inlined_call_operand.hbm [shape: bf16[512,256], index: 7, kind: input, shape index: {}]   ;;  %s6971_s8 = inlined_call_operand.hbm [shape: f32[1,256], index: 8, kind: input, shape index: {}]   ;;  %s6972_s9 = inlined_call_operand.hbm [shape: bf16[256,128], index: 9, kind: input, shape index: {}]   ;;  %s6973_s10 = inlined_call_operand.hbm [shape: f32[1,128], index: 10, kind: input, shape index: {}]   ;;  %s6974_s11 = inlined_call_operand.hbm [shape: f32[2,128], index: 11, kind: output, shape index: {}]  }
   0x1   :  { %17 = vsyncpa [#allocation6], 0 }
   0x2   :  { %18 = vsyncpa [#allocation9], 0 }
   0x3   :  { %19 = vsyncpa [#allocation12], 0 }
   0x4   :  { %20 = vsyncpa [#allocation15], 0 }
   0x5   :  { %21 = vsyncpa [#allocation4], 0  ;;  %s6269_s17 = smov [#allocation5]   ;;  %s6270_s19 = smov [#allocation8]  }
   0x6   :  { %s42_s18 = sshll.u32 %s6269_s17, 4  ;;  %s63_s20 = sshll.u32 %s6270_s19, 4  ;;  %s43_s18 = int_to_ptr.vmem [resolvable:$true] %s42_s18  ;;  %s6348_s20 = int_to_ptr.vmem [resolvable:$true] %s63_s20 }
   0x7   :  { %s6037_s23 = scalar_lea.hbm %s6965_s2, 16 }
   0x8   :  { %p6038_p0 = scmp.ne.s32.totalorder %s6965_s2, %s6037_s23  ;;  %p6041_p1 = scmp.lt.u32.totalorder %s6037_s23, %s6965_s2 }
   0xa   :  { %p6043_p2 = pnand %p6041_p1, %p6038_p0 }
   0xc   :  { %6046 = shalt.err (!%p6043_p2)
}
   0xd   :  { %s6047_s28 = scalar_lea.vmem %s43_s18, 16  ;;  %s6051_s29 = scalar_lea.vmem %s43_s18, 32 }
   0xe   :  { %p6048_p3 = scmp.ne.s32.totalorder %s43_s18, %s6047_s28  ;;  %p6052_p4 = scmp.lt.s32.totalorder %s43_s18, %s43_s18 }
   0xf   :  { %p6053_p5 = scmp.lt.s32.totalorder %s6051_s29, %s6047_s28 }
  0x11   :  { %p6054_p6 = por %p6053_p5, %p6052_p4 }
  0x13   :  { %p6055_p7 = pnand %p6054_p6, %p6048_p3 }
  0x15   :  { %6058 = shalt.err (!%p6055_p7)
}
  0x16   :  { %45 = dma.hbm_to_vmem [thread:$0]  %s6965_s2, 16, %s43_s18, [#allocation6]  }
  0x17   :  { %s6059_s15 = scalar_lea.hbm %s6968_s5, 36864 }
  0x18   :  { %p6060_p8 = scmp.ne.s32.totalorder %s6968_s5, %s6059_s15  ;;  %p6063_p9 = scmp.lt.u32.totalorder %s6059_s15, %s6968_s5 }
  0x1a   :  { %p6065_p10 = pnand %p6063_p9, %p6060_p8 }
  0x1c   :  { %6068 = shalt.err (!%p6065_p10)
}
  0x1d   :  { %s6069_s22 = scalar_lea.vmem %s6348_s20, 36864  ;;  %p6074_p12 = scmp.lt.s32.totalorder %s6348_s20, %s6348_s20 }
  0x1e   :  { %p6070_p11 = scmp.ne.s32.totalorder %s6348_s20, %s6069_s22  ;;  %p6075_p13 = scmp.lt.s32.totalorder %s6069_s22, %s6069_s22 }
  0x20   :  { %p6076_p0 = por %p6075_p13, %p6074_p12 }
  0x22   :  { %p6077_p1 = pnand %p6076_p0, %p6070_p11 }
  0x24   :  { %6080 = shalt.err (!%p6077_p1)
}
  0x25   :  { %s6271_s2 = smov 256   ;;  %s6272_s18 = smov 16  }
  0x26   :  { %69 = dma.hbm_to_vmem [thread:$0]  %s6968_s5, 36864, %s6348_s20, [#allocation9], %s6271_s2, %s6271_s2, %s6272_s18  }
  0x27   :  { %s6273_s25 = smov [#allocation11]   ;;  %s6081_s29 = scalar_lea.hbm %s6970_s7, 8192 }
  0x28   :  { %s85_s26 = sshll.u32 %s6273_s25, 4  ;;  %p6082_p2 = scmp.ne.s32.totalorder %s6970_s7, %s6081_s29  ;;  %s86_s26 = int_to_ptr.vmem [resolvable:$true] %s85_s26 }
  0x29   :  { %p6085_p3 = scmp.lt.u32.totalorder %s6081_s29, %s6970_s7 }
  0x2b   :  { %p6087_p4 = pnand %p6085_p3, %p6082_p2 }
  0x2d   :  { %6090 = shalt.err (!%p6087_p4)
}
  0x2e   :  { %s6091_s15 = scalar_lea.vmem %s86_s26, 8192  ;;  %p6096_p6 = scmp.lt.s32.totalorder %s86_s26, %s86_s26 }
  0x2f   :  { %p6092_p5 = scmp.ne.s32.totalorder %s86_s26, %s6091_s15  ;;  %p6097_p7 = scmp.lt.s32.totalorder %s6091_s15, %s6091_s15 }
  0x31   :  { %p6098_p8 = por %p6097_p7, %p6096_p6 }
  0x33   :  { %p6099_p9 = pnand %p6098_p8, %p6092_p5 }
  0x35   :  { %6102 = shalt.err (!%p6099_p9)
}
  0x36   :  { %s6274_s5 = smov 128   ;;  %s6275_s20 = smov 8  }
  0x37   :  { %91 = dma.hbm_to_vmem [thread:$0]  %s6970_s7, 8192, %s86_s26, [#allocation12], %s6274_s5, %s6274_s5, %s6275_s20  }
  0x38   :  { %s6276_s19 = smov [#allocation14]   ;;  %s6277_s22 = smov [#allocation2]  }
  0x39   :  { %s107_s21 = sshll.u32 %s6276_s19, 4  ;;  %s29_s2 = sshll.u32 %s6277_s22, 4  ;;  %s108_s21 = int_to_ptr.vmem [resolvable:$true] %s107_s21  ;;  %s30_s2 = int_to_ptr.vmem [resolvable:$true] %s29_s2 }
  0x3a   :  { %s6103_s24 = scalar_lea.hbm %s6972_s9, 2048 }
  0x3b   :  { %p6104_p10 = scmp.ne.s32.totalorder %s6972_s9, %s6103_s24  ;;  %p6107_p11 = scmp.lt.u32.totalorder %s6103_s24, %s6972_s9 }
  0x3d   :  { %p6109_p12 = pnand %p6107_p11, %p6104_p10 }
  0x3f   :  { %6112 = shalt.err (!%p6109_p12)
}
  0x40   :  { %s6113_s7 = scalar_lea.vmem %s108_s21, 2048  ;;  %p6118_p0 = scmp.lt.s32.totalorder %s108_s21, %s108_s21 }
  0x41   :  { %p6114_p13 = scmp.ne.s32.totalorder %s108_s21, %s6113_s7  ;;  %p6119_p1 = scmp.lt.s32.totalorder %s6113_s7, %s6113_s7 }
  0x43   :  { %p6120_p2 = por %p6119_p1, %p6118_p0 }
  0x45   :  { %p6121_p3 = pnand %p6120_p2, %p6114_p13 }
  0x47   :  { %6124 = shalt.err (!%p6121_p3)
}
  0x48   :  { %s6278_s26 = smov 64   ;;  %s6279_s30 = smov 4  }
  0x49   :  { %113 = dma.hbm_to_vmem [thread:$0]  %s6972_s9, 2048, %s108_s21, [#allocation15], %s6278_s26, %s6278_s26, %s6279_s30  }
  0x4a   :  { %s6125_s5 = scalar_lea.hbm %s6964_s1, 1536 }
  0x4b   :  { %p6126_p4 = scmp.ne.s32.totalorder %s6964_s1, %s6125_s5  ;;  %p6129_p5 = scmp.lt.u32.totalorder %s6125_s5, %s6964_s1 }
  0x4d   :  { %p6131_p6 = pnand %p6129_p5, %p6126_p4 }
  0x4f   :  { %6134 = shalt.err (!%p6131_p6)
}
  0x50   :  { %s6135_s22 = scalar_lea.vmem %s30_s2, 1536  ;;  %p6140_p8 = scmp.lt.s32.totalorder %s30_s2, %s30_s2 }
  0x51   :  { %p6136_p7 = scmp.ne.s32.totalorder %s30_s2, %s6135_s22  ;;  %p6141_p9 = scmp.lt.s32.totalorder %s6135_s22, %s6135_s22 }
  0x53   :  { %p6142_p10 = por %p6141_p9, %p6140_p8 }
  0x55   :  { %p6143_p11 = pnand %p6142_p10, %p6136_p7 }
  0x57   :  { %6146 = shalt.err (!%p6143_p11)
}
  0x58   :  { %35 = dma.hbm_to_vmem [thread:$0]  %s6964_s1, 1536, %s30_s2, [#allocation3], %s6278_s26, %s6278_s26, %s6279_s30  }
  0x59   :  { %s6280_s18 = smov [#allocation7]   ;;  %s6281_s24 = smov [#allocation10]  }
  0x5a   :  { %s54_s23 = sshll.u32 %s6280_s18, 4  ;;  %s76_s25 = sshll.u32 %s6281_s24, 4  ;;  %s55_s23 = int_to_ptr.vmem [resolvable:$true] %s54_s23  ;;  %s77_s25 = int_to_ptr.vmem [resolvable:$true] %s76_s25 }
  0x5b   :  { %s6147_s29 = scalar_lea.hbm %s6967_s4, 16 }
  0x5c   :  { %p6148_p12 = scmp.ne.s32.totalorder %s6967_s4, %s6147_s29  ;;  %p6151_p13 = scmp.lt.u32.totalorder %s6147_s29, %s6967_s4 }
  0x5e   :  { %p6153_p0 = pnand %p6151_p13, %p6148_p12 }
  0x60   :  { %6156 = shalt.err (!%p6153_p0)
}
  0x61   :  { %s6157_s1 = scalar_lea.vmem %s55_s23, 16  ;;  %s6161_s2 = scalar_lea.vmem %s55_s23, 32 }
  0x62   :  { %p6158_p1 = scmp.ne.s32.totalorder %s55_s23, %s6157_s1  ;;  %p6162_p2 = scmp.lt.s32.totalorder %s55_s23, %s55_s23 }
  0x63   :  { %p6163_p3 = scmp.lt.s32.totalorder %s6161_s2, %s6157_s1 }
  0x65   :  { %p6164_p4 = por %p6163_p3, %p6162_p2 }
  0x67   :  { %p6165_p5 = pnand %p6164_p4, %p6158_p1 }
  0x69   :  { %6168 = shalt.err (!%p6165_p5)
}
  0x6a   :  { %57 = dma.hbm_to_vmem [thread:$0]  %s6967_s4, 16, %s55_s23, [#allocation6]  }
  0x6b   :  { %s6169_s20 = scalar_lea.hbm %s6969_s6, 64 }
  0x6c   :  { %p6170_p6 = scmp.ne.s32.totalorder %s6969_s6, %s6169_s20  ;;  %p6173_p7 = scmp.lt.u32.totalorder %s6169_s20, %s6969_s6 }
  0x6e   :  { %p6175_p8 = pnand %p6173_p7, %p6170_p6 }
  0x70   :  { %6178 = shalt.err (!%p6175_p8)
}
  0x71   :  { %s6179_s9 = scalar_lea.vmem %s77_s25, 64  ;;  %p6184_p10 = scmp.lt.s32.totalorder %s77_s25, %s77_s25 }
  0x72   :  { %p6180_p9 = scmp.ne.s32.totalorder %s77_s25, %s6179_s9  ;;  %p6185_p11 = scmp.lt.s32.totalorder %s6179_s9, %s6179_s9 }
  0x74   :  { %p6186_p12 = por %p6185_p11, %p6184_p10 }
  0x76   :  { %p6187_p13 = pnand %p6186_p12, %p6180_p9 }
  0x78   :  { %6190 = shalt.err (!%p6187_p13)
}
  0x79   :  { %79 = dma.hbm_to_vmem [thread:$0]  %s6969_s6, 64, %s77_s25, [#allocation9]  }
  0x7a   :  { %s6282_s18 = smov [#allocation13]   ;;  %s6283_s24 = smov [#allocation16]  }
  0x7b   :  { %s98_s23 = sshll.u32 %s6282_s18, 4  ;;  %s120_s27 = sshll.u32 %s6283_s24, 4  ;;  %s99_s23 = int_to_ptr.vmem [resolvable:$true] %s98_s23  ;;  %s121_s27 = int_to_ptr.vmem [resolvable:$true] %s120_s27 }
  0x7c   :  { %s6191_s7 = scalar_lea.hbm %s6971_s8, 32 }
  0x7d   :  { %p6192_p0 = scmp.ne.s32.totalorder %s6971_s8, %s6191_s7  ;;  %p6195_p1 = scmp.lt.u32.totalorder %s6191_s7, %s6971_s8 }
  0x7f   :  { %p6197_p2 = pnand %p6195_p1, %p6192_p0 }
  0x81   :  { %6200 = shalt.err (!%p6197_p2)
}
  0x82   :  { %s6201_s6 = scalar_lea.vmem %s99_s23, 32  ;;  %p6206_p4 = scmp.lt.s32.totalorder %s99_s23, %s99_s23 }
  0x83   :  { %p6202_p3 = scmp.ne.s32.totalorder %s99_s23, %s6201_s6  ;;  %p6207_p5 = scmp.lt.s32.totalorder %s6201_s6, %s6201_s6 }
  0x85   :  { %p6208_p6 = por %p6207_p5, %p6206_p4 }
  0x87   :  { %p6209_p7 = pnand %p6208_p6, %p6202_p3 }
  0x89   :  { %6212 = shalt.err (!%p6209_p7)
}
  0x8a   :  { %101 = dma.hbm_to_vmem [thread:$0]  %s6971_s8, 32, %s99_s23, [#allocation12]  }
  0x8b   :  { %s6213_s15 = scalar_lea.hbm %s6973_s10, 16 }
  0x8c   :  { %p6214_p8 = scmp.ne.s32.totalorder %s6973_s10, %s6213_s15  ;;  %p6217_p9 = scmp.lt.u32.totalorder %s6213_s15, %s6973_s10 }
  0x8e   :  { %p6219_p10 = pnand %p6217_p9, %p6214_p8 }
  0x90   :  { %6222 = shalt.err (!%p6219_p10)
}
  0x91   :  { %s6223_s19 = scalar_lea.vmem %s121_s27, 16  ;;  %s6227_s22 = scalar_lea.vmem %s121_s27, 32 }
  0x92   :  { %p6224_p11 = scmp.ne.s32.totalorder %s121_s27, %s6223_s19  ;;  %p6228_p12 = scmp.lt.s32.totalorder %s121_s27, %s121_s27 }
  0x93   :  { %p6229_p13 = scmp.lt.s32.totalorder %s6227_s22, %s6223_s19 }
  0x95   :  { %p6230_p0 = por %p6229_p13, %p6228_p12 }
  0x97   :  { %p6231_p1 = pnand %p6230_p0, %p6224_p11 }
  0x99   :  { %6234 = shalt.err (!%p6231_p1)
}
  0x9a   :  { %123 = dma.hbm_to_vmem [thread:$0]  %s6973_s10, 16, %s121_s27, [#allocation15]  }
  0x9b   :  { %6257 = dma.done.wait [#allocation3], 1536  }
  0x9c   :  { %6258 = vsyncadd [#allocation3], 4294965760 }
  0x9d   :  { %6259 = dma.done.wait [#allocation6], 32  }
  0x9e   :  { %6260 = vsyncadd [#allocation6], 4294967264 }
  0x9f   :  { %6261 = dma.done.wait [#allocation9], 36928  }
  0xa0   :  { %6262 = vsyncadd [#allocation9], 4294930368 }
  0xa1   :  { %6263 = dma.done.wait [#allocation12], 8224  }
  0xa2   :  { %6264 = vsyncadd [#allocation12], 4294959072 }
  0xa3   :  { %6265 = dma.done.wait [#allocation15], 2064  }
  0xa4   :  { %6266 = vsyncadd [#allocation15], 4294965232  ;;  %v6284_v0 = vmov 0.0   ;;  %vm6285_vm0 = vmmov 0   ;;  %v5444_v1 = vld [vmem:[#allocation2 + $0x20] sm:$0xff]   ;;  %v5446_v3 = vld [vmem:[#allocation2 + $0x28] sm:$0xff]  }
  0xa5   :  { %5239 = vmatprep.subr.bf16.mxu0 %v6284_v0  ;;  %5251 = vmatprep.subr.bf16.mxu1 %v6284_v0  ;;  %v5445_v2 = vld [vmem:[#allocation2] sm:$0xff]   ;;  %v5447_v4 = vld [vmem:[#allocation2 + $0x8] sm:$0xff]   ;;  %v5448_v5 = vld [vmem:[#allocation2 + $0x30] sm:$0xff]   ;;  %vm203_vm1 = vcmask 523264   ;;  %vm486_vm2 = vcmask 916480   ;;  %vm1221_vm4 = vcmask 785408  }
  0xa6   :  { %5247 = vmatprep.mubr.msk.bf16.mxu0 %vm6285_vm0, %v6284_v0  ;;  %5259 = vmatprep.mubr.msk.bf16.mxu1 %vm6285_vm0, %v6284_v0  ;;  %v5449_v6 = vld [vmem:[#allocation2 + $0x10] sm:$0xff]   ;;  %v152_v7 = vld [vmem:[%s6963_s0] sm:$0xff]  ;;  %v153_v8 = vld [vmem:[%s6963_s0 + $0x8] sm:$0xff] }
  0xa7   :  { %5240 = vmatpush3.bf16.msra.mxu0 %v5444_v1  ;;  %5252 = vmatpush3.bf16.msra.mxu1 %v5445_v2  ;;  %v154_v9 = vpack.c.bf16 %v153_v8, %v152_v7  ;;  %v5450_v10 = vld [vmem:[#allocation2 + $0x38] sm:$0xff]   ;;  %v5452_v14 = vld [vmem:[#allocation2 + $0x40] sm:$0xff]   ;;  %v5453_v17 = vld [vmem:[#allocation2 + $0x48] sm:$0xff]  }
  0xa8   :  { %5241 = vmatprep.subr.bf16.mxu0 %v6284_v0  ;;  %5253 = vmatprep.subr.bf16.mxu1 %v6284_v0  ;;  %v5451_v11 = vld [vmem:[#allocation2 + $0x18] sm:$0xff]   ;;  %v5454_v18 = vld [vmem:[#allocation2 + $0x50] sm:$0xff]   ;;  %v6516_v24 = vld [vmem:[%s6966_s3 + $0x40] sm:$0xff]  }
  0xa9   :  { %v173_v12 = vshrl.u32 %v154_v9, 16  ;;  %v175_v13 = vshll.u32 %v154_v9, 16  ;;  %v5455_v19 = vld [vmem:[#allocation2 + $0x58] sm:$0xff]   ;;  %v325_v20 = vrot.slane %v154_v9, 1  ;;  %v6499_v21 = vld [vmem:[%s6966_s3 + $0x70] sm:$0xff]   ;;  %v6521_v25 = vld [vmem:[%s6966_s3 + $0x80] sm:$0xff]  }
  0xaa   :  { %v6505_v22 = vld [vmem:[%s6966_s3 + $0x38] sm:$0xff]   ;;  %v6530_v26 = vld [vmem:[%s6966_s3 + $0x48] sm:$0xff]   ;;  %v6547_v28 = vld [vmem:[%s6966_s3 + $0x50] sm:$0xff]  }
  0xab   :  { %5242 = vmatpush3.bf16.msra.mxu0 %v5446_v3  ;;  %5254 = vmatpush3.bf16.msra.mxu1 %v5447_v4  ;;  %v177_v15 = vrot.slane %v175_v13, 1  ;;  %v6511_v23 = vld [vmem:[%s6966_s3 + $0x78] sm:$0xff]   ;;  %v6535_v27 = vld [vmem:[%s6966_s3 + $0x88] sm:$0xff]   ;;  %v6553_v29 = vld [vmem:[%s6966_s3 + $0x90] sm:$0xff]  }
  0xac   :  { %5243 = vmatprep.subr.bf16.mxu0 %v6284_v0  ;;  %5255 = vmatprep.subr.bf16.mxu1 %v6284_v0  ;;  %v6561_v30 = vld [vmem:[%s6966_s3 + $0x58] sm:$0xff]   ;;  %v6575_v32 = vld [vmem:[%s6966_s3 + $0x60] sm:$0xff]   ;;  %v6589_v34 = vld [vmem:[%s6966_s3 + $0x68] sm:$0xff]  }
  0xad   :  { %v178_v16 = vor.u32 %v177_v15, %v173_v12  ;;  %v6567_v31 = vld [vmem:[%s6966_s3 + $0x98] sm:$0xff]   ;;  %v6581_v33 = vld [vmem:[%s6966_s3 + $0xa0] sm:$0xff]   ;;  %v6612_v1 = vld [vmem:[%s6966_s3 + $0x8] sm:$0xff]  }
  0xae   :  { %v6594_v46 = vld [vmem:[#allocation5] ss:$0 sm:$0xff]  ;;  %v6026_v2 = vld [vmem:[#allocation2 + $0x8] sm:$0xff]   ;;  %v6622_v3 = vld [vmem:[%s6966_s3 + $0x10] sm:$0xff]  }
  0xaf   :  { %5244 = vmatpush3.bf16.msra.mxu0 %v5448_v5  ;;  %5256 = vmatpush3.bf16.msra.mxu1 %v5449_v6  ;;  %v6602_v61 = vld [vmem:[%s6966_s3] sm:$0xff]   ;;  %v6027_v4 = vld [vmem:[#allocation2 + $0x10] sm:$0xff]   ;;  %v4739_v6 = vld [vmem:[%s6963_s0 + $0x18] sm:$0xff] }
  0xb0   :  { %5245 = vmatprep.subr.bf16.mxu0 %v6284_v0  ;;  %5257 = vmatprep.subr.bf16.mxu1 %v6284_v0  ;;  %v6025_v62 = vld [vmem:[#allocation2] sm:$0xff]   ;;  %v4738_v5 = vld [vmem:[%s6963_s0 + $0x10] sm:$0xff]  ;;  %v6636_v7 = vld [vmem:[%s6966_s3 + $0x18] sm:$0xff]  }
  0xb1   :  { %v6028_v8 = vld [vmem:[#allocation2 + $0x18] sm:$0xff]   ;;  %v5476_v12 = vld [vmem:[%s6966_s3 + $0x30] sm:$0xff]   ;;  %v6029_v13 = vld [vmem:[#allocation2 + $0x20] sm:$0xff]  }
  0xb2   :  { %v6030_v15 = vld [vmem:[#allocation2 + $0x28] sm:$0xff]  }
  0xb3   :  { %5246 = vmatpush3.bf16.msra.mxu0 %v5450_v10  ;;  %5258 = vmatpush3.bf16.msra.mxu1 %v5451_v11  ;;  %v6646_v10 = vld [vmem:[%s6966_s3 + $0x20] sm:$0xff]   ;;  %v6659_v11 = vld [vmem:[%s6966_s3 + $0x28] sm:$0xff]   ;;  %s6287_s3 = smov [#allocation17]  }
  0xb4   :  { %5263 = vmatprep.subr.bf16.mxu0 %v6284_v0  ;;  %5311 = vmatprep.subr.bf16.mxu1 %v6284_v0  ;;  %s4656_s20 = sshll.u32 %s6287_s3, 4  ;;  %s4657_s20 = int_to_ptr.vmem [resolvable:$true] %s4656_s20 }
  0xb5   :  { %s6235_s16 = scalar_lea.vmem %s4657_s20, 32  ;;  %p6240_p3 = scmp.lt.s32.totalorder %s4657_s20, %s4657_s20 }
  0xb6   :  { %5248 = vmatmul.mubr.msk.bf16.vlgmr.msra.gmra.mrb[0].mxu0 %vm203_vm1, %v178_v16  ;;  %5260 = vmatmul.mubr.msk.bf16.vlgmr.msra.gmra.mrb[0].mxu1 %vm203_vm1, %v154_v9  ;;  %v6639_v9 = vpack.c.bf16 %v4739_v6, %v4738_v5  ;;  %p6236_p2 = scmp.ne.s32.totalorder %s4657_s20, %s6235_s16  ;;  %p6241_p4 = scmp.lt.s32.totalorder %s6235_s16, %s6235_s16 }
  0xb7   :  { %5264 = vmatpush3.bf16.msra.mxu0 %v5452_v14  ;;  %5271 = vmatprep.mubr.msk.bf16.mxu0 %vm6285_vm0, %v6284_v0 }
  0xb8   :  { %5265 = vmatprep.subr.bf16.mxu0 %v6284_v0  ;;  %5325 = vmatprep.mubr.msk.bf16.mxu1 %vm6285_vm0, %v6284_v0  ;;  %v739_v14 = vshll.u32 %v6639_v9, 16  ;;  %v737_v16 = vshrl.u32 %v6639_v9, 16  ;;  %p6242_p5 = por %p6241_p4, %p6240_p3 }
  0xb9   :  { %5312 = vmatpush3.bf16.msra.mxu1 %v6499_v21 }
  0xba   :  { %5313 = vmatprep.subr.bf16.mxu1 %v6284_v0  ;;  %p6243_p6 = pnand %p6242_p5, %p6236_p2 }
  0xbb   :  { %5266 = vmatpush3.bf16.msra.mxu0 %v5453_v17  ;;  %v741_v17 = vrot.slane %v739_v14, 1  ;;  %v5491_v14 = vld [vmem:[#allocation8 + $0x104] ss:$16 sps:$4 sm:$0xff]  }
  0xbc   :  { %5267 = vmatprep.subr.bf16.mxu0 %v6284_v0 }
  0xbd   :  { %5314 = vmatpush3.bf16.msra.mxu1 %v6511_v23 }
  0xbe   :  { %5315 = vmatprep.subr.bf16.mxu1 %v6284_v0 }
  0xbf   :  { %5268 = vmatpush3.bf16.msra.mxu0 %v5454_v18  ;;  %v6031_v18 = vld [vmem:[#allocation2 + $0x30] sm:$0xff]  }
  0xc0   :  { %5269 = vmatprep.subr.bf16.mxu0 %v6284_v0 }
  0xc1   :  { %5316 = vmatpush3.bf16.msra.mxu1 %v6521_v25 }
  0xc2   :  { %5317 = vmatprep.subr.bf16.mxu1 %v6284_v0 }
  0xc3   :  { %5270 = vmatpush3.bf16.msra.mxu0 %v5455_v19  ;;  %v742_v19 = vor.u32 %v741_v17, %v737_v16  ;;  %v5497_v16 = vld [vmem:[#allocation8 + $0x124] ss:$16 sps:$4 sm:$0xff]  }
  0xc4   :  { %5275 = vmatprep.subr.bf16.mxu0 %v6284_v0  ;;  %v5500_v17 = vld [vmem:[#allocation8 + $0x64] ss:$16 sps:$4 sm:$0xff]  }
  0xc5   :  { %5318 = vmatpush3.bf16.msra.mxu1 %v6535_v27 }
  0xc6   :  { %5272 = vmatmul.mubr.msk.bf16.vlgmr.msra.gmra.mrb[4].mxu0 %vm203_vm1, %v325_v20  ;;  %5319 = vmatprep.subr.bf16.mxu1 %v6284_v0  ;;  %v6032_v20 = vld [vmem:[#allocation2 + $0x38] sm:$0xff]  }
  0xc7   :  { %5289 = vmatprep.mubr.msk.bf16.mxu0 %vm6285_vm0, %v6284_v0  ;;  %5276 = vmatpush3.bf16.msra.mxu0 %v6505_v22 }
  0xc8   :  { %5277 = vmatprep.subr.bf16.mxu0 %v6284_v0 }
  0xc9   :  { %5320 = vmatpush3.bf16.msra.mxu1 %v6553_v29 }
  0xca   :  { %5321 = vmatprep.subr.bf16.mxu1 %v6284_v0 }
  0xcb   :  { %5278 = vmatpush3.bf16.msra.mxu0 %v6516_v24 }
  0xcc   :  { %5279 = vmatprep.subr.bf16.mxu0 %v6284_v0 }
  0xcd   :  { %5322 = vmatpush3.bf16.msra.mxu1 %v6567_v31 }
  0xce   :  { %5323 = vmatprep.subr.bf16.mxu1 %v6284_v0 }
  0xcf   :  { %5280 = vmatpush3.bf16.msra.mxu0 %v6530_v26 }
  0xd0   :  { %5281 = vmatprep.subr.bf16.mxu0 %v6284_v0 }
  0xd1   :  { %5324 = vmatpush3.bf16.msra.mxu1 %v6581_v33 }
  0xd2   :  { %5341 = vmatprep.subr.bf16.mxu1 %v6284_v0 }
  0xd3   :  { %5282 = vmatpush3.bf16.msra.mxu0 %v6547_v28 }
  0xd4   :  { %5283 = vmatprep.subr.bf16.mxu0 %v6284_v0 }
  0xd7   :  { %5284 = vmatpush3.bf16.msra.mxu0 %v6561_v30 }
  0xd8   :  { %5285 = vmatprep.subr.bf16.mxu0 %v6284_v0 }
  0xdb   :  { %5286 = vmatpush3.bf16.msra.mxu0 %v6575_v32 }
  0xdc   :  { %5287 = vmatprep.subr.bf16.mxu0 %v6284_v0 }
  0xdf   :  { %5288 = vmatpush3.bf16.msra.mxu0 %v6589_v34 }
  0xe0   :  { %5293 = vmatprep.subr.bf16.mxu0 %v6284_v0 }
 0x189   :  { %v241_v35 = vpop.f32.mrb[0].mxu0  ;;  %v308_v36 = vpop.f32.mrb[0].mxu1 }
 0x18a   :  { %v5249_v37 = vpop.f32.mrb[1].mxu0  ;;  %v309_v38 = vadd.f32 %v308_v36, %v241_v35  ;;  %v5261_v39 = vpop.f32.mrb[1].mxu1 }
 0x18b   :  { %v244_v40 = vpop.f32.mrb[2].mxu0  ;;  %v311_v41 = vpop.f32.mrb[2].mxu1 }
 0x18c   :  { %v5250_v42 = vpop.f32.mrb[3].mxu0  ;;  %v312_v43 = vadd.f32 %v311_v41, %v244_v40  ;;  %v5262_v44 = vpop.f32.mrb[3].mxu1 }
 0x199   :  { %v387_v45 = vpop.f32.mrb[4].mxu0 }
 0x19a   :  { %v394_v47 = vadd.f32 %v387_v45, %v309_v38  ;;  %v5273_v48 = vpop.f32.mrb[5].mxu0 }
 0x19b   :  { %v390_v49 = vpop.f32.mrb[6].mxu0 }
 0x19c   :  { %v403_v50 = vadd.f32 %v6594_v46, %v394_v47  ;;  %v395_v51 = vadd.f32 %v390_v49, %v312_v43  ;;  %v5274_v52 = vpop.f32.mrb[7].mxu0 }
 0x19e   :  { %v404_v53 = vadd.f32 %v6594_v46, %v395_v51  ;;  %v405_v54 = vmax.f32 %v403_v50, 0.0 }
 0x1a0   :  { %v406_v55 = vmax.f32 %v404_v53, 0.0 }
 0x1a2   :  { %v407_v56 = vpack.c.bf16 %v406_v55, %v405_v54 }
 0x1a4   :  { %v440_v57 = vshll.u32 %v407_v56, 16  ;;  %v632_v58 = vrot.slane %v407_v56, 1  ;;  %v438_v59 = vshrl.u32 %v407_v56, 16 }
 0x1a6   :  { %v442_v60 = vrot.slane %v440_v57, 1  ;;  %5326 = vmatmul.mubr.msk.bf16.vlgmr.msra.gmra.mrb[4].mxu1 %vm486_vm2, %v632_v58 }
 0x1a7   :  { %5342 = vmatpush3.bf16.msra.mxu1 %v6025_v62  ;;  %5349 = vmatprep.mubr.msk.bf16.mxu1 %vm6285_vm0, %v6284_v0 }
 0x1a8   :  { %v443_v63 = vor.u32 %v442_v60, %v438_v59  ;;  %5343 = vmatprep.subr.bf16.mxu1 %v6284_v0 }
 0x1aa   :  { %5290 = vmatmul.mubr.msk.bf16.vlgmr.msra.gmra.mrb[8].mxu0 %vm486_vm2, %v443_v63 }
 0x1ab   :  { %5294 = vmatpush3.bf16.msra.mxu0 %v6602_v61  ;;  %5307 = vmatprep.mubr.msk.bf16.mxu0 %vm6285_vm0, %v6284_v0 }
 0x1ac   :  { %5295 = vmatprep.subr.bf16.mxu0 %v6284_v0  ;;  %5344 = vmatpush3.bf16.msra.mxu1 %v6026_v2 }
 0x1ad   :  { %5345 = vmatprep.subr.bf16.mxu1 %v6284_v0 }
 0x1af   :  { %5296 = vmatpush3.bf16.msra.mxu0 %v6612_v1 }
 0x1b0   :  { %5297 = vmatprep.subr.bf16.mxu0 %v6284_v0  ;;  %5346 = vmatpush3.bf16.msra.mxu1 %v6027_v4 }
 0x1b1   :  { %5347 = vmatprep.subr.bf16.mxu1 %v6284_v0 }
 0x1b3   :  { %5298 = vmatpush3.bf16.msra.mxu0 %v6622_v3 }
 0x1b4   :  { %5299 = vmatprep.subr.bf16.mxu0 %v6284_v0  ;;  %5348 = vmatpush3.bf16.msra.mxu1 %v6028_v8 }
 0x1b5   :  { %5365 = vmatprep.subr.bf16.mxu1 %v6284_v0 }
 0x1b7   :  { %5300 = vmatpush3.bf16.msra.mxu0 %v6636_v7  ;;  %5350 = vmatmul.mubr.msk.bf16.vlgmr.msra.gmra.mrb[8].mxu1 %vm203_vm1, %v6639_v9 }
 0x1b8   :  { %5301 = vmatprep.subr.bf16.mxu0 %v6284_v0  ;;  %5366 = vmatpush3.bf16.msra.mxu1 %v6505_v22  ;;  %v6033_v22 = vld [vmem:[#allocation2 + $0x40] sm:$0xff]  }
 0x1b9   :  { %5367 = vmatprep.subr.bf16.mxu1 %v6284_v0  ;;  %5379 = vmatprep.mubr.msk.bf16.mxu1 %vm6285_vm0, %v6284_v0 }
 0x1bb   :  { %5302 = vmatpush3.bf16.msra.mxu0 %v6646_v10 }
 0x1bc   :  { %5303 = vmatprep.subr.bf16.mxu0 %v6284_v0  ;;  %5368 = vmatpush3.bf16.msra.mxu1 %v6516_v24  ;;  %v6034_v24 = vld [vmem:[#allocation2 + $0x48] sm:$0xff]  }
 0x1bd   :  { %5369 = vmatprep.subr.bf16.mxu1 %v6284_v0 }
 0x1bf   :  { %5304 = vmatpush3.bf16.msra.mxu0 %v6659_v11 }
 0x1c0   :  { %5305 = vmatprep.subr.bf16.mxu0 %v6284_v0  ;;  %5370 = vmatpush3.bf16.msra.mxu1 %v6530_v26  ;;  %v6035_v26 = vld [vmem:[#allocation2 + $0x50] sm:$0xff]  }
 0x1c1   :  { %5371 = vmatprep.subr.bf16.mxu1 %v6284_v0 }
 0x1c3   :  { %5306 = vmatpush3.bf16.msra.mxu0 %v5476_v12 }
 0x1c4   :  { %5329 = vmatprep.subr.bf16.mxu0 %v6284_v0  ;;  %5372 = vmatpush3.bf16.msra.mxu1 %v6547_v28  ;;  %v831_v28 = vrot.slane %v6639_v9, 1 }
 0x1c5   :  { %5373 = vmatprep.subr.bf16.mxu1 %v6284_v0 }
 0x1c6   :  { %5308 = vmatmul.mubr.msk.bf16.vlgmr.msra.gmra.mrb[12].mxu0 %vm486_vm2, %v407_v56 }
 0x1c7   :  { %5330 = vmatpush3.bf16.msra.mxu0 %v6029_v13  ;;  %5337 = vmatprep.mubr.msk.bf16.mxu0 %vm6285_vm0, %v6284_v0  ;;  %v5488_v13 = vld [vmem:[#allocation8 + $0x24] ss:$16 sps:$4 sm:$0xff]  }
 0x1c8   :  { %5331 = vmatprep.subr.bf16.mxu0 %v6284_v0  ;;  %5374 = vmatpush3.bf16.msra.mxu1 %v6561_v30  ;;  %v6036_v30 = vld [vmem:[#allocation2 + $0x58] sm:$0xff]  }
 0x1c9   :  { %5375 = vmatprep.subr.bf16.mxu1 %v6284_v0 }
 0x1cb   :  { %5332 = vmatpush3.bf16.msra.mxu0 %v6030_v15  ;;  %v5492_v15 = vld [vmem:[#allocation8 + $0x40] ss:$16 sps:$4 sm:$0xff]  }
 0x1cc   :  { %5333 = vmatprep.subr.bf16.mxu0 %v6284_v0  ;;  %5376 = vmatpush3.bf16.msra.mxu1 %v6575_v32 }
 0x1cd   :  { %5377 = vmatprep.subr.bf16.mxu1 %v6284_v0 }
 0x1cf   :  { %5334 = vmatpush3.bf16.msra.mxu0 %v6031_v18  ;;  %v5495_v18 = vld [vmem:[#allocation8 + $0x120] ss:$16 sps:$4 sm:$0xff]  }
 0x1d0   :  { %5335 = vmatprep.subr.bf16.mxu0 %v6284_v0  ;;  %5378 = vmatpush3.bf16.msra.mxu1 %v6589_v34 }
 0x1d1   :  { %5401 = vmatprep.subr.bf16.mxu1 %v6284_v0 }
 0x1d3   :  { %5336 = vmatpush3.bf16.msra.mxu0 %v6032_v20  ;;  %v5503_v20 = vld [vmem:[#allocation8 + $0x144] ss:$16 sps:$4 sm:$0xff]  }
 0x1d4   :  { %5353 = vmatprep.subr.bf16.mxu0 %v6284_v0 }
 0x1d6   :  { %5338 = vmatmul.mubr.msk.bf16.vlgmr.msra.gmra.mrb[16].mxu0 %vm203_vm1, %v742_v19  ;;  %v5498_v19 = vld [vmem:[#allocation8 + $0x60] ss:$16 sps:$4 sm:$0xff]  }
 0x1d7   :  { %5354 = vmatpush3.bf16.msra.mxu0 %v6033_v22  ;;  %5361 = vmatprep.mubr.msk.bf16.mxu0 %vm6285_vm0, %v6284_v0  ;;  %v5506_v22 = vld [vmem:[#allocation8 + $0x84] ss:$16 sps:$4 sm:$0xff]  }
 0x1d8   :  { %5355 = vmatprep.subr.bf16.mxu0 %v6284_v0 }
 0x1db   :  { %5356 = vmatpush3.bf16.msra.mxu0 %v6034_v24  ;;  %v5501_v24 = vld [vmem:[#allocation8 + $0x140] ss:$16 sps:$4 sm:$0xff]  }
 0x1dc   :  { %5357 = vmatprep.subr.bf16.mxu0 %v6284_v0 }
 0x1df   :  { %5358 = vmatpush3.bf16.msra.mxu0 %v6035_v26  ;;  %v5504_v26 = vld [vmem:[#allocation8 + $0x80] ss:$16 sps:$4 sm:$0xff]  }
 0x1e0   :  { %5359 = vmatprep.subr.bf16.mxu0 %v6284_v0 }
 0x1e3   :  { %5360 = vmatpush3.bf16.msra.mxu0 %v6036_v30  ;;  %v5512_v30 = vld [vmem:[#allocation8 + $0xa4] ss:$16 sps:$4 sm:$0xff]  }
 0x1e4   :  { %5383 = vmatprep.subr.bf16.mxu0 %v6284_v0 }
 0x1e6   :  { %5362 = vmatmul.mubr.msk.bf16.vlgmr.msra.gmra.mrb[20].mxu0 %vm203_vm1, %v831_v28  ;;  %v5509_v28 = vld [vmem:[#allocation8 + $0x164] ss:$16 sps:$4 sm:$0xff]  }
 0x1e7   :  { %5384 = vmatpush3.bf16.msra.mxu0 %v6602_v61  ;;  %5397 = vmatprep.mubr.msk.bf16.mxu0 %vm6285_vm0, %v6284_v0 }
 0x1e8   :  { %5385 = vmatprep.subr.bf16.mxu0 %v6284_v0 }
 0x1eb   :  { %5386 = vmatpush3.bf16.msra.mxu0 %v6612_v1 }
 0x1ec   :  { %5387 = vmatprep.subr.bf16.mxu0 %v6284_v0 }
 0x1ef   :  { %5388 = vmatpush3.bf16.msra.mxu0 %v6622_v3 }
 0x1f0   :  { %5389 = vmatprep.subr.bf16.mxu0 %v6284_v0 }
 0x1f3   :  { %5390 = vmatpush3.bf16.msra.mxu0 %v6636_v7 }
 0x1f4   :  { %5391 = vmatprep.subr.bf16.mxu0 %v6284_v0 }
 0x1f7   :  { %5392 = vmatpush3.bf16.msra.mxu0 %v6646_v10 }
 0x1f8   :  { %5393 = vmatprep.subr.bf16.mxu0 %v6284_v0 }
 0x1fb   :  { %5394 = vmatpush3.bf16.msra.mxu0 %v6659_v11 }
 0x1fc   :  { %5395 = vmatprep.subr.bf16.mxu0 %v6284_v0 }
 0x1ff   :  { %5396 = vmatpush3.bf16.msra.mxu0 %v5476_v12  ;;  %v5482_v12 = vld [vmem:[#allocation8 + $0x4] ss:$16 sps:$4 sm:$0xff]  }
 0x279   :  { %v712_v32 = vpop.f32.mrb[4].mxu1 }
 0x27a   :  { %v5327_v34 = vpop.f32.mrb[5].mxu1 }
 0x27b   :  { %v715_v35 = vpop.f32.mrb[6].mxu1  ;;  %v5510_v34 = vld [vmem:[#allocation8 + $0xa0] ss:$16 sps:$4 sm:$0xff]  }
 0x27c   :  { %v5328_v36 = vpop.f32.mrb[7].mxu1 }
 0x27d   :  { %v524_v37 = vpop.f32.mrb[8].mxu0  ;;  %v6286_v36 = vmov 0  }
 0x27e   :  { %v5291_v38 = vpop.f32.mrb[9].mxu0 }
 0x27f   :  { %v527_v39 = vpop.f32.mrb[10].mxu0 }
 0x280   :  { %v5292_v40 = vpop.f32.mrb[11].mxu0 }
 0x28a   :  { %v823_v41 = vpop.f32.mrb[8].mxu1 }
 0x28b   :  { %v5351_v42 = vpop.f32.mrb[9].mxu1 }
 0x28c   :  { %v826_v43 = vpop.f32.mrb[10].mxu1 }
 0x28d   :  { %v5352_v44 = vpop.f32.mrb[11].mxu1 }
 0x299   :  { %v609_v45 = vpop.f32.mrb[12].mxu0 }
 0x29a   :  { %v610_v47 = vadd.f32 %v609_v45, %v524_v37  ;;  %v5309_v48 = vpop.f32.mrb[13].mxu0  ;;  %v5518_v37 = vld [vmem:[#allocation8 + $0x184] ss:$16 sps:$4 sm:$0xff]  }
 0x29b   :  { %v612_v49 = vpop.f32.mrb[14].mxu0 }
 0x29c   :  { %v6712_v50 = vadd.f32 %v712_v32, %v610_v47  ;;  %v613_v51 = vadd.f32 %v612_v49, %v527_v39  ;;  %v5310_v52 = vpop.f32.mrb[15].mxu0  ;;  %v5507_v32 = vld [vmem:[#allocation8 + $0x160] ss:$16 sps:$4 sm:$0xff]   ;;  %v1029_v49 = vlaneseq }
 0x29e   :  { %v6714_v53 = vadd.f32 %v715_v35, %v613_v51  ;;  %v5515_v35 = vld [vmem:[#allocation8 + $0xcc] ss:$16 sps:$4 sm:$0xff]   ;;  %v6738_v52 = vshrl.u32 %v1029_v49, 7  ;;  %v5522_v49 = vld [vmem:[#allocation8 + $0x1a0] ss:$16 sps:$4 sm:$0xff]  }
 0x29f   :  { %v4737_v51 = vld [vmem:[#allocation7] ss:$0 sm:$0xff] }
 0x2a0   :  { %vm1035_vm3 = vcmp.eq.s32.totalorder %v6738_v52, 1 }
 0x2a9   :  { %v780_v54 = vpop.f32.mrb[16].mxu0 }
 0x2aa   :  { %v824_v55 = vadd.f32 %v823_v41, %v780_v54  ;;  %v5339_v56 = vpop.f32.mrb[17].mxu0  ;;  %v728_v54 = vadd.f32 %v4737_v51, %v6712_v50  ;;  %v2002_v50 = vsub.s32 4, %v6738_v52 }
 0x2ab   :  { %v783_v57 = vpop.f32.mrb[18].mxu0  ;;  %v6743_v56 = vsub.s32 0, %v6738_v52 }
 0x2ac   :  { %v827_v58 = vadd.f32 %v826_v43, %v783_v57  ;;  %v5340_v59 = vpop.f32.mrb[19].mxu0  ;;  %v730_v57 = vmax.f32 %v728_v54, 0.0 }
 0x2ad   :  { %v6749_v59 = vsub.s32 2, %v6738_v52 }
 0x2b9   :  { %v869_v60 = vpop.f32.mrb[20].mxu0 }
 0x2ba   :  { %v876_v61 = vadd.f32 %v869_v60, %v824_v55  ;;  %v5363_v62 = vpop.f32.mrb[21].mxu0  ;;  %v729_v55 = vadd.f32 %v4737_v51, %v6714_v53  ;;  %v6752_v60 = vsub.s32 3, %v6738_v52  ;;  %v2246_v53 = vsub.s32 5, %v6738_v52 }
 0x2bb   :  { %v872_v63 = vpop.f32.mrb[22].mxu0 }
 0x2bc   :  { %v878_v1 = vadd.f32 %v6594_v46, %v876_v61  ;;  %v877_v2 = vadd.f32 %v872_v63, %v827_v58  ;;  %v5364_v3 = vpop.f32.mrb[23].mxu0  ;;  %v6746_v58 = vsub.s32 1, %v6738_v52 }
 0x2bd   :  { %v2490_v3 = vsub.s32 6, %v6738_v52 }
 0x2be   :  { %v879_v4 = vadd.f32 %v6594_v46, %v877_v2  ;;  %v880_v5 = vmax.f32 %v878_v1, 0.0  ;;  %v5480_v46 = vld [vmem:[#allocation8] ss:$16 sps:$4 sm:$0xff]   ;;  %v6756_v1 = vmax.f32 %v729_v55, 0.0 }
 0x2c0   :  { %v881_v6 = vmax.f32 %v879_v4, 0.0 }
 0x2c2   :  { %v882_v7 = vpack.c.bf16 %v881_v6, %v880_v5 }
 0x2c4   :  { %v886_v8 = vshll.u32 %v882_v7, 16  ;;  %5398 = vmatmul.mubr.msk.bf16.vlgmr.msra.gmra.mrb[24].mxu0 %vm486_vm2, %v882_v7  ;;  %v884_v9 = vshrl.u32 %v882_v7, 16 }
 0x2c5   :  { %1257 = vmatprep.mubr.bf16.mxu0 %v6286_v36 }
 0x2c6   :  { %v888_v10 = vrot.slane %v886_v8, 1  ;;  %v1069_v8 = vrot.slane %v730_v57, %v6746_v58 }
 0x2c8   :  { %v889_v11 = vor.u32 %v888_v10, %v884_v9  ;;  %v1034_v9 = vrot.slane %v730_v57, %v6743_v56  ;;  %v1515_v10 = vrot.slane %v730_v57, %v6749_v59 }
 0x2ca   :  { %5380 = vmatmul.mubr.msk.bf16.vlgmr.msra.gmra.mrb[12].mxu1 %vm486_vm2, %v889_v11  ;;  %v1759_v11 = vrot.slane %v730_v57, %v6752_v60 }
 0x2cb   :  { %5402 = vmatpush3.bf16.msra.mxu1 %v6499_v21  ;;  %5415 = vmatprep.mubr.msk.bf16.mxu1 %vm6285_vm0, %v6284_v0  ;;  %v978_v21 = vrot.slane %v882_v7, 1  ;;  %v2734_v7 = vsub.s32 7, %v6738_v52  ;;  %v5537_v52 = vld [vmem:[#allocation8 + $0x148] ss:$16 sps:$4 sm:$0xff]  }
 0x2cc   :  { %5403 = vmatprep.subr.bf16.mxu1 %v6284_v0 }
 0x2cf   :  { %5404 = vmatpush3.bf16.msra.mxu1 %v6511_v23  ;;  %v5477_v23 = vld [vmem:[#allocation8 + $0xc0] ss:$16 sps:$4 sm:$0xff]  }
 0x2d0   :  { %5405 = vmatprep.subr.bf16.mxu1 %v6284_v0 }
 0x2d3   :  { %5406 = vmatpush3.bf16.msra.mxu1 %v6521_v25  ;;  %v5479_v25 = vld [vmem:[#allocation8 + $0xc4] ss:$16 sps:$4 sm:$0xff]  }
 0x2d4   :  { %5407 = vmatprep.subr.bf16.mxu1 %v6284_v0  ;;  %1225 = vmatprep.subr.bf16.mxu0 %v5479_v25  ;;  %v2003_v25 = vrot.slane %v730_v57, %v2002_v50 }
 0x2d5   :  { %1226 = vmatpush1.bf16.msra.mxu0 %v5477_v23 }
 0x2d7   :  { %5408 = vmatpush3.bf16.msra.mxu1 %v6535_v27  ;;  %v5485_v27 = vld [vmem:[#allocation8 + $0xe4] ss:$16 sps:$4 sm:$0xff]  }
 0x2d8   :  { %5409 = vmatprep.subr.bf16.mxu1 %v6284_v0  ;;  %1227 = vmatprep.subr.bf16.mxu0 %v5485_v27  ;;  %v3223_v27 = vrot.slane %v6756_v1, %v6746_v58 }
 0x2db   :  { %5410 = vmatpush3.bf16.msra.mxu1 %v6553_v29  ;;  %v5483_v29 = vld [vmem:[#allocation8 + $0xe0] ss:$16 sps:$4 sm:$0xff]  }
 0x2dc   :  { %5411 = vmatprep.subr.bf16.mxu1 %v6284_v0  ;;  %1228 = vmatpush1.bf16.msra.mxu0 %v5483_v29 }
 0x2dd   :  { %1229 = vmatprep.subr.bf16.mxu0 %v5491_v14 }
 0x2df   :  { %5412 = vmatpush3.bf16.msra.mxu1 %v6567_v31  ;;  %v5486_v31 = vld [vmem:[#allocation8 + $0x20] ss:$16 sps:$4 sm:$0xff]  }
 0x2e0   :  { %5413 = vmatprep.subr.bf16.mxu1 %v6284_v0  ;;  %v5494_v0 = vld [vmem:[#allocation8 + $0x44] ss:$16 sps:$4 sm:$0xff]  }
 0x2e3   :  { %5414 = vmatpush3.bf16.msra.mxu1 %v6581_v33  ;;  %v5489_v33 = vld [vmem:[#allocation8 + $0x100] ss:$16 sps:$4 sm:$0xff]  }
 0x2e4   :  { %1430 = vmatprep.subr.bf16.mxu1 %v5482_v12  ;;  %1230 = vmatpush1.bf16.msra.mxu0 %v5489_v33  ;;  %v2979_v12 = vrot.slane %v6756_v1, %v6743_v56 }
 0x2e5   :  { %1231 = vmatprep.subr.bf16.mxu0 %v5497_v16 }
 0x2e6   :  { %5416 = vmatmul.mubr.msk.bf16.vlgmr.msra.gmra.mrb[16].mxu1 %vm486_vm2, %v978_v21 }
 0x2e7   :  { %1431 = vmatpush1.bf16.msra.mxu1 %v5480_v46  ;;  %1462 = vmatprep.mubr.bf16.mxu1 %v6286_v36  ;;  %v2247_v46 = vrot.slane %v730_v57, %v2246_v53 }
 0x2e8   :  { %1432 = vmatprep.subr.bf16.mxu1 %v5488_v13  ;;  %1232 = vmatpush1.bf16.msra.mxu0 %v5495_v18  ;;  %v2491_v13 = vrot.slane %v730_v57, %v2490_v3 }
 0x2e9   :  { %1233 = vmatprep.subr.bf16.mxu0 %v5503_v20  ;;  %v2735_v20 = vrot.slane %v730_v57, %v2734_v7  ;;  %v5527_v57 = vld [vmem:[#allocation8 + $0x10c] ss:$16 sps:$4 sm:$0xff]  }
 0x2eb   :  { %1433 = vmatpush1.bf16.msra.mxu1 %v5486_v31 }
 0x2ec   :  { %1434 = vmatprep.subr.bf16.mxu1 %v5494_v0  ;;  %1234 = vmatpush1.bf16.msra.mxu0 %v5501_v24  ;;  %v5516_v24 = vld [vmem:[#allocation8 + $0x180] ss:$16 sps:$4 sm:$0xff]  }
 0x2ed   :  { %1235 = vmatprep.subr.bf16.mxu0 %v5509_v28 }
 0x2ef   :  { %1435 = vmatpush1.bf16.msra.mxu1 %v5492_v15 }
 0x2f0   :  { %1436 = vmatprep.subr.bf16.mxu1 %v5500_v17  ;;  %1236 = vmatpush1.bf16.msra.mxu0 %v5507_v32 }
 0x2f1   :  { %1266 = vmatprep.subr.bf16.mxu0 %v5515_v35 }
 0x2f3   :  { %1437 = vmatpush1.bf16.msra.mxu1 %v5498_v19 }
 0x2f4   :  { %1438 = vmatprep.subr.bf16.mxu1 %v5506_v22  ;;  %v5513_v22 = vld [vmem:[#allocation8 + $0xc8] ss:$16 sps:$4 sm:$0xff]  }
 0x2f7   :  { %1439 = vmatpush1.bf16.msra.mxu1 %v5504_v26 }
 0x2f8   :  { %1440 = vmatprep.subr.bf16.mxu1 %v5512_v30 }
 0x2fb   :  { %1441 = vmatpush1.bf16.msra.mxu1 %v5510_v34 }
 0x2fc   :  { %1670 = vmatprep.subr.bf16.mxu1 %v5518_v37 }
 0x397   :  { %v970_v38 = vpop.f32.mrb[24].mxu0 }
 0x398   :  { %v5399_v39 = vpop.f32.mrb[25].mxu0 }
 0x399   :  { %v973_v40 = vpop.f32.mrb[26].mxu0  ;;  %v5521_v39 = vld [vmem:[#allocation8 + $0xec] ss:$16 sps:$4 sm:$0xff]  }
 0x39a   :  { %v5400_v41 = vpop.f32.mrb[27].mxu0 }
 0x39d   :  { %v927_v42 = vpop.f32.mrb[12].mxu1 }
 0x39e   :  { %v971_v43 = vadd.f32 %v970_v38, %v927_v42  ;;  %v5381_v44 = vpop.f32.mrb[13].mxu1 }
 0x39f   :  { %v930_v45 = vpop.f32.mrb[14].mxu1 }
 0x3a0   :  { %v974_v47 = vadd.f32 %v973_v40, %v930_v45  ;;  %v5382_v48 = vpop.f32.mrb[15].mxu1  ;;  %v5524_v40 = vld [vmem:[#allocation8 + $0x1a4] ss:$16 sps:$4 sm:$0xff]   ;;  %v3467_v45 = vrot.slane %v6756_v1, %v6749_v59 }
 0x3a1   :  { %v5519_v48 = vld [vmem:[#allocation8 + $0xe8] ss:$16 sps:$4 sm:$0xff]  }
 0x3b9   :  { %v1016_v61 = vpop.f32.mrb[16].mxu1 }
 0x3ba   :  { %v1023_v62 = vadd.f32 %v1016_v61, %v971_v43  ;;  %v5417_v63 = vpop.f32.mrb[17].mxu1  ;;  %v5530_v61 = vld [vmem:[#allocation8 + $0x1c4] ss:$16 sps:$4 sm:$0xff]  }
 0x3bb   :  { %v1019_v2 = vpop.f32.mrb[18].mxu1 }
 0x3bc   :  { %v1025_v4 = vadd.f32 %v4737_v51, %v1023_v62  ;;  %v1024_v5 = vadd.f32 %v1019_v2, %v974_v47  ;;  %v5418_v6 = vpop.f32.mrb[19].mxu1  ;;  %v3711_v47 = vrot.slane %v6756_v1, %v6752_v60  ;;  %v5533_v1 = vld [vmem:[#allocation8 + $0x12c] ss:$16 sps:$4 sm:$0xff]   ;;  %v5536_v2 = vld [vmem:[#allocation8 + $0x1e4] ss:$16 sps:$4 sm:$0xff]  }
 0x3bd   :  { %v5542_v6 = vld [vmem:[#allocation8 + $0x204] ss:$16 sps:$4 sm:$0xff]  }
 0x3be   :  { %v1027_v21 = vmax.f32 %v1025_v4, 0.0  ;;  %v1026_v23 = vadd.f32 %v4737_v51, %v1024_v5  ;;  %v5534_v4 = vld [vmem:[#allocation8 + $0x1e0] ss:$16 sps:$4 sm:$0xff]   ;;  %v5539_v5 = vld [vmem:[#allocation8 + $0x14c] ss:$16 sps:$4 sm:$0xff]  }
 0x3c0   :  { %v1028_v29 = vmax.f32 %v1026_v23, 0.0  ;;  %v1073_v31 = vrot.slane %v1027_v21, %v6746_v58  ;;  %v1039_v14 = vrot.slane %v1027_v21, %v6743_v56  ;;  %v1519_v0 = vrot.slane %v1027_v21, %v6749_v59  ;;  %v5554_v23 = vld [vmem:[#allocation8 + $0x244] ss:$16 sps:$4 sm:$0xff]  }
 0x3c1   :  { %v1763_v33 = vrot.slane %v1027_v21, %v6752_v60  ;;  %v2007_v15 = vrot.slane %v1027_v21, %v2002_v50  ;;  %v2251_v16 = vrot.slane %v1027_v21, %v2246_v53  ;;  %v2495_v17 = vrot.slane %v1027_v21, %v2490_v3  ;;  %v5525_v50 = vld [vmem:[#allocation8 + $0x108] ss:$16 sps:$4 sm:$0xff]   ;;  %v5528_v53 = vld [vmem:[#allocation8 + $0x1c0] ss:$16 sps:$4 sm:$0xff]  }
 0x3c2   :  { %v2983_v18 = vrot.slane %v1028_v29, %v6743_v56  ;;  %v3227_v19 = vrot.slane %v1028_v29, %v6746_v58  ;;  %v1074_v26 = vsel %vm1035_vm3, %v1073_v31, %v1069_v8  ;;  %v1040_v28 = vsel %vm1035_vm3, %v1039_v14, %v1034_v9  ;;  %v5531_v3 = vld [vmem:[#allocation8 + $0x128] ss:$16 sps:$4 sm:$0xff]   ;;  %v5545_v8 = vld [vmem:[#allocation8 + $0x16c] ss:$16 sps:$4 sm:$0xff]   ;;  %v5548_v9 = vld [vmem:[#allocation8 + $0x224] ss:$16 sps:$4 sm:$0xff]  }
 0x3c3   :  { %v6781_v30 = vsel %vm1035_vm3, %v1519_v0, %v1515_v10  ;;  %v6785_v32 = vsel %vm1035_vm3, %v1763_v33, %v1759_v11  ;;  %v3471_v34 = vrot.slane %v1028_v29, %v6749_v59  ;;  %v3715_v35 = vrot.slane %v1028_v29, %v6752_v60  ;;  %v5543_v10 = vld [vmem:[#allocation8 + $0x168] ss:$16 sps:$4 sm:$0xff]   ;;  %v5546_v11 = vld [vmem:[#allocation8 + $0x220] ss:$16 sps:$4 sm:$0xff]   ;;  %v5563_v14 = vld [vmem:[#allocation8 + $0x4c] ss:$16 sps:$4 sm:$0xff]  }
 0x3c4   :  { %v6789_v37 = vpack.c.bf16 %v1074_v26, %v1074_v26  ;;  %v6791_v38 = vpack.c.bf16 %v1040_v28, %v1040_v28  ;;  %v6795_v41 = vsel %vm1035_vm3, %v2007_v15, %v2003_v25  ;;  %v6799_v42 = vsel %vm1035_vm3, %v2251_v16, %v2247_v46  ;;  %v5549_v25 = vld [vmem:[#allocation8 + $0x8] ss:$16 sps:$4 sm:$0xff]   ;;  %v5552_v46 = vld [vmem:[#allocation8 + $0x240] ss:$16 sps:$4 sm:$0xff]   ;;  %v5566_v0 = vld [vmem:[#allocation8 + $0x284] ss:$16 sps:$4 sm:$0xff]  }
 0x3c5   :  { %v6803_v43 = vsel %vm1035_vm3, %v2495_v17, %v2491_v13  ;;  %v2739_v44 = vrot.slane %v1027_v21, %v2734_v7  ;;  %v6819_v54 = vsel %vm1035_vm3, %v2983_v18, %v2979_v12  ;;  %v6823_v55 = vsel %vm1035_vm3, %v3227_v19, %v3223_v27  ;;  %v5540_v7 = vld [vmem:[#allocation8 + $0x200] ss:$16 sps:$4 sm:$0xff]   ;;  %v5551_v21 = vld [vmem:[#allocation8 + $0xc] ss:$16 sps:$4 sm:$0xff]   ;;  %v5560_v13 = vld [vmem:[#allocation8 + $0x264] ss:$16 sps:$4 sm:$0xff]  }
 0x3c6   :  { %4770 = vmatmul.mubr.msk.bf16.vlgmr.msra.gmra.mrb[28].mxu0 %vm1221_vm4, %v6789_v37  ;;  %4796 = vmatmul.mubr.msk.bf16.vlgmr.msra.gmra.mrb[20].mxu1 %vm1221_vm4, %v6791_v38  ;;  %v6829_v62 = vsel %vm1035_vm3, %v3471_v34, %v3467_v45  ;;  %v6833_v63 = vsel %vm1035_vm3, %v3715_v35, %v3711_v47  ;;  %v6837_v12 = vpack.c.bf16 %v6781_v30, %v6781_v30  ;;  %v5557_v27 = vld [vmem:[#allocation8 + $0x2c] ss:$16 sps:$4 sm:$0xff]   ;;  %v5555_v29 = vld [vmem:[#allocation8 + $0x28] ss:$16 sps:$4 sm:$0xff]   ;;  %v5558_v31 = vld [vmem:[#allocation8 + $0x260] ss:$16 sps:$4 sm:$0xff]  }
 0x3c7   :  { %1267 = vmatpush1.bf16.msra.mxu0 %v5513_v22  ;;  %1671 = vmatpush1.bf16.msra.mxu1 %v5516_v24  ;;  %v6815_v51 = vsel %vm1035_vm3, %v2739_v44, %v2735_v20  ;;  %v5561_v33 = vld [vmem:[#allocation8 + $0x48] ss:$16 sps:$4 sm:$0xff]   ;;  %v5564_v15 = vld [vmem:[#allocation8 + $0x280] ss:$16 sps:$4 sm:$0xff]   ;;  %v5569_v16 = vld [vmem:[#allocation8 + $0x6c] ss:$16 sps:$4 sm:$0xff]   ;;  %v6847_v45 = vpack.c.bf16 %v6785_v32, %v6785_v32 }
 0x3c8   :  { %1268 = vmatprep.subr.bf16.mxu0 %v5521_v39  ;;  %1672 = vmatprep.subr.bf16.mxu1 %v5524_v40  ;;  %v5572_v17 = vld [vmem:[#allocation8 + $0x2a4] ss:$16 sps:$4 sm:$0xff]   ;;  %v5567_v18 = vld [vmem:[#allocation8 + $0x68] ss:$16 sps:$4 sm:$0xff]   ;;  %v5570_v19 = vld [vmem:[#allocation8 + $0x2a0] ss:$16 sps:$4 sm:$0xff]  }
 0x3c9   :  { %1298 = vmatprep.mubr.bf16.mxu0 %v6286_v36  ;;  %1702 = vmatprep.mubr.bf16.mxu1 %v6286_v36  ;;  %v5575_v20 = vld [vmem:[#allocation8 + $0x8c] ss:$16 sps:$4 sm:$0xff]   ;;  %v5578_v22 = vld [vmem:[#allocation8 + $0x2c4] ss:$16 sps:$4 sm:$0xff]   ;;  %v5573_v24 = vld [vmem:[#allocation8 + $0x88] ss:$16 sps:$4 sm:$0xff]  }
 0x3ca   :  { %v5576_v26 = vld [vmem:[#allocation8 + $0x2c0] ss:$16 sps:$4 sm:$0xff]   ;;  %v5581_v28 = vld [vmem:[#allocation8 + $0xac] ss:$16 sps:$4 sm:$0xff]   ;;  %v5584_v30 = vld [vmem:[#allocation8 + $0x2e4] ss:$16 sps:$4 sm:$0xff]  }
 0x3cb   :  { %1269 = vmatpush1.bf16.msra.mxu0 %v5519_v48  ;;  %1673 = vmatpush1.bf16.msra.mxu1 %v5522_v49  ;;  %v5579_v34 = vld [vmem:[#allocation8 + $0xa8] ss:$16 sps:$4 sm:$0xff]   ;;  %v5582_v35 = vld [vmem:[#allocation8 + $0x2e0] ss:$16 sps:$4 sm:$0xff]   ;;  %v5590_v39 = vld [vmem:[#allocation8 + $0x304] ss:$16 sps:$4 sm:$0xff]  }
 0x3cc   :  { %1270 = vmatprep.subr.bf16.mxu0 %v5527_v57  ;;  %1674 = vmatprep.subr.bf16.mxu1 %v5530_v61  ;;  %v5585_v40 = vld [vmem:[#allocation8 + $0x188] ss:$16 sps:$4 sm:$0xff]   ;;  %v5588_v44 = vld [vmem:[#allocation8 + $0x300] ss:$16 sps:$4 sm:$0xff]   ;;  %v5593_v47 = vld [vmem:[#allocation8 + $0x1ac] ss:$16 sps:$4 sm:$0xff]  }
 0x3cd   :  { %v5596_v48 = vld [vmem:[#allocation8 + $0x324] ss:$16 sps:$4 sm:$0xff]   ;;  %v5591_v49 = vld [vmem:[#allocation8 + $0x1a8] ss:$16 sps:$4 sm:$0xff]   ;;  %v5594_v57 = vld [vmem:[#allocation8 + $0x320] ss:$16 sps:$4 sm:$0xff]  }
 0x3ce   :  { %v5599_v61 = vld [vmem:[#allocation8 + $0x1cc] ss:$16 sps:$4 sm:$0xff]   ;;  %v5597_v32 = vld [vmem:[#allocation8 + $0x1c8] ss:$16 sps:$4 sm:$0xff]  }
 0x3cf   :  { %1271 = vmatpush1.bf16.msra.mxu0 %v5525_v50  ;;  %1675 = vmatpush1.bf16.msra.mxu1 %v5528_v53  ;;  %v5602_v50 = vld [vmem:[#allocation8 + $0x344] ss:$16 sps:$4 sm:$0xff]   ;;  %v5600_v53 = vld [vmem:[#allocation8 + $0x340] ss:$16 sps:$4 sm:$0xff]  }
 0x3d0   :  { %1272 = vmatprep.subr.bf16.mxu0 %v5533_v1  ;;  %1676 = vmatprep.subr.bf16.mxu1 %v5536_v2  ;;  %v5608_v1 = vld [vmem:[#allocation8 + $0x364] ss:$16 sps:$4 sm:$0xff]   ;;  %v5603_v2 = vld [vmem:[#allocation8 + $0x1e8] ss:$16 sps:$4 sm:$0xff]  }
 0x3d3   :  { %1273 = vmatpush1.bf16.msra.mxu0 %v5531_v3  ;;  %1677 = vmatpush1.bf16.msra.mxu1 %v5534_v4  ;;  %v5606_v3 = vld [vmem:[#allocation8 + $0x360] ss:$16 sps:$4 sm:$0xff]   ;;  %v5611_v4 = vld [vmem:[#allocation8 + $0x20c] ss:$16 sps:$4 sm:$0xff]  }
 0x3d4   :  { %1274 = vmatprep.subr.bf16.mxu0 %v5539_v5  ;;  %1678 = vmatprep.subr.bf16.mxu1 %v5542_v6  ;;  %v5614_v5 = vld [vmem:[#allocation8 + $0x384] ss:$16 sps:$4 sm:$0xff]   ;;  %v5609_v6 = vld [vmem:[#allocation8 + $0x208] ss:$16 sps:$4 sm:$0xff]  }
 0x3d7   :  { %1275 = vmatpush1.bf16.msra.mxu0 %v5537_v52  ;;  %1679 = vmatpush1.bf16.msra.mxu1 %v5540_v7  ;;  %v5612_v52 = vld [vmem:[#allocation8 + $0x380] ss:$16 sps:$4 sm:$0xff]   ;;  %v5617_v7 = vld [vmem:[#allocation8 + $0x22c] ss:$16 sps:$4 sm:$0xff]  }
 0x3d8   :  { %1276 = vmatprep.subr.bf16.mxu0 %v5545_v8  ;;  %1680 = vmatprep.subr.bf16.mxu1 %v5548_v9  ;;  %v5620_v8 = vld [vmem:[#allocation8 + $0x3a4] ss:$16 sps:$4 sm:$0xff]   ;;  %v5615_v9 = vld [vmem:[#allocation8 + $0x228] ss:$16 sps:$4 sm:$0xff]  }
 0x3db   :  { %1277 = vmatpush1.bf16.msra.mxu0 %v5543_v10  ;;  %1681 = vmatpush1.bf16.msra.mxu1 %v5546_v11  ;;  %v5618_v10 = vld [vmem:[#allocation8 + $0x3a0] ss:$16 sps:$4 sm:$0xff]   ;;  %v5623_v11 = vld [vmem:[#allocation8 + $0x24c] ss:$16 sps:$4 sm:$0xff]  }
 0x3dc   :  { %1471 = vmatprep.subr.bf16.mxu0 %v5551_v21  ;;  %1914 = vmatprep.subr.bf16.mxu1 %v5554_v23  ;;  %v5626_v21 = vld [vmem:[#allocation8 + $0x3c4] ss:$16 sps:$4 sm:$0xff]   ;;  %v5621_v23 = vld [vmem:[#allocation8 + $0x248] ss:$16 sps:$4 sm:$0xff]  }
 0x3de   :  { %4771 = vmatmul.mubr.msk.bf16.vlgmr.msra.gmra.mrb[32].mxu0 %vm1221_vm4, %v6789_v37  ;;  %4822 = vmatmul.mubr.msk.bf16.vlgmr.msra.gmra.mrb[24].mxu1 %vm1221_vm4, %v6837_v12  ;;  %v5587_v37 = vld [vmem:[#allocation8 + $0x18c] ss:$16 sps:$4 sm:$0xff]  }
 0x3df   :  { %1472 = vmatpush1.bf16.msra.mxu0 %v5549_v25  ;;  %1915 = vmatpush1.bf16.msra.mxu1 %v5552_v46  ;;  %v5624_v25 = vld [vmem:[#allocation8 + $0x3c0] ss:$16 sps:$4 sm:$0xff]   ;;  %v6857_v46 = vpack.c.bf16 %v6795_v41, %v6795_v41  ;;  %v5633_v41 = vld [vmem:[#allocation8 + $0x288] ss:$16 sps:$4 sm:$0xff]  }
 0x3e0   :  { %1473 = vmatprep.subr.bf16.mxu0 %v5557_v27  ;;  %1916 = vmatprep.subr.bf16.mxu1 %v5560_v13  ;;  %v5629_v27 = vld [vmem:[#allocation8 + $0x26c] ss:$16 sps:$4 sm:$0xff]   ;;  %v5632_v13 = vld [vmem:[#allocation8 + $0x3e4] ss:$16 sps:$4 sm:$0xff]  }
 0x3e1   :  { %1503 = vmatprep.mubr.bf16.mxu0 %v6286_v36  ;;  %1946 = vmatprep.mubr.bf16.mxu1 %v6286_v36 }
 0x3e3   :  { %1474 = vmatpush1.bf16.msra.mxu0 %v5555_v29  ;;  %1917 = vmatpush1.bf16.msra.mxu1 %v5558_v31  ;;  %v5627_v29 = vld [vmem:[#allocation8 + $0x268] ss:$16 sps:$4 sm:$0xff]   ;;  %v5630_v31 = vld [vmem:[#allocation8 + $0x3e0] ss:$16 sps:$4 sm:$0xff]  }
 0x3e4   :  { %1475 = vmatprep.subr.bf16.mxu0 %v5563_v14  ;;  %1918 = vmatprep.subr.bf16.mxu1 %v5566_v0  ;;  %v5635_v14 = vld [vmem:[#allocation8 + $0x28c] ss:$16 sps:$4 sm:$0xff]   ;;  %v5638_v0 = vld [vmem:[#allocation8 + $0x404] ss:$16 sps:$4 sm:$0xff]  }
 0x3e7   :  { %1476 = vmatpush1.bf16.msra.mxu0 %v5561_v33  ;;  %1919 = vmatpush1.bf16.msra.mxu1 %v5564_v15  ;;  %v5636_v33 = vld [vmem:[#allocation8 + $0x400] ss:$16 sps:$4 sm:$0xff]   ;;  %v5644_v15 = vld [vmem:[#allocation8 + $0x424] ss:$16 sps:$4 sm:$0xff]  }
 0x3e8   :  { %1477 = vmatprep.subr.bf16.mxu0 %v5569_v16  ;;  %1920 = vmatprep.subr.bf16.mxu1 %v5572_v17  ;;  %v5639_v16 = vld [vmem:[#allocation8 + $0x2a8] ss:$16 sps:$4 sm:$0xff]   ;;  %v5642_v17 = vld [vmem:[#allocation8 + $0x420] ss:$16 sps:$4 sm:$0xff]  }
 0x3eb   :  { %1478 = vmatpush1.bf16.msra.mxu0 %v5567_v18  ;;  %1921 = vmatpush1.bf16.msra.mxu1 %v5570_v19  ;;  %v5647_v18 = vld [vmem:[#allocation8 + $0x2cc] ss:$16 sps:$4 sm:$0xff]   ;;  %v5650_v19 = vld [vmem:[#allocation8 + $0x444] ss:$16 sps:$4 sm:$0xff]  }
 0x3ec   :  { %1479 = vmatprep.subr.bf16.mxu0 %v5575_v20  ;;  %1922 = vmatprep.subr.bf16.mxu1 %v5578_v22  ;;  %v5645_v20 = vld [vmem:[#allocation8 + $0x2c8] ss:$16 sps:$4 sm:$0xff]   ;;  %v5648_v22 = vld [vmem:[#allocation8 + $0x440] ss:$16 sps:$4 sm:$0xff]  }
 0x3ef   :  { %1480 = vmatpush1.bf16.msra.mxu0 %v5573_v24  ;;  %1923 = vmatpush1.bf16.msra.mxu1 %v5576_v26  ;;  %v5653_v24 = vld [vmem:[#allocation8 + $0x2ec] ss:$16 sps:$4 sm:$0xff]   ;;  %v5656_v26 = vld [vmem:[#allocation8 + $0x464] ss:$16 sps:$4 sm:$0xff]  }
 0x3f0   :  { %1481 = vmatprep.subr.bf16.mxu0 %v5581_v28  ;;  %1924 = vmatprep.subr.bf16.mxu1 %v5584_v30  ;;  %v5651_v28 = vld [vmem:[#allocation8 + $0x2e8] ss:$16 sps:$4 sm:$0xff]   ;;  %v5654_v30 = vld [vmem:[#allocation8 + $0x460] ss:$16 sps:$4 sm:$0xff]  }
 0x3f3   :  { %1482 = vmatpush1.bf16.msra.mxu0 %v5579_v34  ;;  %1925 = vmatpush1.bf16.msra.mxu1 %v5582_v35  ;;  %v5659_v34 = vld [vmem:[#allocation8 + $0x30c] ss:$16 sps:$4 sm:$0xff]   ;;  %v5662_v35 = vld [vmem:[#allocation8 + $0x484] ss:$16 sps:$4 sm:$0xff]  }
 0x3f4   :  { %1711 = vmatprep.subr.bf16.mxu0 %v5587_v37  ;;  %2158 = vmatprep.subr.bf16.mxu1 %v5590_v39  ;;  %v5657_v37 = vld [vmem:[#allocation8 + $0x308] ss:$16 sps:$4 sm:$0xff]   ;;  %v5660_v39 = vld [vmem:[#allocation8 + $0x480] ss:$16 sps:$4 sm:$0xff]  }
 0x3f6   :  { %4797 = vmatmul.mubr.msk.bf16.vlgmr.msra.gmra.mrb[36].mxu0 %vm1221_vm4, %v6791_v38  ;;  %4848 = vmatmul.mubr.msk.bf16.vlgmr.msra.gmra.mrb[28].mxu1 %vm1221_vm4, %v6847_v45  ;;  %v5605_v38 = vld [vmem:[#allocation8 + $0x1ec] ss:$16 sps:$4 sm:$0xff]  }
 0x3f7   :  { %1712 = vmatpush1.bf16.msra.mxu0 %v5585_v40  ;;  %2159 = vmatpush1.bf16.msra.mxu1 %v5588_v44  ;;  %v6867_v40 = vpack.c.bf16 %v6799_v42, %v6799_v42  ;;  %v5665_v44 = vld [vmem:[#allocation8 + $0x32c] ss:$16 sps:$4 sm:$0xff]   ;;  %v5669_v42 = vld [vmem:[#allocation8 + $0x348] ss:$16 sps:$4 sm:$0xff]  }
 0x3f8   :  { %1713 = vmatprep.subr.bf16.mxu0 %v5593_v47  ;;  %2160 = vmatprep.subr.bf16.mxu1 %v5596_v48  ;;  %v5668_v47 = vld [vmem:[#allocation8 + $0x4a4] ss:$16 sps:$4 sm:$0xff]   ;;  %v5663_v48 = vld [vmem:[#allocation8 + $0x328] ss:$16 sps:$4 sm:$0xff]  }
 0x3f9   :  { %1743 = vmatprep.mubr.bf16.mxu0 %v6286_v36  ;;  %2190 = vmatprep.mubr.bf16.mxu1 %v6286_v36 }
 0x3fb   :  { %1714 = vmatpush1.bf16.msra.mxu0 %v5591_v49  ;;  %2161 = vmatpush1.bf16.msra.mxu1 %v5594_v57  ;;  %v5666_v49 = vld [vmem:[#allocation8 + $0x4a0] ss:$16 sps:$4 sm:$0xff]   ;;  %v5671_v57 = vld [vmem:[#allocation8 + $0x34c] ss:$16 sps:$4 sm:$0xff]  }
 0x3fc   :  { %1715 = vmatprep.subr.bf16.mxu0 %v5599_v61  ;;  %2162 = vmatprep.subr.bf16.mxu1 %v5602_v50  ;;  %v5674_v61 = vld [vmem:[#allocation8 + $0x4c4] ss:$16 sps:$4 sm:$0xff]   ;;  %v5672_v50 = vld [vmem:[#allocation8 + $0x4c0] ss:$16 sps:$4 sm:$0xff]  }
 0x3ff   :  { %1716 = vmatpush1.bf16.msra.mxu0 %v5597_v32  ;;  %2163 = vmatpush1.bf16.msra.mxu1 %v5600_v53  ;;  %v5680_v32 = vld [vmem:[#allocation8 + $0x4e4] ss:$16 sps:$4 sm:$0xff]   ;;  %v5675_v53 = vld [vmem:[#allocation8 + $0x368] ss:$16 sps:$4 sm:$0xff]  }
 0x400   :  { %1717 = vmatprep.subr.bf16.mxu0 %v5605_v38  ;;  %2164 = vmatprep.subr.bf16.mxu1 %v5608_v1  ;;  %v5678_v38 = vld [vmem:[#allocation8 + $0x4e0] ss:$16 sps:$4 sm:$0xff]   ;;  %v5683_v1 = vld [vmem:[#allocation8 + $0x38c] ss:$16 sps:$4 sm:$0xff]  }
 0x403   :  { %1718 = vmatpush1.bf16.msra.mxu0 %v5603_v2  ;;  %2165 = vmatpush1.bf16.msra.mxu1 %v5606_v3  ;;  %v5686_v2 = vld [vmem:[#allocation8 + $0x504] ss:$16 sps:$4 sm:$0xff]   ;;  %v5681_v3 = vld [vmem:[#allocation8 + $0x388] ss:$16 sps:$4 sm:$0xff]  }
 0x404   :  { %1719 = vmatprep.subr.bf16.mxu0 %v5611_v4  ;;  %2166 = vmatprep.subr.bf16.mxu1 %v5614_v5  ;;  %v5684_v4 = vld [vmem:[#allocation8 + $0x500] ss:$16 sps:$4 sm:$0xff]   ;;  %v5689_v5 = vld [vmem:[#allocation8 + $0x3ac] ss:$16 sps:$4 sm:$0xff]  }
 0x407   :  { %1720 = vmatpush1.bf16.msra.mxu0 %v5609_v6  ;;  %2167 = vmatpush1.bf16.msra.mxu1 %v5612_v52  ;;  %v5692_v6 = vld [vmem:[#allocation8 + $0x524] ss:$16 sps:$4 sm:$0xff]   ;;  %v5687_v52 = vld [vmem:[#allocation8 + $0x3a8] ss:$16 sps:$4 sm:$0xff]  }
 0x408   :  { %1721 = vmatprep.subr.bf16.mxu0 %v5617_v7  ;;  %2168 = vmatprep.subr.bf16.mxu1 %v5620_v8  ;;  %v5690_v7 = vld [vmem:[#allocation8 + $0x520] ss:$16 sps:$4 sm:$0xff]   ;;  %v5695_v8 = vld [vmem:[#allocation8 + $0x3cc] ss:$16 sps:$4 sm:$0xff]  }
 0x40b   :  { %1722 = vmatpush1.bf16.msra.mxu0 %v5615_v9  ;;  %2169 = vmatpush1.bf16.msra.mxu1 %v5618_v10  ;;  %v5698_v9 = vld [vmem:[#allocation8 + $0x544] ss:$16 sps:$4 sm:$0xff]   ;;  %v5693_v10 = vld [vmem:[#allocation8 + $0x3c8] ss:$16 sps:$4 sm:$0xff]  }
 0x40c   :  { %1955 = vmatprep.subr.bf16.mxu0 %v5623_v11  ;;  %2402 = vmatprep.subr.bf16.mxu1 %v5626_v21  ;;  %v5696_v11 = vld [vmem:[#allocation8 + $0x540] ss:$16 sps:$4 sm:$0xff]   ;;  %v6877_v21 = vpack.c.bf16 %v6803_v43, %v6803_v43  ;;  %v5705_v43 = vld [vmem:[#allocation8 + $0x408] ss:$16 sps:$4 sm:$0xff]  }
 0x40e   :  { %4823 = vmatmul.mubr.msk.bf16.vlgmr.msra.gmra.mrb[40].mxu0 %vm1221_vm4, %v6837_v12  ;;  %4874 = vmatmul.mubr.msk.bf16.vlgmr.msra.gmra.mrb[32].mxu1 %vm1221_vm4, %v6857_v46  ;;  %v5641_v12 = vld [vmem:[#allocation8 + $0x2ac] ss:$16 sps:$4 sm:$0xff]  }
 0x40f   :  { %1956 = vmatpush1.bf16.msra.mxu0 %v5621_v23  ;;  %2403 = vmatpush1.bf16.msra.mxu1 %v5624_v25  ;;  %v5701_v23 = vld [vmem:[#allocation8 + $0x3ec] ss:$16 sps:$4 sm:$0xff]   ;;  %v5704_v25 = vld [vmem:[#allocation8 + $0x564] ss:$16 sps:$4 sm:$0xff]  }
 0x410   :  { %1957 = vmatprep.subr.bf16.mxu0 %v5629_v27  ;;  %2404 = vmatprep.subr.bf16.mxu1 %v5632_v13  ;;  %v5699_v27 = vld [vmem:[#allocation8 + $0x3e8] ss:$16 sps:$4 sm:$0xff]   ;;  %v5702_v13 = vld [vmem:[#allocation8 + $0x560] ss:$16 sps:$4 sm:$0xff]  }
 0x411   :  { %1987 = vmatprep.mubr.bf16.mxu0 %v6286_v36  ;;  %2434 = vmatprep.mubr.bf16.mxu1 %v6286_v36 }
 0x413   :  { %1958 = vmatpush1.bf16.msra.mxu0 %v5627_v29  ;;  %2405 = vmatpush1.bf16.msra.mxu1 %v5630_v31  ;;  %v5707_v29 = vld [vmem:[#allocation8 + $0x40c] ss:$16 sps:$4 sm:$0xff]   ;;  %v5710_v31 = vld [vmem:[#allocation8 + $0x584] ss:$16 sps:$4 sm:$0xff]  }
 0x414   :  { %1959 = vmatprep.subr.bf16.mxu0 %v5635_v14  ;;  %2406 = vmatprep.subr.bf16.mxu1 %v5638_v0  ;;  %v5708_v14 = vld [vmem:[#allocation8 + $0x580] ss:$16 sps:$4 sm:$0xff]   ;;  %v5716_v0 = vld [vmem:[#allocation8 + $0x5a4] ss:$16 sps:$4 sm:$0xff]  }
 0x417   :  { %1960 = vmatpush1.bf16.msra.mxu0 %v5633_v41  ;;  %2407 = vmatpush1.bf16.msra.mxu1 %v5636_v33  ;;  %v5711_v41 = vld [vmem:[#allocation8 + $0x428] ss:$16 sps:$4 sm:$0xff]   ;;  %v5714_v33 = vld [vmem:[#allocation8 + $0x5a0] ss:$16 sps:$4 sm:$0xff]  }
 0x418   :  { %1961 = vmatprep.subr.bf16.mxu0 %v5641_v12  ;;  %2408 = vmatprep.subr.bf16.mxu1 %v5644_v15  ;;  %v5719_v12 = vld [vmem:[#allocation8 + $0x44c] ss:$16 sps:$4 sm:$0xff]   ;;  %v5722_v15 = vld [vmem:[#allocation8 + $0x5c4] ss:$16 sps:$4 sm:$0xff]  }
 0x41b   :  { %1962 = vmatpush1.bf16.msra.mxu0 %v5639_v16  ;;  %2409 = vmatpush1.bf16.msra.mxu1 %v5642_v17  ;;  %v5717_v16 = vld [vmem:[#allocation8 + $0x448] ss:$16 sps:$4 sm:$0xff]   ;;  %v5720_v17 = vld [vmem:[#allocation8 + $0x5c0] ss:$16 sps:$4 sm:$0xff]  }
 0x41c   :  { %1963 = vmatprep.subr.bf16.mxu0 %v5647_v18  ;;  %2410 = vmatprep.subr.bf16.mxu1 %v5650_v19  ;;  %v5725_v18 = vld [vmem:[#allocation8 + $0x46c] ss:$16 sps:$4 sm:$0xff]   ;;  %v5728_v19 = vld [vmem:[#allocation8 + $0x5e4] ss:$16 sps:$4 sm:$0xff]  }
 0x41f   :  { %1964 = vmatpush1.bf16.msra.mxu0 %v5645_v20  ;;  %2411 = vmatpush1.bf16.msra.mxu1 %v5648_v22  ;;  %v5723_v20 = vld [vmem:[#allocation8 + $0x468] ss:$16 sps:$4 sm:$0xff]   ;;  %v5726_v22 = vld [vmem:[#allocation8 + $0x5e0] ss:$16 sps:$4 sm:$0xff]  }
 0x420   :  { %1965 = vmatprep.subr.bf16.mxu0 %v5653_v24  ;;  %2412 = vmatprep.subr.bf16.mxu1 %v5656_v26  ;;  %v5731_v24 = vld [vmem:[#allocation8 + $0x48c] ss:$16 sps:$4 sm:$0xff]   ;;  %v5734_v26 = vld [vmem:[#allocation8 + $0x604] ss:$16 sps:$4 sm:$0xff]  }
 0x423   :  { %1966 = vmatpush1.bf16.msra.mxu0 %v5651_v28  ;;  %2413 = vmatpush1.bf16.msra.mxu1 %v5654_v30  ;;  %v5729_v28 = vld [vmem:[#allocation8 + $0x488] ss:$16 sps:$4 sm:$0xff]   ;;  %v5732_v30 = vld [vmem:[#allocation8 + $0x600] ss:$16 sps:$4 sm:$0xff]  }
 0x424   :  { %2199 = vmatprep.subr.bf16.mxu0 %v5659_v34  ;;  %2646 = vmatprep.subr.bf16.mxu1 %v5662_v35  ;;  %v6887_v34 = vpack.c.bf16 %v6815_v51, %v6815_v51  ;;  %v5737_v35 = vld [vmem:[#allocation8 + $0x4ac] ss:$16 sps:$4 sm:$0xff]   ;;  %v5741_v51 = vld [vmem:[#allocation8 + $0x4c8] ss:$16 sps:$4 sm:$0xff]  }
 0x426   :  { %4849 = vmatmul.mubr.msk.bf16.vlgmr.msra.gmra.mrb[44].mxu0 %vm1221_vm4, %v6847_v45  ;;  %4900 = vmatmul.mubr.msk.bf16.vlgmr.msra.gmra.mrb[36].mxu1 %vm1221_vm4, %v6867_v40  ;;  %v5677_v45 = vld [vmem:[#allocation8 + $0x36c] ss:$16 sps:$4 sm:$0xff]  }
 0x427   :  { %2200 = vmatpush1.bf16.msra.mxu0 %v5657_v37  ;;  %2647 = vmatpush1.bf16.msra.mxu1 %v5660_v39  ;;  %v5740_v37 = vld [vmem:[#allocation8 + $0x624] ss:$16 sps:$4 sm:$0xff]   ;;  %v5735_v39 = vld [vmem:[#allocation8 + $0x4a8] ss:$16 sps:$4 sm:$0xff]  }
 0x428   :  { %2201 = vmatprep.subr.bf16.mxu0 %v5665_v44  ;;  %2648 = vmatprep.subr.bf16.mxu1 %v5668_v47  ;;  %v5738_v44 = vld [vmem:[#allocation8 + $0x620] ss:$16 sps:$4 sm:$0xff]   ;;  %v5743_v47 = vld [vmem:[#allocation8 + $0x4cc] ss:$16 sps:$4 sm:$0xff]  }
 0x429   :  { %2231 = vmatprep.mubr.bf16.mxu0 %v6286_v36  ;;  %2678 = vmatprep.mubr.bf16.mxu1 %v6286_v36 }
 0x42b   :  { %2202 = vmatpush1.bf16.msra.mxu0 %v5663_v48  ;;  %2649 = vmatpush1.bf16.msra.mxu1 %v5666_v49  ;;  %v5746_v48 = vld [vmem:[#allocation8 + $0x644] ss:$16 sps:$4 sm:$0xff]   ;;  %v5744_v49 = vld [vmem:[#allocation8 + $0x640] ss:$16 sps:$4 sm:$0xff]  }
 0x42c   :  { %2203 = vmatprep.subr.bf16.mxu0 %v5671_v57  ;;  %2650 = vmatprep.subr.bf16.mxu1 %v5674_v61  ;;  %v5752_v57 = vld [vmem:[#allocation8 + $0x664] ss:$16 sps:$4 sm:$0xff]   ;;  %v5747_v61 = vld [vmem:[#allocation8 + $0x4e8] ss:$16 sps:$4 sm:$0xff]  }
 0x42f   :  { %2204 = vmatpush1.bf16.msra.mxu0 %v5669_v42  ;;  %2651 = vmatpush1.bf16.msra.mxu1 %v5672_v50  ;;  %v5750_v42 = vld [vmem:[#allocation8 + $0x660] ss:$16 sps:$4 sm:$0xff]   ;;  %v5755_v50 = vld [vmem:[#allocation8 + $0x50c] ss:$16 sps:$4 sm:$0xff]  }
 0x430   :  { %2205 = vmatprep.subr.bf16.mxu0 %v5677_v45  ;;  %2652 = vmatprep.subr.bf16.mxu1 %v5680_v32  ;;  %v5758_v45 = vld [vmem:[#allocation8 + $0x684] ss:$16 sps:$4 sm:$0xff]   ;;  %v5753_v32 = vld [vmem:[#allocation8 + $0x508] ss:$16 sps:$4 sm:$0xff]  }
 0x433   :  { %2206 = vmatpush1.bf16.msra.mxu0 %v5675_v53  ;;  %2653 = vmatpush1.bf16.msra.mxu1 %v5678_v38  ;;  %v5756_v53 = vld [vmem:[#allocation8 + $0x680] ss:$16 sps:$4 sm:$0xff]   ;;  %v5761_v38 = vld [vmem:[#allocation8 + $0x52c] ss:$16 sps:$4 sm:$0xff]  }
 0x434   :  { %2207 = vmatprep.subr.bf16.mxu0 %v5683_v1  ;;  %2654 = vmatprep.subr.bf16.mxu1 %v5686_v2  ;;  %v5764_v1 = vld [vmem:[#allocation8 + $0x6a4] ss:$16 sps:$4 sm:$0xff]   ;;  %v5759_v2 = vld [vmem:[#allocation8 + $0x528] ss:$16 sps:$4 sm:$0xff]  }
 0x437   :  { %2208 = vmatpush1.bf16.msra.mxu0 %v5681_v3  ;;  %2655 = vmatpush1.bf16.msra.mxu1 %v5684_v4  ;;  %v5762_v3 = vld [vmem:[#allocation8 + $0x6a0] ss:$16 sps:$4 sm:$0xff]   ;;  %v5767_v4 = vld [vmem:[#allocation8 + $0x54c] ss:$16 sps:$4 sm:$0xff]  }
 0x438   :  { %2209 = vmatprep.subr.bf16.mxu0 %v5689_v5  ;;  %2656 = vmatprep.subr.bf16.mxu1 %v5692_v6  ;;  %v5770_v5 = vld [vmem:[#allocation8 + $0x6c4] ss:$16 sps:$4 sm:$0xff]   ;;  %v5765_v6 = vld [vmem:[#allocation8 + $0x548] ss:$16 sps:$4 sm:$0xff]  }
 0x43b   :  { %2210 = vmatpush1.bf16.msra.mxu0 %v5687_v52  ;;  %2657 = vmatpush1.bf16.msra.mxu1 %v5690_v7  ;;  %v5768_v52 = vld [vmem:[#allocation8 + $0x6c0] ss:$16 sps:$4 sm:$0xff]   ;;  %v6897_v7 = vpack.c.bf16 %v6819_v54, %v6819_v54  ;;  %v5777_v54 = vld [vmem:[#allocation8 + $0x588] ss:$16 sps:$4 sm:$0xff]  }
 0x43c   :  { %2443 = vmatprep.subr.bf16.mxu0 %v5695_v8  ;;  %2890 = vmatprep.subr.bf16.mxu1 %v5698_v9  ;;  %v5773_v8 = vld [vmem:[#allocation8 + $0x56c] ss:$16 sps:$4 sm:$0xff]   ;;  %v5776_v9 = vld [vmem:[#allocation8 + $0x6e4] ss:$16 sps:$4 sm:$0xff]  }
 0x43e   :  { %4875 = vmatmul.mubr.msk.bf16.vlgmr.msra.gmra.mrb[48].mxu0 %vm1221_vm4, %v6857_v46  ;;  %4926 = vmatmul.mubr.msk.bf16.vlgmr.msra.gmra.mrb[40].mxu1 %vm1221_vm4, %v6877_v21  ;;  %v5713_v46 = vld [vmem:[#allocation8 + $0x42c] ss:$16 sps:$4 sm:$0xff]  }
 0x43f   :  { %2444 = vmatpush1.bf16.msra.mxu0 %v5693_v10  ;;  %2891 = vmatpush1.bf16.msra.mxu1 %v5696_v11  ;;  %v5771_v10 = vld [vmem:[#allocation8 + $0x568] ss:$16 sps:$4 sm:$0xff]   ;;  %v5774_v11 = vld [vmem:[#allocation8 + $0x6e0] ss:$16 sps:$4 sm:$0xff]  }
 0x440   :  { %2445 = vmatprep.subr.bf16.mxu0 %v5701_v23  ;;  %2892 = vmatprep.subr.bf16.mxu1 %v5704_v25  ;;  %v5779_v23 = vld [vmem:[#allocation8 + $0x58c] ss:$16 sps:$4 sm:$0xff]   ;;  %v5782_v25 = vld [vmem:[#allocation8 + $0x704] ss:$16 sps:$4 sm:$0xff]  }
 0x441   :  { %2475 = vmatprep.mubr.bf16.mxu0 %v6286_v36  ;;  %2922 = vmatprep.mubr.bf16.mxu1 %v6286_v36 }
 0x443   :  { %2446 = vmatpush1.bf16.msra.mxu0 %v5699_v27  ;;  %2893 = vmatpush1.bf16.msra.mxu1 %v5702_v13  ;;  %v5780_v27 = vld [vmem:[#allocation8 + $0x700] ss:$16 sps:$4 sm:$0xff]   ;;  %v5788_v13 = vld [vmem:[#allocation8 + $0x724] ss:$16 sps:$4 sm:$0xff]  }
 0x444   :  { %2447 = vmatprep.subr.bf16.mxu0 %v5707_v29  ;;  %2894 = vmatprep.subr.bf16.mxu1 %v5710_v31  ;;  %v5783_v29 = vld [vmem:[#allocation8 + $0x5a8] ss:$16 sps:$4 sm:$0xff]   ;;  %v5786_v31 = vld [vmem:[#allocation8 + $0x720] ss:$16 sps:$4 sm:$0xff]  }
 0x447   :  { %2448 = vmatpush1.bf16.msra.mxu0 %v5705_v43  ;;  %2895 = vmatpush1.bf16.msra.mxu1 %v5708_v14  ;;  %v5791_v43 = vld [vmem:[#allocation8 + $0x5cc] ss:$16 sps:$4 sm:$0xff]   ;;  %v5794_v14 = vld [vmem:[#allocation8 + $0x744] ss:$16 sps:$4 sm:$0xff]  }
 0x448   :  { %2449 = vmatprep.subr.bf16.mxu0 %v5713_v46  ;;  %2896 = vmatprep.subr.bf16.mxu1 %v5716_v0  ;;  %v5789_v46 = vld [vmem:[#allocation8 + $0x5c8] ss:$16 sps:$4 sm:$0xff]   ;;  %v5792_v0 = vld [vmem:[#allocation8 + $0x740] ss:$16 sps:$4 sm:$0xff]  }
 0x44b   :  { %2450 = vmatpush1.bf16.msra.mxu0 %v5711_v41  ;;  %2897 = vmatpush1.bf16.msra.mxu1 %v5714_v33  ;;  %v5797_v41 = vld [vmem:[#allocation8 + $0x5ec] ss:$16 sps:$4 sm:$0xff]   ;;  %v5800_v33 = vld [vmem:[#allocation8 + $0x764] ss:$16 sps:$4 sm:$0xff]  }
 0x44c   :  { %2451 = vmatprep.subr.bf16.mxu0 %v5719_v12  ;;  %2898 = vmatprep.subr.bf16.mxu1 %v5722_v15  ;;  %v5795_v12 = vld [vmem:[#allocation8 + $0x5e8] ss:$16 sps:$4 sm:$0xff]   ;;  %v5798_v15 = vld [vmem:[#allocation8 + $0x760] ss:$16 sps:$4 sm:$0xff]  }
 0x44f   :  { %2452 = vmatpush1.bf16.msra.mxu0 %v5717_v16  ;;  %2899 = vmatpush1.bf16.msra.mxu1 %v5720_v17  ;;  %v5803_v16 = vld [vmem:[#allocation8 + $0x60c] ss:$16 sps:$4 sm:$0xff]   ;;  %v5806_v17 = vld [vmem:[#allocation8 + $0x784] ss:$16 sps:$4 sm:$0xff]  }
 0x450   :  { %2453 = vmatprep.subr.bf16.mxu0 %v5725_v18  ;;  %2900 = vmatprep.subr.bf16.mxu1 %v5728_v19  ;;  %v5801_v18 = vld [vmem:[#allocation8 + $0x608] ss:$16 sps:$4 sm:$0xff]   ;;  %v5804_v19 = vld [vmem:[#allocation8 + $0x780] ss:$16 sps:$4 sm:$0xff]  }
 0x453   :  { %2454 = vmatpush1.bf16.msra.mxu0 %v5723_v20  ;;  %2901 = vmatpush1.bf16.msra.mxu1 %v5726_v22  ;;  %v6907_v20 = vpack.c.bf16 %v6823_v55, %v6823_v55  ;;  %v5809_v22 = vld [vmem:[#allocation8 + $0x62c] ss:$16 sps:$4 sm:$0xff]   ;;  %v5813_v55 = vld [vmem:[#allocation8 + $0x648] ss:$16 sps:$4 sm:$0xff]  }
 0x454   :  { %2687 = vmatprep.subr.bf16.mxu0 %v5731_v24  ;;  %3134 = vmatprep.subr.bf16.mxu1 %v5734_v26  ;;  %v5812_v24 = vld [vmem:[#allocation8 + $0x7a4] ss:$16 sps:$4 sm:$0xff]   ;;  %v5807_v26 = vld [vmem:[#allocation8 + $0x628] ss:$16 sps:$4 sm:$0xff]  }
 0x456   :  { %4901 = vmatmul.mubr.msk.bf16.vlgmr.msra.gmra.mrb[52].mxu0 %vm1221_vm4, %v6867_v40  ;;  %4952 = vmatmul.mubr.msk.bf16.vlgmr.msra.gmra.mrb[44].mxu1 %vm1221_vm4, %v6887_v34  ;;  %v5749_v40 = vld [vmem:[#allocation8 + $0x4ec] ss:$16 sps:$4 sm:$0xff]  }
 0x457   :  { %2688 = vmatpush1.bf16.msra.mxu0 %v5729_v28  ;;  %3135 = vmatpush1.bf16.msra.mxu1 %v5732_v30  ;;  %v5810_v28 = vld [vmem:[#allocation8 + $0x7a0] ss:$16 sps:$4 sm:$0xff]   ;;  %v5815_v30 = vld [vmem:[#allocation8 + $0x64c] ss:$16 sps:$4 sm:$0xff]  }
 0x458   :  { %2689 = vmatprep.subr.bf16.mxu0 %v5737_v35  ;;  %3136 = vmatprep.subr.bf16.mxu1 %v5740_v37  ;;  %v5818_v35 = vld [vmem:[#allocation8 + $0x7c4] ss:$16 sps:$4 sm:$0xff]   ;;  %v5816_v37 = vld [vmem:[#allocation8 + $0x7c0] ss:$16 sps:$4 sm:$0xff]  }
 0x459   :  { %2719 = vmatprep.mubr.bf16.mxu0 %v6286_v36  ;;  %3166 = vmatprep.mubr.bf16.mxu1 %v6286_v36 }
 0x45b   :  { %2690 = vmatpush1.bf16.msra.mxu0 %v5735_v39  ;;  %3137 = vmatpush1.bf16.msra.mxu1 %v5738_v44  ;;  %v5824_v39 = vld [vmem:[#allocation8 + $0x7e4] ss:$16 sps:$4 sm:$0xff]   ;;  %v5819_v44 = vld [vmem:[#allocation8 + $0x668] ss:$16 sps:$4 sm:$0xff]  }
 0x45c   :  { %2691 = vmatprep.subr.bf16.mxu0 %v5743_v47  ;;  %3138 = vmatprep.subr.bf16.mxu1 %v5746_v48  ;;  %v5822_v47 = vld [vmem:[#allocation8 + $0x7e0] ss:$16 sps:$4 sm:$0xff]   ;;  %v5827_v48 = vld [vmem:[#allocation8 + $0x68c] ss:$16 sps:$4 sm:$0xff]  }
 0x45f   :  { %2692 = vmatpush1.bf16.msra.mxu0 %v5741_v51  ;;  %3139 = vmatpush1.bf16.msra.mxu1 %v5744_v49  ;;  %v5830_v51 = vld [vmem:[#allocation8 + $0x804] ss:$16 sps:$4 sm:$0xff]   ;;  %v5825_v49 = vld [vmem:[#allocation8 + $0x688] ss:$16 sps:$4 sm:$0xff]  }
 0x460   :  { %2693 = vmatprep.subr.bf16.mxu0 %v5749_v40  ;;  %3140 = vmatprep.subr.bf16.mxu1 %v5752_v57  ;;  %v5828_v40 = vld [vmem:[#allocation8 + $0x800] ss:$16 sps:$4 sm:$0xff]   ;;  %v5833_v57 = vld [vmem:[#allocation8 + $0x6ac] ss:$16 sps:$4 sm:$0xff]  }
 0x463   :  { %2694 = vmatpush1.bf16.msra.mxu0 %v5747_v61  ;;  %3141 = vmatpush1.bf16.msra.mxu1 %v5750_v42  ;;  %v5836_v61 = vld [vmem:[#allocation8 + $0x824] ss:$16 sps:$4 sm:$0xff]   ;;  %v5831_v42 = vld [vmem:[#allocation8 + $0x6a8] ss:$16 sps:$4 sm:$0xff]  }
 0x464   :  { %2695 = vmatprep.subr.bf16.mxu0 %v5755_v50  ;;  %3142 = vmatprep.subr.bf16.mxu1 %v5758_v45  ;;  %v5834_v50 = vld [vmem:[#allocation8 + $0x820] ss:$16 sps:$4 sm:$0xff]   ;;  %v5839_v45 = vld [vmem:[#allocation8 + $0x6cc] ss:$16 sps:$4 sm:$0xff]  }
 0x467   :  { %2696 = vmatpush1.bf16.msra.mxu0 %v5753_v32  ;;  %3143 = vmatpush1.bf16.msra.mxu1 %v5756_v53  ;;  %v5842_v32 = vld [vmem:[#allocation8 + $0x844] ss:$16 sps:$4 sm:$0xff]  }
 0x468   :  { %2697 = vmatprep.subr.bf16.mxu0 %v5761_v38  ;;  %3144 = vmatprep.subr.bf16.mxu1 %v5764_v1 }
 0x46b   :  { %2698 = vmatpush1.bf16.msra.mxu0 %v5759_v2  ;;  %3145 = vmatpush1.bf16.msra.mxu1 %v5762_v3 }
 0x46c   :  { %2931 = vmatprep.subr.bf16.mxu0 %v5767_v4  ;;  %3378 = vmatprep.subr.bf16.mxu1 %v5770_v5 }
 0x46e   :  { %4927 = vmatmul.mubr.msk.bf16.vlgmr.msra.gmra.mrb[56].mxu0 %vm1221_vm4, %v6877_v21  ;;  %4978 = vmatmul.mubr.msk.bf16.vlgmr.msra.gmra.mrb[48].mxu1 %vm1221_vm4, %v6897_v7  ;;  %v5785_v21 = vld [vmem:[#allocation8 + $0x5ac] ss:$16 sps:$4 sm:$0xff]  }
 0x46f   :  { %2932 = vmatpush1.bf16.msra.mxu0 %v5765_v6  ;;  %3379 = vmatpush1.bf16.msra.mxu1 %v5768_v52  ;;  %v5837_v52 = vld [vmem:[#allocation8 + $0x6c8] ss:$16 sps:$4 sm:$0xff]  }
 0x470   :  { %2933 = vmatprep.subr.bf16.mxu0 %v5773_v8  ;;  %3380 = vmatprep.subr.bf16.mxu1 %v5776_v9  ;;  %v5840_v8 = vld [vmem:[#allocation8 + $0x840] ss:$16 sps:$4 sm:$0xff]  }
 0x471   :  { %2963 = vmatprep.mubr.bf16.mxu0 %v6286_v36  ;;  %3410 = vmatprep.mubr.bf16.mxu1 %v6286_v36 }
 0x473   :  { %2934 = vmatpush1.bf16.msra.mxu0 %v5771_v10  ;;  %3381 = vmatpush1.bf16.msra.mxu1 %v5774_v11  ;;  %v6917_v11 = vpack.c.bf16 %v6829_v62, %v6829_v62  ;;  %v5849_v62 = vld [vmem:[#allocation8 + $0x708] ss:$16 sps:$4 sm:$0xff]  }
 0x474   :  { %2935 = vmatprep.subr.bf16.mxu0 %v5779_v23  ;;  %3382 = vmatprep.subr.bf16.mxu1 %v5782_v25  ;;  %v5845_v23 = vld [vmem:[#allocation8 + $0x6ec] ss:$16 sps:$4 sm:$0xff]   ;;  %v5848_v25 = vld [vmem:[#allocation8 + $0x864] ss:$16 sps:$4 sm:$0xff]  }
 0x477   :  { %2936 = vmatpush1.bf16.msra.mxu0 %v5777_v54  ;;  %3383 = vmatpush1.bf16.msra.mxu1 %v5780_v27  ;;  %v5843_v54 = vld [vmem:[#allocation8 + $0x6e8] ss:$16 sps:$4 sm:$0xff]   ;;  %v5846_v27 = vld [vmem:[#allocation8 + $0x860] ss:$16 sps:$4 sm:$0xff]  }
 0x478   :  { %2937 = vmatprep.subr.bf16.mxu0 %v5785_v21  ;;  %3384 = vmatprep.subr.bf16.mxu1 %v5788_v13  ;;  %v5851_v21 = vld [vmem:[#allocation8 + $0x70c] ss:$16 sps:$4 sm:$0xff]   ;;  %v5854_v13 = vld [vmem:[#allocation8 + $0x884] ss:$16 sps:$4 sm:$0xff]  }
 0x47b   :  { %2938 = vmatpush1.bf16.msra.mxu0 %v5783_v29  ;;  %3385 = vmatpush1.bf16.msra.mxu1 %v5786_v31  ;;  %v5852_v29 = vld [vmem:[#allocation8 + $0x880] ss:$16 sps:$4 sm:$0xff]   ;;  %v5860_v31 = vld [vmem:[#allocation8 + $0x8a4] ss:$16 sps:$4 sm:$0xff]  }
 0x47c   :  { %2939 = vmatprep.subr.bf16.mxu0 %v5791_v43  ;;  %3386 = vmatprep.subr.bf16.mxu1 %v5794_v14  ;;  %v5855_v43 = vld [vmem:[#allocation8 + $0x728] ss:$16 sps:$4 sm:$0xff]   ;;  %v5858_v14 = vld [vmem:[#allocation8 + $0x8a0] ss:$16 sps:$4 sm:$0xff]  }
 0x47f   :  { %2940 = vmatpush1.bf16.msra.mxu0 %v5789_v46  ;;  %3387 = vmatpush1.bf16.msra.mxu1 %v5792_v0  ;;  %v5863_v46 = vld [vmem:[#allocation8 + $0x74c] ss:$16 sps:$4 sm:$0xff]   ;;  %v5866_v0 = vld [vmem:[#allocation8 + $0x8c4] ss:$16 sps:$4 sm:$0xff]  }
 0x480   :  { %2941 = vmatprep.subr.bf16.mxu0 %v5797_v41  ;;  %3388 = vmatprep.subr.bf16.mxu1 %v5800_v33  ;;  %v5861_v41 = vld [vmem:[#allocation8 + $0x748] ss:$16 sps:$4 sm:$0xff]   ;;  %v5864_v33 = vld [vmem:[#allocation8 + $0x8c0] ss:$16 sps:$4 sm:$0xff]  }
 0x483   :  { %2942 = vmatpush1.bf16.msra.mxu0 %v5795_v12  ;;  %3389 = vmatpush1.bf16.msra.mxu1 %v5798_v15  ;;  %v5869_v12 = vld [vmem:[#allocation8 + $0x76c] ss:$16 sps:$4 sm:$0xff]   ;;  %v5872_v15 = vld [vmem:[#allocation8 + $0x8e4] ss:$16 sps:$4 sm:$0xff]  }
 0x484   :  { %3175 = vmatprep.subr.bf16.mxu0 %v5803_v16  ;;  %3622 = vmatprep.subr.bf16.mxu1 %v5806_v17  ;;  %v5867_v16 = vld [vmem:[#allocation8 + $0x768] ss:$16 sps:$4 sm:$0xff]   ;;  %v5870_v17 = vld [vmem:[#allocation8 + $0x8e0] ss:$16 sps:$4 sm:$0xff]  }
 0x486   :  { %4953 = vmatmul.mubr.msk.bf16.vlgmr.msra.gmra.mrb[60].mxu0 %vm1221_vm4, %v6887_v34  ;;  %5004 = vmatmul.mubr.msk.bf16.vlgmr.msra.gmra.mrb[52].mxu1 %vm1221_vm4, %v6907_v20  ;;  %v5821_v34 = vld [vmem:[#allocation8 + $0x66c] ss:$16 sps:$4 sm:$0xff]  }
 0x487   :  { %3176 = vmatpush1.bf16.msra.mxu0 %v5801_v18  ;;  %3623 = vmatpush1.bf16.msra.mxu1 %v5804_v19  ;;  %v5875_v18 = vld [vmem:[#allocation8 + $0x78c] ss:$16 sps:$4 sm:$0xff]  }
 0x488   :  { %3177 = vmatprep.subr.bf16.mxu0 %v5809_v22  ;;  %3624 = vmatprep.subr.bf16.mxu1 %v5812_v24 }
 0x489   :  { %3207 = vmatprep.mubr.bf16.mxu0 %v6286_v36  ;;  %3654 = vmatprep.mubr.bf16.mxu1 %v6286_v36 }
 0x48b   :  { %3178 = vmatpush1.bf16.msra.mxu0 %v5807_v26  ;;  %3625 = vmatpush1.bf16.msra.mxu1 %v5810_v28 }
 0x48c   :  { %3179 = vmatprep.subr.bf16.mxu0 %v5815_v30  ;;  %3626 = vmatprep.subr.bf16.mxu1 %v5818_v35 }
 0x48f   :  { %3180 = vmatpush1.bf16.msra.mxu0 %v5813_v55  ;;  %3627 = vmatpush1.bf16.msra.mxu1 %v5816_v37  ;;  %v5873_v37 = vld [vmem:[#allocation8 + $0x788] ss:$16 sps:$4 sm:$0xff]  }
 0x490   :  { %3181 = vmatprep.subr.bf16.mxu0 %v5821_v34  ;;  %3628 = vmatprep.subr.bf16.mxu1 %v5824_v39 }
 0x493   :  { %3182 = vmatpush1.bf16.msra.mxu0 %v5819_v44  ;;  %3629 = vmatpush1.bf16.msra.mxu1 %v5822_v47  ;;  %v6927_v44 = vpack.c.bf16 %v6833_v63, %v6833_v63  ;;  %v5878_v47 = vld [vmem:[#allocation8 + $0x7ac] ss:$16 sps:$4 sm:$0xff]   ;;  %v5882_v63 = vld [vmem:[#allocation8 + $0x7e8] ss:$16 sps:$4 sm:$0xff]  }
 0x494   :  { %3183 = vmatprep.subr.bf16.mxu0 %v5827_v48  ;;  %3630 = vmatprep.subr.bf16.mxu1 %v5830_v51  ;;  %v5876_v48 = vld [vmem:[#allocation8 + $0x7a8] ss:$16 sps:$4 sm:$0xff]   ;;  %v5881_v51 = vld [vmem:[#allocation8 + $0x7cc] ss:$16 sps:$4 sm:$0xff]  }
 0x497   :  { %3184 = vmatpush1.bf16.msra.mxu0 %v5825_v49  ;;  %3631 = vmatpush1.bf16.msra.mxu1 %v5828_v40  ;;  %v5879_v49 = vld [vmem:[#allocation8 + $0x7c8] ss:$16 sps:$4 sm:$0xff]   ;;  %v5884_v40 = vld [vmem:[#allocation8 + $0x7ec] ss:$16 sps:$4 sm:$0xff]  }
 0x498   :  { %3185 = vmatprep.subr.bf16.mxu0 %v5833_v57  ;;  %3632 = vmatprep.subr.bf16.mxu1 %v5836_v61  ;;  %v5887_v57 = vld [vmem:[#allocation8 + $0x80c] ss:$16 sps:$4 sm:$0xff]   ;;  %v5885_v61 = vld [vmem:[#allocation8 + $0x808] ss:$16 sps:$4 sm:$0xff]  }
 0x499   :  { %v1259_v53 = vpop.f32.mrb[28].mxu0  ;;  %v1464_v38 = vpop.f32.mrb[20].mxu1 }
 0x49a   :  { %v1465_v1 = vadd.f32 %v1464_v38, %v1259_v53  ;;  %v1261_v2 = vpop.f32.mrb[29].mxu0  ;;  %v1466_v3 = vpop.f32.mrb[21].mxu1  ;;  %v5912_v53 = vld [vmem:[#allocation11 + $0x10] ss:$8 sps:$4 sm:$0xff]  }
 0x49b   :  { %v1467_v4 = vadd.f32 %v1466_v3, %v1261_v2  ;;  %3186 = vmatpush1.bf16.msra.mxu0 %v5831_v42  ;;  %3633 = vmatpush1.bf16.msra.mxu1 %v5834_v50  ;;  %v1263_v5 = vpop.f32.mrb[30].mxu0  ;;  %v1468_v6 = vpop.f32.mrb[22].mxu1  ;;  %v5909_v42 = vld [vmem:[#allocation11] ss:$8 sps:$4 sm:$0xff]   ;;  %v5911_v50 = vld [vmem:[#allocation11 + $0x4] ss:$8 sps:$4 sm:$0xff]  }
 0x49c   :  { %v1264_v9 = vpop.f32.mrb[31].mxu0  ;;  %v1469_v10 = vpop.f32.mrb[23].mxu1  ;;  %3419 = vmatprep.subr.bf16.mxu0 %v5839_v45  ;;  %3866 = vmatprep.subr.bf16.mxu1 %v5842_v32  ;;  %v5914_v45 = vld [vmem:[#allocation11 + $0x14] ss:$8 sps:$4 sm:$0xff]   ;;  %v5893_v38 = vld [vmem:[#allocation8 + $0x84c] ss:$16 sps:$4 sm:$0xff]  }
 0x49d   :  { %v5888_v32 = vld [vmem:[#allocation8 + $0x828] ss:$16 sps:$4 sm:$0xff]  }
 0x49e   :  { %4979 = vmatmul.mubr.msk.bf16.vlgmr.msra.gmra.mrb[64].mxu0 %vm1221_vm4, %v6897_v7  ;;  %5030 = vmatmul.mubr.msk.bf16.vlgmr.msra.gmra.mrb[56].mxu1 %vm1221_vm4, %v6917_v11  ;;  %v5857_v7 = vld [vmem:[#allocation8 + $0x72c] ss:$16 sps:$4 sm:$0xff]  }
 0x49f   :  { %3420 = vmatpush1.bf16.msra.mxu0 %v5837_v52  ;;  %3867 = vmatpush1.bf16.msra.mxu1 %v5840_v8 }
 0x4a0   :  { %3421 = vmatprep.subr.bf16.mxu0 %v5845_v23  ;;  %3868 = vmatprep.subr.bf16.mxu1 %v5848_v25  ;;  %v5891_v23 = vld [vmem:[#allocation8 + $0x848] ss:$16 sps:$4 sm:$0xff]  }
 0x4a1   :  { %3451 = vmatprep.mubr.bf16.mxu0 %v6286_v36  ;;  %3898 = vmatprep.mubr.bf16.mxu1 %v6286_v36 }
 0x4a3   :  { %3422 = vmatpush1.bf16.msra.mxu0 %v5843_v54  ;;  %3869 = vmatpush1.bf16.msra.mxu1 %v5846_v27  ;;  %v5896_v27 = vld [vmem:[#allocation8 + $0x86c] ss:$16 sps:$4 sm:$0xff]  }
 0x4a4   :  { %3423 = vmatprep.subr.bf16.mxu0 %v5851_v21  ;;  %3870 = vmatprep.subr.bf16.mxu1 %v5854_v13  ;;  %v5894_v21 = vld [vmem:[#allocation8 + $0x868] ss:$16 sps:$4 sm:$0xff]   ;;  %v5899_v13 = vld [vmem:[#allocation8 + $0x88c] ss:$16 sps:$4 sm:$0xff]  }
 0x4a7   :  { %3424 = vmatpush1.bf16.msra.mxu0 %v5849_v62  ;;  %3871 = vmatpush1.bf16.msra.mxu1 %v5852_v29  ;;  %v5897_v62 = vld [vmem:[#allocation8 + $0x888] ss:$16 sps:$4 sm:$0xff]   ;;  %v5902_v29 = vld [vmem:[#allocation8 + $0x8ac] ss:$16 sps:$4 sm:$0xff]  }
 0x4a8   :  { %3425 = vmatprep.subr.bf16.mxu0 %v5857_v7  ;;  %3872 = vmatprep.subr.bf16.mxu1 %v5860_v31  ;;  %v5900_v7 = vld [vmem:[#allocation8 + $0x8a8] ss:$16 sps:$4 sm:$0xff]   ;;  %v5905_v31 = vld [vmem:[#allocation8 + $0x8cc] ss:$16 sps:$4 sm:$0xff]  }
 0x4ab   :  { %3426 = vmatpush1.bf16.msra.mxu0 %v5855_v43  ;;  %3873 = vmatpush1.bf16.msra.mxu1 %v5858_v14  ;;  %v5903_v43 = vld [vmem:[#allocation8 + $0x8c8] ss:$16 sps:$4 sm:$0xff]   ;;  %v5915_v14 = vld [vmem:[#allocation11 + $0x20] ss:$8 sps:$4 sm:$0xff]  }
 0x4ac   :  { %3427 = vmatprep.subr.bf16.mxu0 %v5863_v46  ;;  %3874 = vmatprep.subr.bf16.mxu1 %v5866_v0  ;;  %v5917_v46 = vld [vmem:[#allocation11 + $0x24] ss:$8 sps:$4 sm:$0xff]   ;;  %v5920_v0 = vld [vmem:[#allocation11 + $0x34] ss:$8 sps:$4 sm:$0xff]  }
 0x4af   :  { %3428 = vmatpush1.bf16.msra.mxu0 %v5861_v41  ;;  %3875 = vmatpush1.bf16.msra.mxu1 %v5864_v33  ;;  %v5906_v41 = vld [vmem:[#allocation8 + $0x8e8] ss:$16 sps:$4 sm:$0xff]  }
 0x4b0   :  { %3429 = vmatprep.subr.bf16.mxu0 %v5869_v12  ;;  %3876 = vmatprep.subr.bf16.mxu1 %v5872_v15  ;;  %v5923_v33 = vld [vmem:[#allocation11 + $0x44] ss:$8 sps:$4 sm:$0xff]  }
 0x4b1   :  { %v1300_v19 = vpop.f32.mrb[32].mxu0  ;;  %v1704_v22 = vpop.f32.mrb[24].mxu1 }
 0x4b2   :  { %v1752_v24 = vadd.f32 %v1704_v22, %v1465_v1  ;;  %v1302_v26 = vpop.f32.mrb[33].mxu0  ;;  %v1706_v28 = vpop.f32.mrb[25].mxu1  ;;  %v5921_v22 = vld [vmem:[#allocation11 + $0x40] ss:$8 sps:$4 sm:$0xff]  }
 0x4b3   :  { %v1753_v30 = vadd.f32 %v1706_v28, %v1467_v4  ;;  %v1304_v35 = vpop.f32.mrb[34].mxu0  ;;  %v1708_v55 = vpop.f32.mrb[26].mxu1  ;;  %3430 = vmatpush1.bf16.msra.mxu0 %v5867_v16  ;;  %3877 = vmatpush1.bf16.msra.mxu1 %v5870_v17 }
 0x4b4   :  { %v1305_v34 = vpop.f32.mrb[35].mxu0  ;;  %v1709_v39 = vpop.f32.mrb[27].mxu1  ;;  %3663 = vmatprep.subr.bf16.mxu0 %v5875_v18  ;;  %4382 = vmatprep.subr.bf16.mxu1 %v5911_v50  ;;  %v5926_v35 = vld [vmem:[#allocation11 + $0x54] ss:$8 sps:$4 sm:$0xff]  }
 0x4b5   :  { %v5924_v34 = vld [vmem:[#allocation11 + $0x50] ss:$8 sps:$4 sm:$0xff]   ;;  %v5929_v39 = vld [vmem:[#allocation11 + $0x64] ss:$8 sps:$4 sm:$0xff]  }
 0x4b6   :  { %5005 = vmatmul.mubr.msk.bf16.vlgmr.msra.gmra.mrb[68].mxu0 %vm1221_vm4, %v6907_v20  ;;  %5056 = vmatmul.mubr.msk.bf16.vlgmr.msra.gmra.mrb[60].mxu1 %vm1221_vm4, %v6927_v44  ;;  %v5890_v20 = vld [vmem:[#allocation8 + $0x82c] ss:$16 sps:$4 sm:$0xff]  }
 0x4b7   :  { %3664 = vmatpush1.bf16.msra.mxu0 %v5873_v37  ;;  %3695 = vmatprep.mubr.bf16.mxu0 %v6286_v36 }
 0x4b8   :  { %3665 = vmatprep.subr.bf16.mxu0 %v5878_v47  ;;  %4383 = vmatpush1.bf16.msra.mxu1 %v5909_v42  ;;  %v5927_v47 = vld [vmem:[#allocation11 + $0x60] ss:$8 sps:$4 sm:$0xff]  }
 0x4b9   :  { %4384 = vmatprep.subr.bf16.mxu1 %v5914_v45 }
 0x4bb   :  { %3666 = vmatpush1.bf16.msra.mxu0 %v5876_v48  ;;  %v5932_v48 = vld [vmem:[#allocation11 + $0x74] ss:$8 sps:$4 sm:$0xff]  }
 0x4bc   :  { %3667 = vmatprep.subr.bf16.mxu0 %v5881_v51  ;;  %4385 = vmatpush1.bf16.msra.mxu1 %v5912_v53  ;;  %v5930_v51 = vld [vmem:[#allocation11 + $0x70] ss:$8 sps:$4 sm:$0xff]   ;;  %v5939_v53 = vld [vmem:[#allocation11 + $0xa0] ss:$8 sps:$4 sm:$0xff]  }
 0x4bd   :  { %4386 = vmatprep.subr.bf16.mxu1 %v5917_v46 }
 0x4bf   :  { %3668 = vmatpush1.bf16.msra.mxu0 %v5879_v49  ;;  %v5933_v49 = vld [vmem:[#allocation11 + $0x80] ss:$8 sps:$4 sm:$0xff]  }
 0x4c0   :  { %3669 = vmatprep.subr.bf16.mxu0 %v5884_v40  ;;  %4387 = vmatpush1.bf16.msra.mxu1 %v5915_v14  ;;  %v5935_v40 = vld [vmem:[#allocation11 + $0x84] ss:$8 sps:$4 sm:$0xff]  }
 0x4c1   :  { %4388 = vmatprep.subr.bf16.mxu1 %v5920_v0 }
 0x4c3   :  { %3670 = vmatpush1.bf16.msra.mxu0 %v5882_v63  ;;  %v5938_v63 = vld [vmem:[#allocation11 + $0x94] ss:$8 sps:$4 sm:$0xff]  }
 0x4c4   :  { %3671 = vmatprep.subr.bf16.mxu0 %v5887_v57  ;;  %v5936_v57 = vld [vmem:[#allocation11 + $0x90] ss:$8 sps:$4 sm:$0xff]  }
 0x4c7   :  { %3672 = vmatpush1.bf16.msra.mxu0 %v5885_v61 }
 0x4c8   :  { %3673 = vmatprep.subr.bf16.mxu0 %v5890_v20 }
 0x4c9   :  { %v1505_v1 = vpop.f32.mrb[36].mxu0  ;;  %v1948_v2 = vpop.f32.mrb[28].mxu1 }
 0x4ca   :  { %v1506_v3 = vadd.f32 %v1505_v1, %v1300_v19  ;;  %v1996_v4 = vadd.f32 %v1948_v2, %v1752_v24  ;;  %v1507_v5 = vpop.f32.mrb[37].mxu0  ;;  %v1950_v6 = vpop.f32.mrb[29].mxu1 }
 0x4cb   :  { %v1508_v52 = vadd.f32 %v1507_v5, %v1302_v26  ;;  %v1997_v8 = vadd.f32 %v1950_v6, %v1753_v30  ;;  %v1509_v9 = vpop.f32.mrb[38].mxu0  ;;  %v1952_v10 = vpop.f32.mrb[30].mxu1  ;;  %3674 = vmatpush1.bf16.msra.mxu0 %v5888_v32 }
 0x4cc   :  { %v1510_v25 = vpop.f32.mrb[39].mxu0  ;;  %v1953_v54 = vpop.f32.mrb[31].mxu1  ;;  %3907 = vmatprep.subr.bf16.mxu0 %v5893_v38  ;;  %v5945_v9 = vld [vmem:[#allocation11 + $0xc0] ss:$8 sps:$4 sm:$0xff]   ;;  %v5950_v10 = vld [vmem:[#allocation11 + $0xd4] ss:$8 sps:$4 sm:$0xff]  }
 0x4cd   :  { %v5953_v25 = vld [vmem:[#allocation11 + $0xe4] ss:$8 sps:$4 sm:$0xff]   ;;  %v5951_v54 = vld [vmem:[#allocation11 + $0xe0] ss:$8 sps:$4 sm:$0xff]  }
 0x4ce   :  { %5031 = vmatmul.mubr.msk.bf16.vlgmr.msra.gmra.mrb[72].mxu0 %vm1221_vm4, %v6917_v11  ;;  %v5908_v11 = vld [vmem:[#allocation8 + $0x8ec] ss:$16 sps:$4 sm:$0xff]  }
 0x4cf   :  { %3908 = vmatpush1.bf16.msra.mxu0 %v5891_v23  ;;  %3939 = vmatprep.mubr.bf16.mxu0 %v6286_v36  ;;  %v5918_v36 = vld [vmem:[#allocation11 + $0x30] ss:$8 sps:$4 sm:$0xff]  }
 0x4d0   :  { %3909 = vmatprep.subr.bf16.mxu0 %v5896_v27  ;;  %4389 = vmatpush1.bf16.msra.mxu1 %v5918_v36  ;;  %v5948_v23 = vld [vmem:[#allocation11 + $0xd0] ss:$8 sps:$4 sm:$0xff]   ;;  %v5956_v27 = vld [vmem:[#allocation11 + $0xf4] ss:$8 sps:$4 sm:$0xff]   ;;  %v5959_v36 = vld [vmem:[#allocation11 + $0x104] ss:$8 sps:$4 sm:$0xff]  }
 0x4d1   :  { %4390 = vmatprep.subr.bf16.mxu1 %v5923_v33 }
 0x4d3   :  { %3910 = vmatpush1.bf16.msra.mxu0 %v5894_v21 }
 0x4d4   :  { %3911 = vmatprep.subr.bf16.mxu0 %v5899_v13  ;;  %4391 = vmatpush1.bf16.msra.mxu1 %v5921_v22 }
 0x4d5   :  { %4392 = vmatprep.subr.bf16.mxu1 %v5926_v35 }
 0x4d7   :  { %3912 = vmatpush1.bf16.msra.mxu0 %v5897_v62  ;;  %v5954_v62 = vld [vmem:[#allocation11 + $0xf0] ss:$8 sps:$4 sm:$0xff]  }
 0x4d8   :  { %3913 = vmatprep.subr.bf16.mxu0 %v5902_v29  ;;  %4393 = vmatpush1.bf16.msra.mxu1 %v5924_v34 }
 0x4d9   :  { %4394 = vmatprep.subr.bf16.mxu1 %v5929_v39 }
 0x4db   :  { %3914 = vmatpush1.bf16.msra.mxu0 %v5900_v7 }
 0x4dc   :  { %3915 = vmatprep.subr.bf16.mxu0 %v5905_v31  ;;  %4395 = vmatpush1.bf16.msra.mxu1 %v5927_v47 }
 0x4dd   :  { %4396 = vmatprep.subr.bf16.mxu1 %v5932_v48 }
 0x4df   :  { %3916 = vmatpush1.bf16.msra.mxu0 %v5903_v43 }
 0x4e0   :  { %3917 = vmatprep.subr.bf16.mxu0 %v5908_v11  ;;  %4397 = vmatpush1.bf16.msra.mxu1 %v5930_v51 }
 0x4e1   :  { %v1745_v12 = vpop.f32.mrb[40].mxu0  ;;  %v2192_v15 = vpop.f32.mrb[32].mxu1  ;;  %4398 = vmatprep.subr.bf16.mxu1 %v5935_v40 }
 0x4e2   :  { %v1754_v16 = vadd.f32 %v1745_v12, %v1506_v3  ;;  %v2240_v17 = vadd.f32 %v2192_v15, %v1996_v4  ;;  %v1747_v18 = vpop.f32.mrb[41].mxu0  ;;  %v2194_v19 = vpop.f32.mrb[33].mxu1  ;;  %v5944_v4 = vld [vmem:[#allocation11 + $0xb4] ss:$8 sps:$4 sm:$0xff]  }
 0x4e3   :  { %v1755_v24 = vadd.f32 %v1747_v18, %v1508_v52  ;;  %v2241_v26 = vadd.f32 %v2194_v19, %v1997_v8  ;;  %v1749_v28 = vpop.f32.mrb[42].mxu0  ;;  %v2196_v30 = vpop.f32.mrb[34].mxu1  ;;  %3918 = vmatpush1.bf16.msra.mxu0 %v5906_v41  ;;  %v5942_v52 = vld [vmem:[#allocation11 + $0xb0] ss:$8 sps:$4 sm:$0xff]   ;;  %v5947_v8 = vld [vmem:[#allocation11 + $0xc4] ss:$8 sps:$4 sm:$0xff]  }
 0x4e4   :  { %v1750_v55 = vpop.f32.mrb[43].mxu0  ;;  %v2197_v37 = vpop.f32.mrb[35].mxu1  ;;  %4399 = vmatpush1.bf16.msra.mxu1 %v5933_v49 }
 0x4e5   :  { %4400 = vmatprep.subr.bf16.mxu1 %v5938_v63 }
 0x4e6   :  { %5057 = vmatmul.mubr.msk.bf16.vlgmr.msra.gmra.mrb[76].mxu0 %vm1221_vm4, %v6927_v44  ;;  %v5941_v44 = vld [vmem:[#allocation11 + $0xa4] ss:$8 sps:$4 sm:$0xff]  }
 0x4e8   :  { %4401 = vmatpush1.bf16.msra.mxu1 %v5936_v57 }
 0x4e9   :  { %4402 = vmatprep.subr.bf16.mxu1 %v5941_v44 }
 0x4ec   :  { %4403 = vmatpush1.bf16.msra.mxu1 %v5939_v53 }
 0x4ed   :  { %4404 = vmatprep.subr.bf16.mxu1 %v5944_v4 }
 0x4f0   :  { %4405 = vmatpush1.bf16.msra.mxu1 %v5942_v52 }
 0x4f1   :  { %4406 = vmatprep.subr.bf16.mxu1 %v5947_v8  ;;  %v6010_v8 = vld [vmem:[#allocation14 + $0x10] sm:$0xff]  }
 0x4f4   :  { %4407 = vmatpush1.bf16.msra.mxu1 %v5945_v9 }
 0x4f5   :  { %4408 = vmatprep.subr.bf16.mxu1 %v5950_v10 }
 0x4f8   :  { %4409 = vmatpush1.bf16.msra.mxu1 %v5948_v23  ;;  %v6011_v23 = vld [vmem:[#allocation14 + $0x58] sm:$0xff]  }
 0x4f9   :  { %v1989_v61 = vpop.f32.mrb[44].mxu0  ;;  %v2436_v20 = vpop.f32.mrb[36].mxu1  ;;  %4410 = vmatprep.subr.bf16.mxu1 %v5953_v25  ;;  %v6012_v25 = vld [vmem:[#allocation14 + $0x18] sm:$0xff]  }
 0x4fa   :  { %v1998_v42 = vadd.f32 %v1989_v61, %v1754_v16  ;;  %v2484_v50 = vadd.f32 %v2436_v20, %v2240_v17  ;;  %v1991_v45 = vpop.f32.mrb[45].mxu0  ;;  %v2438_v32 = vpop.f32.mrb[37].mxu1  ;;  %v6005_v61 = vld [vmem:[#allocation14 + $0x40] sm:$0xff]  }
 0x4fb   :  { %v1999_v38 = vadd.f32 %v1991_v45, %v1755_v24  ;;  %v2485_v1 = vadd.f32 %v2438_v32, %v2241_v26  ;;  %v1993_v2 = vpop.f32.mrb[46].mxu0  ;;  %v2440_v3 = vpop.f32.mrb[38].mxu1  ;;  %v6006_v20 = vld [vmem:[#allocation14] sm:$0xff]   ;;  %5217 = vmatprep.subr.bf16.mxu0 %v6005_v61  ;;  %v6009_v45 = vld [vmem:[#allocation14 + $0x50] sm:$0xff]  }
 0x4fc   :  { %v1994_v5 = vpop.f32.mrb[47].mxu0  ;;  %v2441_v6 = vpop.f32.mrb[39].mxu1  ;;  %4411 = vmatpush1.bf16.msra.mxu1 %v5951_v54  ;;  %5218 = vmatpush3.bf16.msra.mxu0 %v6006_v20  ;;  %v6013_v54 = vld [vmem:[#allocation14 + $0x60] sm:$0xff]  }
 0x4fd   :  { %4412 = vmatprep.subr.bf16.mxu1 %v5956_v27  ;;  %v6014_v27 = vld [vmem:[#allocation14 + $0x20] sm:$0xff]  }
 0x4fe   :  { %v5965_v61 = vld [vmem:[#allocation11 + $0x124] ss:$8 sps:$4 sm:$0xff]   ;;  %v5963_v20 = vld [vmem:[#allocation11 + $0x120] ss:$8 sps:$4 sm:$0xff]  }
 0x500   :  { %4413 = vmatpush1.bf16.msra.mxu1 %v5954_v62 }
 0x501   :  { %4423 = vmatprep.subr.bf16.mxu1 %v5959_v36 }
 0x511   :  { %v2233_v21 = vpop.f32.mrb[48].mxu0  ;;  %v2680_v13 = vpop.f32.mrb[40].mxu1 }
 0x512   :  { %v2242_v29 = vadd.f32 %v2233_v21, %v1998_v42  ;;  %v2728_v7 = vadd.f32 %v2680_v13, %v2484_v50  ;;  %v2235_v31 = vpop.f32.mrb[49].mxu0  ;;  %v2682_v43 = vpop.f32.mrb[41].mxu1  ;;  %v6007_v42 = vld [vmem:[#allocation14 + $0x48] sm:$0xff]  }
 0x513   :  { %v2243_v14 = vadd.f32 %v2235_v31, %v1999_v38  ;;  %v2729_v46 = vadd.f32 %v2682_v43, %v2485_v1  ;;  %v2237_v11 = vpop.f32.mrb[50].mxu0  ;;  %v2684_v0 = vpop.f32.mrb[42].mxu1  ;;  %v6008_v50 = vld [vmem:[#allocation14 + $0x8] sm:$0xff]   ;;  %5219 = vmatprep.subr.bf16.mxu0 %v6007_v42  ;;  %v5968_v42 = vld [vmem:[#allocation11 + $0x134] ss:$8 sps:$4 sm:$0xff]  }
 0x514   :  { %v2238_v41 = vpop.f32.mrb[51].mxu0  ;;  %v2685_v33 = vpop.f32.mrb[43].mxu1  ;;  %5220 = vmatpush3.bf16.msra.mxu0 %v6008_v50  ;;  %v6015_v21 = vld [vmem:[#allocation14 + $0x68] sm:$0xff]  }
 0x515   :  { %5221 = vmatprep.subr.bf16.mxu0 %v6009_v45  ;;  %v6016_v13 = vld [vmem:[#allocation14 + $0x28] sm:$0xff]  }
 0x516   :  { %v5966_v50 = vld [vmem:[#allocation11 + $0x130] ss:$8 sps:$4 sm:$0xff]   ;;  %v5971_v45 = vld [vmem:[#allocation11 + $0x144] ss:$8 sps:$4 sm:$0xff]  }
 0x518   :  { %5222 = vmatpush3.bf16.msra.mxu0 %v6010_v8  ;;  %v5975_v8 = vld [vmem:[#allocation11 + $0x160] ss:$8 sps:$4 sm:$0xff]  }
 0x519   :  { %5223 = vmatprep.subr.bf16.mxu0 %v6011_v23  ;;  %v5983_v23 = vld [vmem:[#allocation11 + $0x184] ss:$8 sps:$4 sm:$0xff]  }
 0x51c   :  { %5224 = vmatpush3.bf16.msra.mxu0 %v6012_v25  ;;  %v5981_v25 = vld [vmem:[#allocation11 + $0x180] ss:$8 sps:$4 sm:$0xff]  }
 0x51d   :  { %5225 = vmatprep.subr.bf16.mxu0 %v6013_v54  ;;  %v5986_v54 = vld [vmem:[#allocation11 + $0x194] ss:$8 sps:$4 sm:$0xff]  }
 0x520   :  { %5226 = vmatpush3.bf16.msra.mxu0 %v6014_v27  ;;  %v5984_v27 = vld [vmem:[#allocation11 + $0x190] ss:$8 sps:$4 sm:$0xff]  }
 0x521   :  { %5227 = vmatprep.subr.bf16.mxu0 %v6015_v21  ;;  %v5989_v21 = vld [vmem:[#allocation11 + $0x1a4] ss:$8 sps:$4 sm:$0xff]  }
 0x524   :  { %5228 = vmatpush3.bf16.msra.mxu0 %v6016_v13 }
 0x529   :  { %v2477_v12 = vpop.f32.mrb[52].mxu0  ;;  %v2924_v15 = vpop.f32.mrb[44].mxu1 }
 0x52a   :  { %v2486_v16 = vadd.f32 %v2477_v12, %v2242_v29  ;;  %v2972_v17 = vadd.f32 %v2924_v15, %v2728_v7  ;;  %v2479_v18 = vpop.f32.mrb[53].mxu0  ;;  %v2926_v19 = vpop.f32.mrb[45].mxu1  ;;  %v6939_v12 = vld [vmem:[#allocation10] sm:$0xf] }
 0x52b   :  { %v2487_v22 = vadd.f32 %v2479_v18, %v2243_v14  ;;  %v2973_v24 = vadd.f32 %v2926_v19, %v2729_v46  ;;  %v2481_v26 = vpop.f32.mrb[54].mxu0  ;;  %v2928_v28 = vpop.f32.mrb[46].mxu1  ;;  %v3957_v15 = vrot.slane %v6939_v12, %v6743_v56  ;;  %v3961_v18 = vrot.slane %v6939_v12, %v6746_v58 }
 0x52c   :  { %v2482_v30 = vpop.f32.mrb[55].mxu0  ;;  %v2929_v35 = vpop.f32.mrb[47].mxu1  ;;  %v3965_v13 = vrot.slane %v6939_v12, %v6749_v59 }
 0x541   :  { %v2721_v55 = vpop.f32.mrb[56].mxu0  ;;  %v3168_v37 = vpop.f32.mrb[48].mxu1 }
 0x542   :  { %v2730_v34 = vadd.f32 %v2721_v55, %v2486_v16  ;;  %v3216_v39 = vadd.f32 %v3168_v37, %v2972_v17  ;;  %v2723_v47 = vpop.f32.mrb[57].mxu0  ;;  %v3170_v48 = vpop.f32.mrb[49].mxu1 }
 0x543   :  { %v2731_v51 = vadd.f32 %v2723_v47, %v2487_v22  ;;  %v3217_v49 = vadd.f32 %v3170_v48, %v2973_v24  ;;  %v2725_v40 = vpop.f32.mrb[58].mxu0  ;;  %v3172_v63 = vpop.f32.mrb[50].mxu1 }
 0x544   :  { %v2726_v57 = vpop.f32.mrb[59].mxu0  ;;  %v3173_v44 = vpop.f32.mrb[51].mxu1  ;;  %v5957_v40 = vld [vmem:[#allocation11 + $0x100] ss:$8 sps:$4 sm:$0xff]  }
 0x545   :  { %v5962_v57 = vld [vmem:[#allocation11 + $0x114] ss:$8 sps:$4 sm:$0xff]   ;;  %v5960_v44 = vld [vmem:[#allocation11 + $0x110] ss:$8 sps:$4 sm:$0xff]  }
 0x559   :  { %v2965_v32 = vpop.f32.mrb[60].mxu0  ;;  %v3412_v53 = vpop.f32.mrb[52].mxu1 }
 0x55a   :  { %v2974_v38 = vadd.f32 %v2965_v32, %v2730_v34  ;;  %v3460_v1 = vadd.f32 %v3412_v53, %v3216_v39  ;;  %v2967_v2 = vpop.f32.mrb[61].mxu0  ;;  %v3414_v3 = vpop.f32.mrb[53].mxu1  ;;  %v5969_v53 = vld [vmem:[#allocation11 + $0x140] ss:$8 sps:$4 sm:$0xff]  }
 0x55b   :  { %v2975_v4 = vadd.f32 %v2967_v2, %v2731_v51  ;;  %v3461_v5 = vadd.f32 %v3414_v3, %v3217_v49  ;;  %v2969_v6 = vpop.f32.mrb[62].mxu0  ;;  %v3416_v52 = vpop.f32.mrb[54].mxu1  ;;  %v5974_v2 = vld [vmem:[#allocation11 + $0x154] ss:$8 sps:$4 sm:$0xff]  }
 0x55c   :  { %v2970_v9 = vpop.f32.mrb[63].mxu0  ;;  %v3417_v10 = vpop.f32.mrb[55].mxu1  ;;  %v5972_v6 = vld [vmem:[#allocation11 + $0x150] ss:$8 sps:$4 sm:$0xff]   ;;  %v5977_v52 = vld [vmem:[#allocation11 + $0x164] ss:$8 sps:$4 sm:$0xff]  }
 0x55d   :  { %v5980_v9 = vld [vmem:[#allocation11 + $0x174] ss:$8 sps:$4 sm:$0xff]   ;;  %v5978_v10 = vld [vmem:[#allocation11 + $0x170] ss:$8 sps:$4 sm:$0xff]  }
 0x571   :  { %v3209_v62 = vpop.f32.mrb[64].mxu0  ;;  %v3656_v29 = vpop.f32.mrb[56].mxu1 }
 0x572   :  { %v3218_v7 = vadd.f32 %v3209_v62, %v2974_v38  ;;  %v3704_v31 = vadd.f32 %v3656_v29, %v3460_v1  ;;  %v3211_v43 = vpop.f32.mrb[65].mxu0  ;;  %v3658_v14 = vpop.f32.mrb[57].mxu1  ;;  %v3969_v29 = vrot.slane %v6939_v12, %v6752_v60  ;;  %v5998_v60 = vld [vmem:[#allocation11 + $0x1d4] ss:$8 sps:$4 sm:$0xff]   ;;  %v5996_v12 = vld [vmem:[#allocation11 + $0x1d0] ss:$8 sps:$4 sm:$0xff]  }
 0x573   :  { %v3219_v46 = vadd.f32 %v3211_v43, %v2975_v4  ;;  %v3705_v11 = vadd.f32 %v3658_v14, %v3461_v5  ;;  %v3213_v0 = vpop.f32.mrb[66].mxu0  ;;  %v3660_v36 = vpop.f32.mrb[58].mxu1  ;;  %v5992_v14 = vld [vmem:[#allocation11 + $0x1b4] ss:$8 sps:$4 sm:$0xff]  }
 0x574   :  { %v3214_v41 = vpop.f32.mrb[67].mxu0  ;;  %v3661_v33 = vpop.f32.mrb[59].mxu1 }
 0x575   :  { %v5990_v33 = vld [vmem:[#allocation11 + $0x1b0] ss:$8 sps:$4 sm:$0xff]  }
 0x589   :  { %v3453_v16 = vpop.f32.mrb[68].mxu0  ;;  %v3900_v17 = vpop.f32.mrb[60].mxu1 }
 0x58a   :  { %v3462_v19 = vadd.f32 %v3453_v16, %v3218_v7  ;;  %v3948_v22 = vadd.f32 %v3900_v17, %v3704_v31  ;;  %v3455_v24 = vpop.f32.mrb[69].mxu0  ;;  %v3902_v26 = vpop.f32.mrb[61].mxu1  ;;  %v5987_v7 = vld [vmem:[#allocation11 + $0x1a0] ss:$8 sps:$4 sm:$0xff]  }
 0x58b   :  { %v3463_v28 = vadd.f32 %v3455_v24, %v3219_v46  ;;  %v3949_v30 = vadd.f32 %v3902_v26, %v3705_v11  ;;  %v3457_v35 = vpop.f32.mrb[70].mxu0  ;;  %v3904_v55 = vpop.f32.mrb[62].mxu1  ;;  %v5993_v17 = vld [vmem:[#allocation11 + $0x1c0] ss:$8 sps:$4 sm:$0xff]   ;;  %v6002_v24 = vld [vmem:[#allocation11 + $0x1f0] ss:$8 sps:$4 sm:$0xff]  }
 0x58c   :  { %v3974_v37 = vadd.f32 %v3957_v15, %v3948_v22  ;;  %v3458_v34 = vpop.f32.mrb[71].mxu0  ;;  %v3905_v39 = vpop.f32.mrb[63].mxu1  ;;  %v5995_v15 = vld [vmem:[#allocation11 + $0x1c4] ss:$8 sps:$4 sm:$0xff]   ;;  %v6004_v22 = vld [vmem:[#allocation11 + $0x1f4] ss:$8 sps:$4 sm:$0xff]  }
 0x58d   :  { %v3975_v47 = vadd.f32 %v3961_v18, %v3949_v30  ;;  %v6001_v18 = vld [vmem:[#allocation11 + $0x1e4] ss:$8 sps:$4 sm:$0xff]   ;;  %v6017_v30 = vld [vmem:[#allocation14 + $0x70] sm:$0xff]   ;;  %v6019_v55 = vld [vmem:[#allocation14 + $0x78] sm:$0xff]  }
 0x58e   :  { %v3978_v48 = vmax.f32 %v3974_v37, 0.0  ;;  %v6018_v35 = vld [vmem:[#allocation14 + $0x30] sm:$0xff]   ;;  %5229 = vmatprep.subr.bf16.mxu0 %v6017_v30  ;;  %v6020_v37 = vld [vmem:[#allocation14 + $0x38] sm:$0xff]  }
 0x58f   :  { %v3979_v51 = vmax.f32 %v3975_v47, 0.0  ;;  %5230 = vmatpush3.bf16.msra.mxu0 %v6018_v35  ;;  %v4050_v34 = vld [vmem:[#allocation13] sm:$0x3] }
 0x590   :  { %v3982_v63 = vpack.c.bf16 %v3978_v48, %v3978_v48  ;;  %5231 = vmatprep.subr.bf16.mxu0 %v6019_v55  ;;  %v4055_v39 = vrot.slane %v4050_v34, %v6743_v56  ;;  %v4059_v47 = vrot.slane %v4050_v34, %v6746_v58 }
 0x591   :  { %v3983_v49 = vpack.c.bf16 %v3979_v51, %v3979_v51 }
 0x593   :  { %4414 = vmatprep.mubr.bf16.mxu1 %v3983_v49  ;;  %5232 = vmatpush3.bf16.msra.mxu0 %v6020_v37 }
 0x594   :  { %4415 = vmatmul.mubr.bf16.vlgmr.msra.gmra.mrb[64].mxu1 %v3982_v63 }
 0x595   :  { %4424 = vmatpush1.bf16.msra.mxu1 %v5957_v40 }
 0x596   :  { %4425 = vmatprep.subr.bf16.mxu1 %v5962_v57 }
 0x599   :  { %4426 = vmatpush1.bf16.msra.mxu1 %v5960_v44 }
 0x59a   :  { %4427 = vmatprep.subr.bf16.mxu1 %v5965_v61 }
 0x59d   :  { %4428 = vmatpush1.bf16.msra.mxu1 %v5963_v20 }
 0x59e   :  { %4429 = vmatprep.subr.bf16.mxu1 %v5968_v42 }
 0x5a1   :  { %4430 = vmatpush1.bf16.msra.mxu1 %v5966_v50  ;;  %v3697_v32 = vpop.f32.mrb[72].mxu0 }
 0x5a2   :  { %v3706_v38 = vadd.f32 %v3697_v32, %v3462_v19  ;;  %v3699_v1 = vpop.f32.mrb[73].mxu0  ;;  %4431 = vmatprep.subr.bf16.mxu1 %v5971_v45  ;;  %v5999_v19 = vld [vmem:[#allocation11 + $0x1e0] ss:$8 sps:$4 sm:$0xff]  }
 0x5a3   :  { %v3707_v3 = vadd.f32 %v3699_v1, %v3463_v28  ;;  %v3701_v4 = vpop.f32.mrb[74].mxu0  ;;  %v5122_v45 = vld [vmem:[#allocation16] ss:$0 sm:$0xff] }
 0x5a4   :  { %v3702_v5 = vpop.f32.mrb[75].mxu0 }
 0x5a5   :  { %4432 = vmatpush1.bf16.msra.mxu1 %v5969_v53 }
 0x5a6   :  { %4433 = vmatprep.subr.bf16.mxu1 %v5974_v2 }
 0x5a9   :  { %4434 = vmatpush1.bf16.msra.mxu1 %v5972_v6 }
 0x5aa   :  { %4435 = vmatprep.subr.bf16.mxu1 %v5977_v52 }
 0x5ad   :  { %4436 = vmatpush1.bf16.msra.mxu1 %v5975_v8 }
 0x5ae   :  { %4437 = vmatprep.subr.bf16.mxu1 %v5980_v9 }
 0x5b1   :  { %4438 = vmatpush1.bf16.msra.mxu1 %v5978_v10 }
 0x5b2   :  { %4439 = vmatprep.subr.bf16.mxu1 %v5983_v23 }
 0x5b5   :  { %4440 = vmatpush1.bf16.msra.mxu1 %v5981_v25 }
 0x5b6   :  { %4441 = vmatprep.subr.bf16.mxu1 %v5986_v54 }
 0x5b9   :  { %4442 = vmatpush1.bf16.msra.mxu1 %v5984_v27  ;;  %v3941_v62 = vpop.f32.mrb[76].mxu0 }
 0x5ba   :  { %v3950_v31 = vadd.f32 %v3941_v62, %v3706_v38  ;;  %v3943_v43 = vpop.f32.mrb[77].mxu0  ;;  %4443 = vmatprep.subr.bf16.mxu1 %v5989_v21 }
 0x5bb   :  { %v3951_v46 = vadd.f32 %v3943_v43, %v3707_v3  ;;  %v3945_v11 = vpop.f32.mrb[78].mxu0 }
 0x5bc   :  { %v3976_v0 = vadd.f32 %v3965_v13, %v3950_v31  ;;  %v3946_v36 = vpop.f32.mrb[79].mxu0 }
 0x5bd   :  { %v3977_v41 = vadd.f32 %v3969_v29, %v3951_v46  ;;  %4444 = vmatpush1.bf16.msra.mxu1 %v5987_v7 }
 0x5be   :  { %4445 = vmatprep.subr.bf16.mxu1 %v5992_v14  ;;  %v3980_v26 = vmax.f32 %v3976_v0, 0.0 }
 0x5bf   :  { %v3981_v59 = vmax.f32 %v3977_v41, 0.0 }
 0x5c0   :  { %v3984_v28 = vpack.c.bf16 %v3980_v26, %v3980_v26 }
 0x5c1   :  { %v3985_v16 = vpack.c.bf16 %v3981_v59, %v3981_v59  ;;  %4446 = vmatpush1.bf16.msra.mxu1 %v5990_v33 }
 0x5c2   :  { %4447 = vmatprep.subr.bf16.mxu1 %v5995_v15 }
 0x5c3   :  { %4455 = vmatprep.mubr.bf16.mxu1 %v3985_v16 }
 0x5c5   :  { %4448 = vmatpush1.bf16.msra.mxu1 %v5993_v17 }
 0x5c6   :  { %4449 = vmatprep.subr.bf16.mxu1 %v5998_v60 }
 0x5c9   :  { %4450 = vmatpush1.bf16.msra.mxu1 %v5996_v12 }
 0x5ca   :  { %4451 = vmatprep.subr.bf16.mxu1 %v6001_v18 }
 0x5cd   :  { %4452 = vmatpush1.bf16.msra.mxu1 %v5999_v19 }
 0x5ce   :  { %4453 = vmatprep.subr.bf16.mxu1 %v6004_v22 }
 0x5d1   :  { %4454 = vmatpush1.bf16.msra.mxu1 %v6002_v24 }
 0x5d4   :  { %4456 = vmatmul.mubr.bf16.vlgmr.msra.gmra.mrb[64].mxu1 %v3984_v28 }
 0x6a7   :  { %v4457_v48 = vpop.f32.mrb[64].mxu1 }
 0x6a8   :  { %v5419_v51 = vadd.f32 %v4457_v48, %v4055_v39  ;;  %v4459_v49 = vpop.f32.mrb[65].mxu1 }
 0x6a9   :  { %v5420_v40 = vadd.f32 %v4459_v49, %v4059_v47  ;;  %v4461_v63 = vpop.f32.mrb[66].mxu1 }
 0x6aa   :  { %v4464_v57 = vmax.f32 %v5419_v51, 0.0  ;;  %v4462_v44 = vpop.f32.mrb[67].mxu1 }
 0x6ab   :  { %v4465_v61 = vmax.f32 %v5420_v40, 0.0 }
 0x6ac   :  { %v4466_v42 = vpack.c.bf16 %v4464_v57, %v4464_v57 }
 0x6ad   :  { %v4467_v20 = vpack.c.bf16 %v4465_v61, %v4465_v61 }
 0x6af   :  { %4635 = vmatprep.mubr.bf16.mxu0 %v4467_v20 }
 0x6b0   :  { %4636 = vmatmul.mubr.bf16.vlgmr.msra.gmra.mrb[80].mxu0 %v4466_v42 }
 0x783   :  { %v5233_v50 = vpop.f32.mrb[80].mxu0 }
 0x784   :  { %v5234_v32 = vpop.f32.mrb[81].mxu0 }
 0x785   :  { %v5235_v53 = vadd.f32 %v5234_v32, %v5233_v50  ;;  %v5236_v38 = vpop.f32.mrb[82].mxu0 }
 0x786   :  { %v5237_v56 = vpop.f32.mrb[83].mxu0 }
 0x787   :  { %v4638_v1 = vadd.f32 %v5235_v53, %v5122_v45 }
 0x789   :  { %v4643_v58 = vsub.f32 0.0, %v4638_v1 }
 0x78b   :  { %v4644_v2 = vmul.f32 1.442695, %v4643_v58 }
 0x78d   :  { %6021 = vpow2.f32 %v4644_v2 }
 0x797   :  { %v6022_v3 = vpop.eup %6021 }
 0x798   :  { %v4646_v4 = vadd.f32 1.0, %v6022_v3 }
 0x79a   :  { %6023 = vrcp.f32 %v4646_v4 }
 0x7a4   :  { %v6024_v5 = vpop.eup %6023 }
 0x7a5   :  { %4649 = vst [vmem:[#allocation17] sm:$0x3] %v6024_v5 }
 0x7a6   :  { %6246 = shalt.err (!%p6243_p6)
}
 0x7a7   :  { %s6247_s22 = scalar_lea.hbm %s6974_s11, 32 }
 0x7a8   :  { %p6248_p7 = scmp.ne.s32.totalorder %s6974_s11, %s6247_s22  ;;  %p6251_p8 = scmp.lt.u32.totalorder %s6247_s22, %s6974_s11 }
 0x7aa   :  { %p6253_p9 = pnand %p6251_p8, %p6248_p7 }
 0x7ac   :  { %6256 = shalt.err (!%p6253_p9)
}
 0x7ad   :  { %4659 = dma.vmem_to_hbm [thread:$0]  %s4657_s20, 32, %s6974_s11, [#allocation4]  }
 0x7ae   :  { %6267 = dma.done.wait [#allocation4], 32  }
 0x7af   :  { %6268 = vsyncadd [#allocation4], 4294967264 }
 0x7b0   :  { %4663 = vsyncpa [#allocation3], 1 }
 0x7b1   :  { %4664 = vsyncpa [#allocation6], 1 }
 0x7b2   :  { %4665 = vsyncpa [#allocation9], 1 }
 0x7b3   :  { %4666 = vsyncpa [#allocation12], 1 }
 0x7b4   :  { %4667 = vsyncpa [#allocation15], 1 }
 0x7b5   :  { %4668 = vsyncpa [#allocation4], 1 }

</bundles_post_ra>
